<compile_context>
chip_gen: v7x
topology: tpu7x:2x2x1
jax: 0.10.0
libtpu: 0.0.40
codegen_flags: <defaults>
</compile_context>

<pallas_src>
import functools

import jax
import jax.numpy as jnp
from jax import lax
from jax.experimental import pallas as pl
from jax.experimental.pallas import tpu as pltpu


def _round_up(n, m):
    return ((n + m - 1) // m) * m


def _pad_gate_cols(w, h, hp):
    """(R, 4h) -> (R, 4hp): each PyTorch gate block (i, f, g, o) is placed at a
    128-lane-aligned offset g*hp; padding columns are zero."""
    r = w.shape[0]
    out = jnp.zeros((r, 4 * hp), w.dtype)
    for g in range(4):
        out = out.at[:, g * hp:g * hp + h].set(w[:, g * h:(g + 1) * h])
    return out


def _pad_rows(w, hp):
    return jnp.pad(w, ((0, hp - w.shape[0]), (0, 0)))


def _lstm_cls_kernel(xg_ref,     # (Tt, Bb, 4Hp) f32: precomputed x @ W_ih0 + b0
                     whh0_ref,   # (Hp, 4Hp)  bf16
                     w1_ref,     # (2Hp, 4Hp) bf16: [W_ih1; W_hh1]
                     b1_ref,     # (1, 4Hp)   f32
                     wfc_ref,    # (Hp, Cp)   bf16
                     bfc_ref,    # (1, Cp)    f32 (padded classes get -1e30)
                     out_ref,    # (Bb, Cp)   f32
                     h0_ref, c0_ref, h1_ref, c1_ref,  # VMEM scratch (Bb, Hp) f32
                     *, hidden_pad, time_block, unroll):
    hp = hidden_pad
    t_blk = pl.program_id(1)

    @pl.when(t_blk == 0)
    def _():
        h0_ref[...] = jnp.zeros_like(h0_ref)
        c0_ref[...] = jnp.zeros_like(c0_ref)
        h1_ref[...] = jnp.zeros_like(h1_ref)
        c1_ref[...] = jnp.zeros_like(c1_ref)

    # Stationary operands: load once per grid step, keep in vregs across the time loop.
    whh0 = whh0_ref[...]
    w1 = w1_ref[...]
    b1 = b1_ref[...]

    def gates_to_hc(g, c):
        # PyTorch gate order i, f, g, o; each slice is 128-lane aligned (free sub-view).
        i = jax.nn.sigmoid(g[:, 0 * hp:1 * hp])
        f = jax.nn.sigmoid(g[:, 1 * hp:2 * hp])
        gg = jnp.tanh(g[:, 2 * hp:3 * hp])
        o = jax.nn.sigmoid(g[:, 3 * hp:4 * hp])
        c_new = f * c + i * gg
        return o * jnp.tanh(c_new), c_new

    def step(tt, carry):
        h0, c0, h1, c1 = carry
        # Layer 0: only the recurrent matmul; x @ W_ih0 + b0 was precomputed (xg).
        g0 = xg_ref[tt] + jnp.dot(h0.astype(jnp.bfloat16), whh0,
                                  preferred_element_type=jnp.float32)
        h0, c0 = gates_to_hc(g0, c0)
        # Layer 1: fused single matmul [h0, h1] @ [W_ih1; W_hh1]; inter-layer dropout
        # is identity in eval mode.
        hh = jnp.concatenate([h0.astype(jnp.bfloat16), h1.astype(jnp.bfloat16)], axis=-1)
        g1 = jnp.dot(hh, w1, preferred_element_type=jnp.float32) + b1
        h1, c1 = gates_to_hc(g1, c1)
        return h0, c0, h1, c1

    carry = (h0_ref[...], c0_ref[...], h1_ref[...], c1_ref[...])
    h0, c0, h1, c1 = lax.fori_loop(0, time_block, step, carry, unroll=unroll)
    h0_ref[...] = h0
    c0_ref[...] = c0
    h1_ref[...] = h1
    c1_ref[...] = c1

    @pl.when(t_blk == pl.num_programs(1) - 1)
    def _():
        # fc on last hidden state of the top layer (dropout = identity in eval),
        # then softmax; padded class columns have bias -1e30 -> exp underflows to 0.
        logits = (jnp.dot(h1.astype(jnp.bfloat16), wfc_ref[...],
                          preferred_element_type=jnp.float32) + bfc_ref[...])
        m = jnp.max(logits, axis=1, keepdims=True)
        e = jnp.exp(logits - m)
        s = jnp.sum(e, axis=1, keepdims=True)
        out_ref[...] = (e * pl.reciprocal(s, approx=True)).astype(out_ref.dtype)


def lstm_classification_forward(x, params, *, hidden_size, num_classes,
                                time_block=None, batch_block=None):
    """x: (B, T, I) float32, batch_first like nn.LSTM(batch_first=True). Returns (B, C)."""
    B, T, I = x.shape
    H = hidden_size
    C = num_classes
    Hp = _round_up(H, 128)
    Cp = _round_up(C, 128)
    G = 4 * Hp

    Tt = T if time_block is None else time_block
    Bb = B if batch_block is None else batch_block
    assert T % Tt == 0 and B % Bb == 0
    assert Bb == B or Bb % 8 == 0, "batch block must be the full batch or a multiple of 8"

    wih0, whh0, b0, wih1, whh1, b1, wfc, bfc = params
    bf16 = jnp.bfloat16

    # Pad hidden/class dims to 128-lane multiples; weights as bf16 MXU operands
    # (f32 accumulation in the kernel). Padded lanes contribute exactly zero.
    wih0_p = _pad_gate_cols(wih0, H, Hp).astype(bf16)                          # (I, G)
    whh0_p = _pad_gate_cols(_pad_rows(whh0, Hp), H, Hp).astype(bf16)           # (Hp, G)
    b0_p = _pad_gate_cols(b0.reshape(1, -1), H, Hp).astype(jnp.float32)        # (1, G)
    w1_p = jnp.concatenate(
        [_pad_gate_cols(_pad_rows(wih1, Hp), H, Hp),
         _pad_gate_cols(_pad_rows(whh1, Hp), H, Hp)], axis=0).astype(bf16)     # (2Hp, G)
    b1_p = _pad_gate_cols(b1.reshape(1, -1), H, Hp).astype(jnp.float32)        # (1, G)
    wfc_p = jnp.pad(wfc, ((0, Hp - H), (0, Cp - C))).astype(bf16)              # (Hp, Cp)
    bfc_p = jnp.pad(bfc.reshape(1, -1), ((0, 0), (0, Cp - C)),
                    constant_values=-1e30).astype(jnp.float32)                 # (1, Cp)

    # Hoist the non-recurrent layer-0 input projection out of the time loop:
    # one large bf16 matmul over all T timesteps (bias b0 folded in).
    x_tm = jnp.transpose(x, (1, 0, 2))                                         # (T, B, I)
    xg = (jnp.dot(x_tm.reshape(T * B, I).astype(bf16), wih0_p,
                  preferred_element_type=jnp.float32).reshape(T, B, G) + b0_p)  # (T, B, G)

    kernel = functools.partial(_lstm_cls_kernel, hidden_pad=Hp,
                               time_block=Tt, unroll=bool(Tt <= 16))

    grid_spec = pltpu.PrefetchScalarGridSpec(
        num_scalar_prefetch=0,
        grid=(B // Bb, T // Tt),
        in_specs=[
            pl.BlockSpec((Tt, Bb, G), lambda b, t: (t, b, 0)),  # Tt timesteps per grid step
            # Stationary weights (constant block index). On VMEM-tight v7x configs at
            # large H these could additionally be single-buffered via pipeline_mode
            # and vmem_limit_bytes raised; not needed at these shapes.
            pl.BlockSpec((Hp, G), lambda b, t: (0, 0)),
            pl.BlockSpec((2 * Hp, G), lambda b, t: (0, 0)),
            pl.BlockSpec((1, G), lambda b, t: (0, 0)),
            pl.BlockSpec((Hp, Cp), lambda b, t: (0, 0)),
            pl.BlockSpec((1, Cp), lambda b, t: (0, 0)),
        ],
        out_specs=pl.BlockSpec((Bb, Cp), lambda b, t: (b, 0)),  # resident across time blocks
        scratch_shapes=[pltpu.VMEM((Bb, Hp), jnp.float32) for _ in range(4)],
    )

    out_padded = pl.pallas_call(
        kernel,
        out_shape=jax.ShapeDtypeStruct((B, Cp), jnp.float32),
        grid_spec=grid_spec,
        compiler_params=pltpu.CompilerParams(
            # batch tiles independent (megacore-shardable on v7x); time is sequential.
            dimension_semantics=("parallel", "arbitrary")),
    )(xg, whh0_p, w1_p, b1_p, wfc_p, bfc_p)

    return out_padded[:, :C]


def init_params(key, input_size, hidden_size, num_classes):
    """Deterministic synthetic params matching PyTorch nn.LSTM/nn.Linear shapes
    (stored pre-transposed for right-multiplication); unpadded f32."""
    H = hidden_size
    k = 1.0 / jnp.sqrt(jnp.float32(H))
    ks = jax.random.split(key, 8)
    u = lambda kk, shape: jax.random.uniform(kk, shape, jnp.float32, -k, k)
    wih0 = u(ks[0], (input_size, 4 * H))      # = weight_ih_l0.T
    whh0 = u(ks[1], (H, 4 * H))               # = weight_hh_l0.T
    b0 = u(ks[2], (1, 4 * H))                 # = (bias_ih_l0 + bias_hh_l0)
    wih1 = u(ks[3], (H, 4 * H))               # = weight_ih_l1.T
    whh1 = u(ks[4], (H, 4 * H))               # = weight_hh_l1.T
    b1 = u(ks[5], (1, 4 * H))
    wfc = u(ks[6], (H, num_classes))          # = fc.weight.T
    bfc = u(ks[7], (1, num_classes))
    return (wih0, whh0, b0, wih1, whh1, b1, wfc, bfc)


def _reference_forward(x, params, hidden_size, num_classes):
    """Pure-JAX reference (eval mode) with the same bf16 MXU-operand quantization."""
    wih0, whh0, b0, wih1, whh1, b1, wfc, bfc = params
    B, T, I = x.shape
    H = hidden_size
    bf16 = jnp.bfloat16

    def mm(a, w):
        return jnp.dot(a.astype(bf16), w.astype(bf16), preferred_element_type=jnp.float32)

    def gates_to_hc(g, c):
        i = jax.nn.sigmoid(g[:, :H])
        f = jax.nn.sigmoid(g[:, H:2 * H])
        gg = jnp.tanh(g[:, 2 * H:3 * H])
        o = jax.nn.sigmoid(g[:, 3 * H:])
        c = f * c + i * gg
        return o * jnp.tanh(c), c

    h0 = c0 = h1 = c1 = jnp.zeros((B, H), jnp.float32)
    for t in range(T):
        g0 = mm(x[:, t, :], wih0) + mm(h0, whh0) + b0
        h0, c0 = gates_to_hc(g0, c0)
        g1 = mm(h0, wih1) + mm(h1, whh1) + b1
        h1, c1 = gates_to_hc(g1, c1)
    logits = mm(h1, wfc) + bfc
    return jax.nn.softmax(logits, axis=1)


if __name__ == "__main__":
    B, T, I = 2, 8, 16
    H, C = 32, 2

    key = jax.random.PRNGKey(0)
    kx, kp = jax.random.split(key)
    x = jax.random.normal(kx, (B, T, I), jnp.float32)
    params = init_params(kp, I, H, C)

    fwd = jax.jit(functools.partial(lstm_classification_forward,
                                    hidden_size=H, num_classes=C))
    out = jax.block_until_ready(fwd(x, params))

    # Also exercise the time-blocked path (grid > 1 along time, state carried in scratch).
    fwd_blk = jax.jit(functools.partial(lstm_classification_forward,
                                        hidden_size=H, num_classes=C, time_block=4))
    out_blk = jax.block_until_ready(fwd_blk(x, params))

    ref = _reference_forward(x, params, H, C)
    assert out.shape == (B, C)
    # Tolerance accounts for bf16 MXU operands (mirrored in the reference) and the
    # EUP approximate reciprocal in the final softmax (~1e-4 relative).
    assert jnp.allclose(out, ref, atol=1e-3, rtol=1e-3), (out, ref)
    assert jnp.allclose(out_blk, ref, atol=1e-3, rtol=1e-3), (out_blk, ref)
    print("KERNEL_OK")
</pallas_src>

<mosaic_0001>
module attributes {stable_mosaic.version = 11 : i64} {
  func.func @_lstm_cls_kernel(%arg0: i32, %arg1: i32, %arg2: memref<8x2x512xf32, #tpu.memory_space<vmem>>, %arg3: memref<128x512xbf16, #tpu.memory_space<vmem>>, %arg4: memref<256x512xbf16, #tpu.memory_space<vmem>>, %arg5: memref<1x512xf32, #tpu.memory_space<vmem>>, %arg6: memref<128x128xbf16, #tpu.memory_space<vmem>>, %arg7: memref<1x128xf32, #tpu.memory_space<vmem>>, %arg8: memref<2x128xf32, #tpu.memory_space<vmem>>, %arg9: memref<2x128xf32, #tpu.memory_space<vmem>>, %arg10: memref<2x128xf32, #tpu.memory_space<vmem>>, %arg11: memref<2x128xf32, #tpu.memory_space<vmem>>, %arg12: memref<2x128xf32, #tpu.memory_space<vmem>>) attributes {dimension_semantics = [#tpu.dimension_semantics<parallel>, #tpu.dimension_semantics<arbitrary>], iteration_bounds = array<i64: 1, 1>, scalar_prefetch = 0 : i64, scratch_operands = 4 : i64, tpu.core_type = #tpu.core_type<tc>, window_params = [{transform_indices = @transform_0, window_bounds = array<i64: 8, 2, 512>}, {pipeline_mode = #tpu.pipeline_mode<synchronous>, transform_indices = @transform_1, window_bounds = array<i64: 128, 512>}, {pipeline_mode = #tpu.pipeline_mode<synchronous>, transform_indices = @transform_2, window_bounds = array<i64: 256, 512>}, {pipeline_mode = #tpu.pipeline_mode<synchronous>, transform_indices = @transform_3, window_bounds = array<i64: 1, 512>}, {pipeline_mode = #tpu.pipeline_mode<synchronous>, transform_indices = @transform_4, window_bounds = array<i64: 128, 128>}, {pipeline_mode = #tpu.pipeline_mode<synchronous>, transform_indices = @transform_5, window_bounds = array<i64: 1, 128>}, {transform_indices = @transform_6, window_bounds = array<i64: 2, 128>}]} {
    %c0_i32 = arith.constant 0 : i32
    %0 = arith.cmpi eq, %arg1, %c0_i32 : i32
    %1 = arith.extui %0 : i1 to i32
    %c0_i32_0 = arith.constant 0 : i32
    %2 = arith.cmpi ne, %1, %c0_i32_0 : i32
    scf.if %2 {
      %cst_104 = arith.constant 0.000000e+00 : f32
      %513 = vector.broadcast %cst_104 : f32 to vector<2x128xf32>
      %c0_105 = arith.constant 0 : index
      %c0_106 = arith.constant 0 : index
      %514 = vector.load %arg9[%c0_105, %c0_106] : memref<2x128xf32, #tpu.memory_space<vmem>>, vector<2x128xf32>
      tpu.vector_store %arg9[%c0_105, %c0_106], %513 {strides = array<i32>} : memref<2x128xf32, #tpu.memory_space<vmem>>, vector<2x128xf32>,
      %cst_107 = arith.constant 0.000000e+00 : f32
      %515 = vector.broadcast %cst_107 : f32 to vector<2x128xf32>
      %c0_108 = arith.constant 0 : index
      %c0_109 = arith.constant 0 : index
      %516 = vector.load %arg10[%c0_108, %c0_109] : memref<2x128xf32, #tpu.memory_space<vmem>>, vector<2x128xf32>
      tpu.vector_store %arg10[%c0_108, %c0_109], %515 {strides = array<i32>} : memref<2x128xf32, #tpu.memory_space<vmem>>, vector<2x128xf32>,
      %cst_110 = arith.constant 0.000000e+00 : f32
      %517 = vector.broadcast %cst_110 : f32 to vector<2x128xf32>
      %c0_111 = arith.constant 0 : index
      %c0_112 = arith.constant 0 : index
      %518 = vector.load %arg11[%c0_111, %c0_112] : memref<2x128xf32, #tpu.memory_space<vmem>>, vector<2x128xf32>
      tpu.vector_store %arg11[%c0_111, %c0_112], %517 {strides = array<i32>} : memref<2x128xf32, #tpu.memory_space<vmem>>, vector<2x128xf32>,
      %cst_113 = arith.constant 0.000000e+00 : f32
      %519 = vector.broadcast %cst_113 : f32 to vector<2x128xf32>
      %c0_114 = arith.constant 0 : index
      %c0_115 = arith.constant 0 : index
      %520 = vector.load %arg12[%c0_114, %c0_115] : memref<2x128xf32, #tpu.memory_space<vmem>>, vector<2x128xf32>
      tpu.vector_store %arg12[%c0_114, %c0_115], %519 {strides = array<i32>} : memref<2x128xf32, #tpu.memory_space<vmem>>, vector<2x128xf32>,
    } else {
    }
    %c0 = arith.constant 0 : index
    %c0_1 = arith.constant 0 : index
    %3 = vector.load %arg3[%c0, %c0_1] : memref<128x512xbf16, #tpu.memory_space<vmem>>, vector<128x512xbf16>
    %c0_2 = arith.constant 0 : index
    %c0_3 = arith.constant 0 : index
    %4 = vector.load %arg4[%c0_2, %c0_3] : memref<256x512xbf16, #tpu.memory_space<vmem>>, vector<256x512xbf16>
    %c0_4 = arith.constant 0 : index
    %c0_5 = arith.constant 0 : index
    %5 = vector.load %arg5[%c0_4, %c0_5] : memref<1x512xf32, #tpu.memory_space<vmem>>, vector<1x512xf32>
    %c0_6 = arith.constant 0 : index
    %c0_7 = arith.constant 0 : index
    %6 = vector.load %arg9[%c0_6, %c0_7] : memref<2x128xf32, #tpu.memory_space<vmem>>, vector<2x128xf32>
    %c0_8 = arith.constant 0 : index
    %c0_9 = arith.constant 0 : index
    %7 = vector.load %arg10[%c0_8, %c0_9] : memref<2x128xf32, #tpu.memory_space<vmem>>, vector<2x128xf32>
    %c0_10 = arith.constant 0 : index
    %c0_11 = arith.constant 0 : index
    %8 = vector.load %arg11[%c0_10, %c0_11] : memref<2x128xf32, #tpu.memory_space<vmem>>, vector<2x128xf32>
    %c0_12 = arith.constant 0 : index
    %c0_13 = arith.constant 0 : index
    %9 = vector.load %arg12[%c0_12, %c0_13] : memref<2x128xf32, #tpu.memory_space<vmem>>, vector<2x128xf32>
    %c0_i32_14 = arith.constant 0 : i32
    %10 = arith.index_cast %c0_i32_14 : i32 to index
    %c0_15 = arith.constant 0 : index
    %c0_16 = arith.constant 0 : index
    %11 = vector.load %arg2[%10, %c0_15, %c0_16] : memref<8x2x512xf32, #tpu.memory_space<vmem>>, vector<1x2x512xf32>
    %12 = vector.shape_cast %11 : vector<1x2x512xf32> to vector<2x512xf32>
    %13 = arith.truncf %6 : vector<2x128xf32> to vector<2x128xbf16>
    %cst = arith.constant dense<0.000000e+00> : vector<2x512xf32>
    %14 = tpu.matmul %13, %3, %cst {dimension_numbers = #tpu.dot_dimension_numbers<[1], [0], [0], [1], [0, 0, 1, 1], [], []>} : vector<2x128xbf16>, vector<128x512xbf16>, vector<2x512xf32> -> vector<2x512xf32>
    %15 = arith.addf %12, %14 : vector<2x512xf32>
    %16 = vector.extract_strided_slice %15 {offsets = [0, 0], sizes = [2, 128], strides = [1, 1]} : vector<2x512xf32> to vector<2x128xf32>
    %17 = arith.negf %16 : vector<2x128xf32>
    %18 = math.exp %17 : vector<2x128xf32>
    %cst_17 = arith.constant 1.000000e+00 : f32
    %19 = vector.broadcast %cst_17 : f32 to vector<2x128xf32>
    %20 = arith.addf %19, %18 : vector<2x128xf32>
    %21 = arith.divf %19, %20 : vector<2x128xf32>
    %22 = vector.extract_strided_slice %15 {offsets = [0, 128], sizes = [2, 128], strides = [1, 1]} : vector<2x512xf32> to vector<2x128xf32>
    %23 = arith.negf %22 : vector<2x128xf32>
    %24 = math.exp %23 : vector<2x128xf32>
    %cst_18 = arith.constant 1.000000e+00 : f32
    %25 = vector.broadcast %cst_18 : f32 to vector<2x128xf32>
    %26 = arith.addf %25, %24 : vector<2x128xf32>
    %27 = arith.divf %25, %26 : vector<2x128xf32>
    %28 = vector.extract_strided_slice %15 {offsets = [0, 256], sizes = [2, 128], strides = [1, 1]} : vector<2x512xf32> to vector<2x128xf32>
    %29 = math.tanh %28 : vector<2x128xf32>
    %30 = vector.extract_strided_slice %15 {offsets = [0, 384], sizes = [2, 128], strides = [1, 1]} : vector<2x512xf32> to vector<2x128xf32>
    %31 = arith.negf %30 : vector<2x128xf32>
    %32 = math.exp %31 : vector<2x128xf32>
    %cst_19 = arith.constant 1.000000e+00 : f32
    %33 = vector.broadcast %cst_19 : f32 to vector<2x128xf32>
    %34 = arith.addf %33, %32 : vector<2x128xf32>
    %35 = arith.divf %33, %34 : vector<2x128xf32>
    %36 = arith.mulf %27, %7 : vector<2x128xf32>
    %37 = arith.mulf %21, %29 : vector<2x128xf32>
    %38 = arith.addf %36, %37 : vector<2x128xf32>
    %39 = math.tanh %38 : vector<2x128xf32>
    %40 = arith.mulf %35, %39 : vector<2x128xf32>
    %41 = arith.truncf %40 : vector<2x128xf32> to vector<2x128xbf16>
    %42 = arith.truncf %8 : vector<2x128xf32> to vector<2x128xbf16>
    %43 = tpu.concatenate %41, %42 in 1 : vector<2x128xbf16>, vector<2x128xbf16> -> vector<2x256xbf16>
    %cst_20 = arith.constant dense<0.000000e+00> : vector<2x512xf32>
    %44 = tpu.matmul %43, %4, %cst_20 {dimension_numbers = #tpu.dot_dimension_numbers<[1], [0], [0], [1], [0, 0, 1, 1], [], []>} : vector<2x256xbf16>, vector<256x512xbf16>, vector<2x512xf32> -> vector<2x512xf32>
    %45 = vector.broadcast %5 : vector<1x512xf32> to vector<2x512xf32>
    %46 = arith.addf %44, %45 : vector<2x512xf32>
    %47 = vector.extract_strided_slice %46 {offsets = [0, 0], sizes = [2, 128], strides = [1, 1]} : vector<2x512xf32> to vector<2x128xf32>
    %48 = arith.negf %47 : vector<2x128xf32>
    %49 = math.exp %48 : vector<2x128xf32>
    %cst_21 = arith.constant 1.000000e+00 : f32
    %50 = vector.broadcast %cst_21 : f32 to vector<2x128xf32>
    %51 = arith.addf %50, %49 : vector<2x128xf32>
    %52 = arith.divf %50, %51 : vector<2x128xf32>
    %53 = vector.extract_strided_slice %46 {offsets = [0, 128], sizes = [2, 128], strides = [1, 1]} : vector<2x512xf32> to vector<2x128xf32>
    %54 = arith.negf %53 : vector<2x128xf32>
    %55 = math.exp %54 : vector<2x128xf32>
    %cst_22 = arith.constant 1.000000e+00 : f32
    %56 = vector.broadcast %cst_22 : f32 to vector<2x128xf32>
    %57 = arith.addf %56, %55 : vector<2x128xf32>
    %58 = arith.divf %56, %57 : vector<2x128xf32>
    %59 = vector.extract_strided_slice %46 {offsets = [0, 256], sizes = [2, 128], strides = [1, 1]} : vector<2x512xf32> to vector<2x128xf32>
    %60 = math.tanh %59 : vector<2x128xf32>
    %61 = vector.extract_strided_slice %46 {offsets = [0, 384], sizes = [2, 128], strides = [1, 1]} : vector<2x512xf32> to vector<2x128xf32>
    %62 = arith.negf %61 : vector<2x128xf32>
    %63 = math.exp %62 : vector<2x128xf32>
    %cst_23 = arith.constant 1.000000e+00 : f32
    %64 = vector.broadcast %cst_23 : f32 to vector<2x128xf32>
    %65 = arith.addf %64, %63 : vector<2x128xf32>
    %66 = arith.divf %64, %65 : vector<2x128xf32>
    %67 = arith.mulf %58, %9 : vector<2x128xf32>
    %68 = arith.mulf %52, %60 : vector<2x128xf32>
    %69 = arith.addf %67, %68 : vector<2x128xf32>
    %70 = math.tanh %69 : vector<2x128xf32>
    %71 = arith.mulf %66, %70 : vector<2x128xf32>
    %c1_i32 = arith.constant 1 : i32
    %72 = arith.index_cast %c1_i32 : i32 to index
    %c0_24 = arith.constant 0 : index
    %c0_25 = arith.constant 0 : index
    %73 = vector.load %arg2[%72, %c0_24, %c0_25] : memref<8x2x512xf32, #tpu.memory_space<vmem>>, vector<1x2x512xf32>
    %74 = vector.shape_cast %73 : vector<1x2x512xf32> to vector<2x512xf32>
    %75 = arith.truncf %40 : vector<2x128xf32> to vector<2x128xbf16>
    %cst_26 = arith.constant dense<0.000000e+00> : vector<2x512xf32>
    %76 = tpu.matmul %75, %3, %cst_26 {dimension_numbers = #tpu.dot_dimension_numbers<[1], [0], [0], [1], [0, 0, 1, 1], [], []>} : vector<2x128xbf16>, vector<128x512xbf16>, vector<2x512xf32> -> vector<2x512xf32>
    %77 = arith.addf %74, %76 : vector<2x512xf32>
    %78 = vector.extract_strided_slice %77 {offsets = [0, 0], sizes = [2, 128], strides = [1, 1]} : vector<2x512xf32> to vector<2x128xf32>
    %79 = arith.negf %78 : vector<2x128xf32>
    %80 = math.exp %79 : vector<2x128xf32>
    %cst_27 = arith.constant 1.000000e+00 : f32
    %81 = vector.broadcast %cst_27 : f32 to vector<2x128xf32>
    %82 = arith.addf %81, %80 : vector<2x128xf32>
    %83 = arith.divf %81, %82 : vector<2x128xf32>
    %84 = vector.extract_strided_slice %77 {offsets = [0, 128], sizes = [2, 128], strides = [1, 1]} : vector<2x512xf32> to vector<2x128xf32>
    %85 = arith.negf %84 : vector<2x128xf32>
    %86 = math.exp %85 : vector<2x128xf32>
    %cst_28 = arith.constant 1.000000e+00 : f32
    %87 = vector.broadcast %cst_28 : f32 to vector<2x128xf32>
    %88 = arith.addf %87, %86 : vector<2x128xf32>
    %89 = arith.divf %87, %88 : vector<2x128xf32>
    %90 = vector.extract_strided_slice %77 {offsets = [0, 256], sizes = [2, 128], strides = [1, 1]} : vector<2x512xf32> to vector<2x128xf32>
    %91 = math.tanh %90 : vector<2x128xf32>
    %92 = vector.extract_strided_slice %77 {offsets = [0, 384], sizes = [2, 128], strides = [1, 1]} : vector<2x512xf32> to vector<2x128xf32>
    %93 = arith.negf %92 : vector<2x128xf32>
    %94 = math.exp %93 : vector<2x128xf32>
    %cst_29 = arith.constant 1.000000e+00 : f32
    %95 = vector.broadcast %cst_29 : f32 to vector<2x128xf32>
    %96 = arith.addf %95, %94 : vector<2x128xf32>
    %97 = arith.divf %95, %96 : vector<2x128xf32>
    %98 = arith.mulf %89, %38 : vector<2x128xf32>
    %99 = arith.mulf %83, %91 : vector<2x128xf32>
    %100 = arith.addf %98, %99 : vector<2x128xf32>
    %101 = math.tanh %100 : vector<2x128xf32>
    %102 = arith.mulf %97, %101 : vector<2x128xf32>
    %103 = arith.truncf %102 : vector<2x128xf32> to vector<2x128xbf16>
    %104 = arith.truncf %71 : vector<2x128xf32> to vector<2x128xbf16>
    %105 = tpu.concatenate %103, %104 in 1 : vector<2x128xbf16>, vector<2x128xbf16> -> vector<2x256xbf16>
    %cst_30 = arith.constant dense<0.000000e+00> : vector<2x512xf32>
    %106 = tpu.matmul %105, %4, %cst_30 {dimension_numbers = #tpu.dot_dimension_numbers<[1], [0], [0], [1], [0, 0, 1, 1], [], []>} : vector<2x256xbf16>, vector<256x512xbf16>, vector<2x512xf32> -> vector<2x512xf32>
    %107 = vector.broadcast %5 : vector<1x512xf32> to vector<2x512xf32>
    %108 = arith.addf %106, %107 : vector<2x512xf32>
    %109 = vector.extract_strided_slice %108 {offsets = [0, 0], sizes = [2, 128], strides = [1, 1]} : vector<2x512xf32> to vector<2x128xf32>
    %110 = arith.negf %109 : vector<2x128xf32>
    %111 = math.exp %110 : vector<2x128xf32>
    %cst_31 = arith.constant 1.000000e+00 : f32
    %112 = vector.broadcast %cst_31 : f32 to vector<2x128xf32>
    %113 = arith.addf %112, %111 : vector<2x128xf32>
    %114 = arith.divf %112, %113 : vector<2x128xf32>
    %115 = vector.extract_strided_slice %108 {offsets = [0, 128], sizes = [2, 128], strides = [1, 1]} : vector<2x512xf32> to vector<2x128xf32>
    %116 = arith.negf %115 : vector<2x128xf32>
    %117 = math.exp %116 : vector<2x128xf32>
    %cst_32 = arith.constant 1.000000e+00 : f32
    %118 = vector.broadcast %cst_32 : f32 to vector<2x128xf32>
    %119 = arith.addf %118, %117 : vector<2x128xf32>
    %120 = arith.divf %118, %119 : vector<2x128xf32>
    %121 = vector.extract_strided_slice %108 {offsets = [0, 256], sizes = [2, 128], strides = [1, 1]} : vector<2x512xf32> to vector<2x128xf32>
    %122 = math.tanh %121 : vector<2x128xf32>
    %123 = vector.extract_strided_slice %108 {offsets = [0, 384], sizes = [2, 128], strides = [1, 1]} : vector<2x512xf32> to vector<2x128xf32>
    %124 = arith.negf %123 : vector<2x128xf32>
    %125 = math.exp %124 : vector<2x128xf32>
    %cst_33 = arith.constant 1.000000e+00 : f32
    %126 = vector.broadcast %cst_33 : f32 to vector<2x128xf32>
    %127 = arith.addf %126, %125 : vector<2x128xf32>
    %128 = arith.divf %126, %127 : vector<2x128xf32>
    %129 = arith.mulf %120, %69 : vector<2x128xf32>
    %130 = arith.mulf %114, %122 : vector<2x128xf32>
    %131 = arith.addf %129, %130 : vector<2x128xf32>
    %132 = math.tanh %131 : vector<2x128xf32>
    %133 = arith.mulf %128, %132 : vector<2x128xf32>
    %c2_i32 = arith.constant 2 : i32
    %134 = arith.index_cast %c2_i32 : i32 to index
    %c0_34 = arith.constant 0 : index
    %c0_35 = arith.constant 0 : index
    %135 = vector.load %arg2[%134, %c0_34, %c0_35] : memref<8x2x512xf32, #tpu.memory_space<vmem>>, vector<1x2x512xf32>
    %136 = vector.shape_cast %135 : vector<1x2x512xf32> to vector<2x512xf32>
    %137 = arith.truncf %102 : vector<2x128xf32> to vector<2x128xbf16>
    %cst_36 = arith.constant dense<0.000000e+00> : vector<2x512xf32>
    %138 = tpu.matmul %137, %3, %cst_36 {dimension_numbers = #tpu.dot_dimension_numbers<[1], [0], [0], [1], [0, 0, 1, 1], [], []>} : vector<2x128xbf16>, vector<128x512xbf16>, vector<2x512xf32> -> vector<2x512xf32>
    %139 = arith.addf %136, %138 : vector<2x512xf32>
    %140 = vector.extract_strided_slice %139 {offsets = [0, 0], sizes = [2, 128], strides = [1, 1]} : vector<2x512xf32> to vector<2x128xf32>
    %141 = arith.negf %140 : vector<2x128xf32>
    %142 = math.exp %141 : vector<2x128xf32>
    %cst_37 = arith.constant 1.000000e+00 : f32
    %143 = vector.broadcast %cst_37 : f32 to vector<2x128xf32>
    %144 = arith.addf %143, %142 : vector<2x128xf32>
    %145 = arith.divf %143, %144 : vector<2x128xf32>
    %146 = vector.extract_strided_slice %139 {offsets = [0, 128], sizes = [2, 128], strides = [1, 1]} : vector<2x512xf32> to vector<2x128xf32>
    %147 = arith.negf %146 : vector<2x128xf32>
    %148 = math.exp %147 : vector<2x128xf32>
    %cst_38 = arith.constant 1.000000e+00 : f32
    %149 = vector.broadcast %cst_38 : f32 to vector<2x128xf32>
    %150 = arith.addf %149, %148 : vector<2x128xf32>
    %151 = arith.divf %149, %150 : vector<2x128xf32>
    %152 = vector.extract_strided_slice %139 {offsets = [0, 256], sizes = [2, 128], strides = [1, 1]} : vector<2x512xf32> to vector<2x128xf32>
    %153 = math.tanh %152 : vector<2x128xf32>
    %154 = vector.extract_strided_slice %139 {offsets = [0, 384], sizes = [2, 128], strides = [1, 1]} : vector<2x512xf32> to vector<2x128xf32>
    %155 = arith.negf %154 : vector<2x128xf32>
    %156 = math.exp %155 : vector<2x128xf32>
    %cst_39 = arith.constant 1.000000e+00 : f32
    %157 = vector.broadcast %cst_39 : f32 to vector<2x128xf32>
    %158 = arith.addf %157, %156 : vector<2x128xf32>
    %159 = arith.divf %157, %158 : vector<2x128xf32>
    %160 = arith.mulf %151, %100 : vector<2x128xf32>
    %161 = arith.mulf %145, %153 : vector<2x128xf32>
    %162 = arith.addf %160, %161 : vector<2x128xf32>
    %163 = math.tanh %162 : vector<2x128xf32>
    %164 = arith.mulf %159, %163 : vector<2x128xf32>
    %165 = arith.truncf %164 : vector<2x128xf32> to vector<2x128xbf16>
    %166 = arith.truncf %133 : vector<2x128xf32> to vector<2x128xbf16>
    %167 = tpu.concatenate %165, %166 in 1 : vector<2x128xbf16>, vector<2x128xbf16> -> vector<2x256xbf16>
    %cst_40 = arith.constant dense<0.000000e+00> : vector<2x512xf32>
    %168 = tpu.matmul %167, %4, %cst_40 {dimension_numbers = #tpu.dot_dimension_numbers<[1], [0], [0], [1], [0, 0, 1, 1], [], []>} : vector<2x256xbf16>, vector<256x512xbf16>, vector<2x512xf32> -> vector<2x512xf32>
    %169 = vector.broadcast %5 : vector<1x512xf32> to vector<2x512xf32>
    %170 = arith.addf %168, %169 : vector<2x512xf32>
    %171 = vector.extract_strided_slice %170 {offsets = [0, 0], sizes = [2, 128], strides = [1, 1]} : vector<2x512xf32> to vector<2x128xf32>
    %172 = arith.negf %171 : vector<2x128xf32>
    %173 = math.exp %172 : vector<2x128xf32>
    %cst_41 = arith.constant 1.000000e+00 : f32
    %174 = vector.broadcast %cst_41 : f32 to vector<2x128xf32>
    %175 = arith.addf %174, %173 : vector<2x128xf32>
    %176 = arith.divf %174, %175 : vector<2x128xf32>
    %177 = vector.extract_strided_slice %170 {offsets = [0, 128], sizes = [2, 128], strides = [1, 1]} : vector<2x512xf32> to vector<2x128xf32>
    %178 = arith.negf %177 : vector<2x128xf32>
    %179 = math.exp %178 : vector<2x128xf32>
    %cst_42 = arith.constant 1.000000e+00 : f32
    %180 = vector.broadcast %cst_42 : f32 to vector<2x128xf32>
    %181 = arith.addf %180, %179 : vector<2x128xf32>
    %182 = arith.divf %180, %181 : vector<2x128xf32>
    %183 = vector.extract_strided_slice %170 {offsets = [0, 256], sizes = [2, 128], strides = [1, 1]} : vector<2x512xf32> to vector<2x128xf32>
    %184 = math.tanh %183 : vector<2x128xf32>
    %185 = vector.extract_strided_slice %170 {offsets = [0, 384], sizes = [2, 128], strides = [1, 1]} : vector<2x512xf32> to vector<2x128xf32>
    %186 = arith.negf %185 : vector<2x128xf32>
    %187 = math.exp %186 : vector<2x128xf32>
    %cst_43 = arith.constant 1.000000e+00 : f32
    %188 = vector.broadcast %cst_43 : f32 to vector<2x128xf32>
    %189 = arith.addf %188, %187 : vector<2x128xf32>
    %190 = arith.divf %188, %189 : vector<2x128xf32>
    %191 = arith.mulf %182, %131 : vector<2x128xf32>
    %192 = arith.mulf %176, %184 : vector<2x128xf32>
    %193 = arith.addf %191, %192 : vector<2x128xf32>
    %194 = math.tanh %193 : vector<2x128xf32>
    %195 = arith.mulf %190, %194 : vector<2x128xf32>
    %c3_i32 = arith.constant 3 : i32
    %196 = arith.index_cast %c3_i32 : i32 to index
    %c0_44 = arith.constant 0 : index
    %c0_45 = arith.constant 0 : index
    %197 = vector.load %arg2[%196, %c0_44, %c0_45] : memref<8x2x512xf32, #tpu.memory_space<vmem>>, vector<1x2x512xf32>
    %198 = vector.shape_cast %197 : vector<1x2x512xf32> to vector<2x512xf32>
    %199 = arith.truncf %164 : vector<2x128xf32> to vector<2x128xbf16>
    %cst_46 = arith.constant dense<0.000000e+00> : vector<2x512xf32>
    %200 = tpu.matmul %199, %3, %cst_46 {dimension_numbers = #tpu.dot_dimension_numbers<[1], [0], [0], [1], [0, 0, 1, 1], [], []>} : vector<2x128xbf16>, vector<128x512xbf16>, vector<2x512xf32> -> vector<2x512xf32>
    %201 = arith.addf %198, %200 : vector<2x512xf32>
    %202 = vector.extract_strided_slice %201 {offsets = [0, 0], sizes = [2, 128], strides = [1, 1]} : vector<2x512xf32> to vector<2x128xf32>
    %203 = arith.negf %202 : vector<2x128xf32>
    %204 = math.exp %203 : vector<2x128xf32>
    %cst_47 = arith.constant 1.000000e+00 : f32
    %205 = vector.broadcast %cst_47 : f32 to vector<2x128xf32>
    %206 = arith.addf %205, %204 : vector<2x128xf32>
    %207 = arith.divf %205, %206 : vector<2x128xf32>
    %208 = vector.extract_strided_slice %201 {offsets = [0, 128], sizes = [2, 128], strides = [1, 1]} : vector<2x512xf32> to vector<2x128xf32>
    %209 = arith.negf %208 : vector<2x128xf32>
    %210 = math.exp %209 : vector<2x128xf32>
    %cst_48 = arith.constant 1.000000e+00 : f32
    %211 = vector.broadcast %cst_48 : f32 to vector<2x128xf32>
    %212 = arith.addf %211, %210 : vector<2x128xf32>
    %213 = arith.divf %211, %212 : vector<2x128xf32>
    %214 = vector.extract_strided_slice %201 {offsets = [0, 256], sizes = [2, 128], strides = [1, 1]} : vector<2x512xf32> to vector<2x128xf32>
    %215 = math.tanh %214 : vector<2x128xf32>
    %216 = vector.extract_strided_slice %201 {offsets = [0, 384], sizes = [2, 128], strides = [1, 1]} : vector<2x512xf32> to vector<2x128xf32>
    %217 = arith.negf %216 : vector<2x128xf32>
    %218 = math.exp %217 : vector<2x128xf32>
    %cst_49 = arith.constant 1.000000e+00 : f32
    %219 = vector.broadcast %cst_49 : f32 to vector<2x128xf32>
    %220 = arith.addf %219, %218 : vector<2x128xf32>
    %221 = arith.divf %219, %220 : vector<2x128xf32>
    %222 = arith.mulf %213, %162 : vector<2x128xf32>
    %223 = arith.mulf %207, %215 : vector<2x128xf32>
    %224 = arith.addf %222, %223 : vector<2x128xf32>
    %225 = math.tanh %224 : vector<2x128xf32>
    %226 = arith.mulf %221, %225 : vector<2x128xf32>
    %227 = arith.truncf %226 : vector<2x128xf32> to vector<2x128xbf16>
    %228 = arith.truncf %195 : vector<2x128xf32> to vector<2x128xbf16>
    %229 = tpu.concatenate %227, %228 in 1 : vector<2x128xbf16>, vector<2x128xbf16> -> vector<2x256xbf16>
    %cst_50 = arith.constant dense<0.000000e+00> : vector<2x512xf32>
    %230 = tpu.matmul %229, %4, %cst_50 {dimension_numbers = #tpu.dot_dimension_numbers<[1], [0], [0], [1], [0, 0, 1, 1], [], []>} : vector<2x256xbf16>, vector<256x512xbf16>, vector<2x512xf32> -> vector<2x512xf32>
    %231 = vector.broadcast %5 : vector<1x512xf32> to vector<2x512xf32>
    %232 = arith.addf %230, %231 : vector<2x512xf32>
    %233 = vector.extract_strided_slice %232 {offsets = [0, 0], sizes = [2, 128], strides = [1, 1]} : vector<2x512xf32> to vector<2x128xf32>
    %234 = arith.negf %233 : vector<2x128xf32>
    %235 = math.exp %234 : vector<2x128xf32>
    %cst_51 = arith.constant 1.000000e+00 : f32
    %236 = vector.broadcast %cst_51 : f32 to vector<2x128xf32>
    %237 = arith.addf %236, %235 : vector<2x128xf32>
    %238 = arith.divf %236, %237 : vector<2x128xf32>
    %239 = vector.extract_strided_slice %232 {offsets = [0, 128], sizes = [2, 128], strides = [1, 1]} : vector<2x512xf32> to vector<2x128xf32>
    %240 = arith.negf %239 : vector<2x128xf32>
    %241 = math.exp %240 : vector<2x128xf32>
    %cst_52 = arith.constant 1.000000e+00 : f32
    %242 = vector.broadcast %cst_52 : f32 to vector<2x128xf32>
    %243 = arith.addf %242, %241 : vector<2x128xf32>
    %244 = arith.divf %242, %243 : vector<2x128xf32>
    %245 = vector.extract_strided_slice %232 {offsets = [0, 256], sizes = [2, 128], strides = [1, 1]} : vector<2x512xf32> to vector<2x128xf32>
    %246 = math.tanh %245 : vector<2x128xf32>
    %247 = vector.extract_strided_slice %232 {offsets = [0, 384], sizes = [2, 128], strides = [1, 1]} : vector<2x512xf32> to vector<2x128xf32>
    %248 = arith.negf %247 : vector<2x128xf32>
    %249 = math.exp %248 : vector<2x128xf32>
    %cst_53 = arith.constant 1.000000e+00 : f32
    %250 = vector.broadcast %cst_53 : f32 to vector<2x128xf32>
    %251 = arith.addf %250, %249 : vector<2x128xf32>
    %252 = arith.divf %250, %251 : vector<2x128xf32>
    %253 = arith.mulf %244, %193 : vector<2x128xf32>
    %254 = arith.mulf %238, %246 : vector<2x128xf32>
    %255 = arith.addf %253, %254 : vector<2x128xf32>
    %256 = math.tanh %255 : vector<2x128xf32>
    %257 = arith.mulf %252, %256 : vector<2x128xf32>
    %c4_i32 = arith.constant 4 : i32
    %258 = arith.index_cast %c4_i32 : i32 to index
    %c0_54 = arith.constant 0 : index
    %c0_55 = arith.constant 0 : index
    %259 = vector.load %arg2[%258, %c0_54, %c0_55] : memref<8x2x512xf32, #tpu.memory_space<vmem>>, vector<1x2x512xf32>
    %260 = vector.shape_cast %259 : vector<1x2x512xf32> to vector<2x512xf32>
    %261 = arith.truncf %226 : vector<2x128xf32> to vector<2x128xbf16>
    %cst_56 = arith.constant dense<0.000000e+00> : vector<2x512xf32>
    %262 = tpu.matmul %261, %3, %cst_56 {dimension_numbers = #tpu.dot_dimension_numbers<[1], [0], [0], [1], [0, 0, 1, 1], [], []>} : vector<2x128xbf16>, vector<128x512xbf16>, vector<2x512xf32> -> vector<2x512xf32>
    %263 = arith.addf %260, %262 : vector<2x512xf32>
    %264 = vector.extract_strided_slice %263 {offsets = [0, 0], sizes = [2, 128], strides = [1, 1]} : vector<2x512xf32> to vector<2x128xf32>
    %265 = arith.negf %264 : vector<2x128xf32>
    %266 = math.exp %265 : vector<2x128xf32>
    %cst_57 = arith.constant 1.000000e+00 : f32
    %267 = vector.broadcast %cst_57 : f32 to vector<2x128xf32>
    %268 = arith.addf %267, %266 : vector<2x128xf32>
    %269 = arith.divf %267, %268 : vector<2x128xf32>
    %270 = vector.extract_strided_slice %263 {offsets = [0, 128], sizes = [2, 128], strides = [1, 1]} : vector<2x512xf32> to vector<2x128xf32>
    %271 = arith.negf %270 : vector<2x128xf32>
    %272 = math.exp %271 : vector<2x128xf32>
    %cst_58 = arith.constant 1.000000e+00 : f32
    %273 = vector.broadcast %cst_58 : f32 to vector<2x128xf32>
    %274 = arith.addf %273, %272 : vector<2x128xf32>
    %275 = arith.divf %273, %274 : vector<2x128xf32>
    %276 = vector.extract_strided_slice %263 {offsets = [0, 256], sizes = [2, 128], strides = [1, 1]} : vector<2x512xf32> to vector<2x128xf32>
    %277 = math.tanh %276 : vector<2x128xf32>
    %278 = vector.extract_strided_slice %263 {offsets = [0, 384], sizes = [2, 128], strides = [1, 1]} : vector<2x512xf32> to vector<2x128xf32>
    %279 = arith.negf %278 : vector<2x128xf32>
    %280 = math.exp %279 : vector<2x128xf32>
    %cst_59 = arith.constant 1.000000e+00 : f32
    %281 = vector.broadcast %cst_59 : f32 to vector<2x128xf32>
    %282 = arith.addf %281, %280 : vector<2x128xf32>
    %283 = arith.divf %281, %282 : vector<2x128xf32>
    %284 = arith.mulf %275, %224 : vector<2x128xf32>
    %285 = arith.mulf %269, %277 : vector<2x128xf32>
    %286 = arith.addf %284, %285 : vector<2x128xf32>
    %287 = math.tanh %286 : vector<2x128xf32>
    %288 = arith.mulf %283, %287 : vector<2x128xf32>
    %289 = arith.truncf %288 : vector<2x128xf32> to vector<2x128xbf16>
    %290 = arith.truncf %257 : vector<2x128xf32> to vector<2x128xbf16>
    %291 = tpu.concatenate %289, %290 in 1 : vector<2x128xbf16>, vector<2x128xbf16> -> vector<2x256xbf16>
    %cst_60 = arith.constant dense<0.000000e+00> : vector<2x512xf32>
    %292 = tpu.matmul %291, %4, %cst_60 {dimension_numbers = #tpu.dot_dimension_numbers<[1], [0], [0], [1], [0, 0, 1, 1], [], []>} : vector<2x256xbf16>, vector<256x512xbf16>, vector<2x512xf32> -> vector<2x512xf32>
    %293 = vector.broadcast %5 : vector<1x512xf32> to vector<2x512xf32>
    %294 = arith.addf %292, %293 : vector<2x512xf32>
    %295 = vector.extract_strided_slice %294 {offsets = [0, 0], sizes = [2, 128], strides = [1, 1]} : vector<2x512xf32> to vector<2x128xf32>
    %296 = arith.negf %295 : vector<2x128xf32>
    %297 = math.exp %296 : vector<2x128xf32>
    %cst_61 = arith.constant 1.000000e+00 : f32
    %298 = vector.broadcast %cst_61 : f32 to vector<2x128xf32>
    %299 = arith.addf %298, %297 : vector<2x128xf32>
    %300 = arith.divf %298, %299 : vector<2x128xf32>
    %301 = vector.extract_strided_slice %294 {offsets = [0, 128], sizes = [2, 128], strides = [1, 1]} : vector<2x512xf32> to vector<2x128xf32>
    %302 = arith.negf %301 : vector<2x128xf32>
    %303 = math.exp %302 : vector<2x128xf32>
    %cst_62 = arith.constant 1.000000e+00 : f32
    %304 = vector.broadcast %cst_62 : f32 to vector<2x128xf32>
    %305 = arith.addf %304, %303 : vector<2x128xf32>
    %306 = arith.divf %304, %305 : vector<2x128xf32>
    %307 = vector.extract_strided_slice %294 {offsets = [0, 256], sizes = [2, 128], strides = [1, 1]} : vector<2x512xf32> to vector<2x128xf32>
    %308 = math.tanh %307 : vector<2x128xf32>
    %309 = vector.extract_strided_slice %294 {offsets = [0, 384], sizes = [2, 128], strides = [1, 1]} : vector<2x512xf32> to vector<2x128xf32>
    %310 = arith.negf %309 : vector<2x128xf32>
    %311 = math.exp %310 : vector<2x128xf32>
    %cst_63 = arith.constant 1.000000e+00 : f32
    %312 = vector.broadcast %cst_63 : f32 to vector<2x128xf32>
    %313 = arith.addf %312, %311 : vector<2x128xf32>
    %314 = arith.divf %312, %313 : vector<2x128xf32>
    %315 = arith.mulf %306, %255 : vector<2x128xf32>
    %316 = arith.mulf %300, %308 : vector<2x128xf32>
    %317 = arith.addf %315, %316 : vector<2x128xf32>
    %318 = math.tanh %317 : vector<2x128xf32>
    %319 = arith.mulf %314, %318 : vector<2x128xf32>
    %c5_i32 = arith.constant 5 : i32
    %320 = arith.index_cast %c5_i32 : i32 to index
    %c0_64 = arith.constant 0 : index
    %c0_65 = arith.constant 0 : index
    %321 = vector.load %arg2[%320, %c0_64, %c0_65] : memref<8x2x512xf32, #tpu.memory_space<vmem>>, vector<1x2x512xf32>
    %322 = vector.shape_cast %321 : vector<1x2x512xf32> to vector<2x512xf32>
    %323 = arith.truncf %288 : vector<2x128xf32> to vector<2x128xbf16>
    %cst_66 = arith.constant dense<0.000000e+00> : vector<2x512xf32>
    %324 = tpu.matmul %323, %3, %cst_66 {dimension_numbers = #tpu.dot_dimension_numbers<[1], [0], [0], [1], [0, 0, 1, 1], [], []>} : vector<2x128xbf16>, vector<128x512xbf16>, vector<2x512xf32> -> vector<2x512xf32>
    %325 = arith.addf %322, %324 : vector<2x512xf32>
    %326 = vector.extract_strided_slice %325 {offsets = [0, 0], sizes = [2, 128], strides = [1, 1]} : vector<2x512xf32> to vector<2x128xf32>
    %327 = arith.negf %326 : vector<2x128xf32>
    %328 = math.exp %327 : vector<2x128xf32>
    %cst_67 = arith.constant 1.000000e+00 : f32
    %329 = vector.broadcast %cst_67 : f32 to vector<2x128xf32>
    %330 = arith.addf %329, %328 : vector<2x128xf32>
    %331 = arith.divf %329, %330 : vector<2x128xf32>
    %332 = vector.extract_strided_slice %325 {offsets = [0, 128], sizes = [2, 128], strides = [1, 1]} : vector<2x512xf32> to vector<2x128xf32>
    %333 = arith.negf %332 : vector<2x128xf32>
    %334 = math.exp %333 : vector<2x128xf32>
    %cst_68 = arith.constant 1.000000e+00 : f32
    %335 = vector.broadcast %cst_68 : f32 to vector<2x128xf32>
    %336 = arith.addf %335, %334 : vector<2x128xf32>
    %337 = arith.divf %335, %336 : vector<2x128xf32>
    %338 = vector.extract_strided_slice %325 {offsets = [0, 256], sizes = [2, 128], strides = [1, 1]} : vector<2x512xf32> to vector<2x128xf32>
    %339 = math.tanh %338 : vector<2x128xf32>
    %340 = vector.extract_strided_slice %325 {offsets = [0, 384], sizes = [2, 128], strides = [1, 1]} : vector<2x512xf32> to vector<2x128xf32>
    %341 = arith.negf %340 : vector<2x128xf32>
    %342 = math.exp %341 : vector<2x128xf32>
    %cst_69 = arith.constant 1.000000e+00 : f32
    %343 = vector.broadcast %cst_69 : f32 to vector<2x128xf32>
    %344 = arith.addf %343, %342 : vector<2x128xf32>
    %345 = arith.divf %343, %344 : vector<2x128xf32>
    %346 = arith.mulf %337, %286 : vector<2x128xf32>
    %347 = arith.mulf %331, %339 : vector<2x128xf32>
    %348 = arith.addf %346, %347 : vector<2x128xf32>
    %349 = math.tanh %348 : vector<2x128xf32>
    %350 = arith.mulf %345, %349 : vector<2x128xf32>
    %351 = arith.truncf %350 : vector<2x128xf32> to vector<2x128xbf16>
    %352 = arith.truncf %319 : vector<2x128xf32> to vector<2x128xbf16>
    %353 = tpu.concatenate %351, %352 in 1 : vector<2x128xbf16>, vector<2x128xbf16> -> vector<2x256xbf16>
    %cst_70 = arith.constant dense<0.000000e+00> : vector<2x512xf32>
    %354 = tpu.matmul %353, %4, %cst_70 {dimension_numbers = #tpu.dot_dimension_numbers<[1], [0], [0], [1], [0, 0, 1, 1], [], []>} : vector<2x256xbf16>, vector<256x512xbf16>, vector<2x512xf32> -> vector<2x512xf32>
    %355 = vector.broadcast %5 : vector<1x512xf32> to vector<2x512xf32>
    %356 = arith.addf %354, %355 : vector<2x512xf32>
    %357 = vector.extract_strided_slice %356 {offsets = [0, 0], sizes = [2, 128], strides = [1, 1]} : vector<2x512xf32> to vector<2x128xf32>
    %358 = arith.negf %357 : vector<2x128xf32>
    %359 = math.exp %358 : vector<2x128xf32>
    %cst_71 = arith.constant 1.000000e+00 : f32
    %360 = vector.broadcast %cst_71 : f32 to vector<2x128xf32>
    %361 = arith.addf %360, %359 : vector<2x128xf32>
    %362 = arith.divf %360, %361 : vector<2x128xf32>
    %363 = vector.extract_strided_slice %356 {offsets = [0, 128], sizes = [2, 128], strides = [1, 1]} : vector<2x512xf32> to vector<2x128xf32>
    %364 = arith.negf %363 : vector<2x128xf32>
    %365 = math.exp %364 : vector<2x128xf32>
    %cst_72 = arith.constant 1.000000e+00 : f32
    %366 = vector.broadcast %cst_72 : f32 to vector<2x128xf32>
    %367 = arith.addf %366, %365 : vector<2x128xf32>
    %368 = arith.divf %366, %367 : vector<2x128xf32>
    %369 = vector.extract_strided_slice %356 {offsets = [0, 256], sizes = [2, 128], strides = [1, 1]} : vector<2x512xf32> to vector<2x128xf32>
    %370 = math.tanh %369 : vector<2x128xf32>
    %371 = vector.extract_strided_slice %356 {offsets = [0, 384], sizes = [2, 128], strides = [1, 1]} : vector<2x512xf32> to vector<2x128xf32>
    %372 = arith.negf %371 : vector<2x128xf32>
    %373 = math.exp %372 : vector<2x128xf32>
    %cst_73 = arith.constant 1.000000e+00 : f32
    %374 = vector.broadcast %cst_73 : f32 to vector<2x128xf32>
    %375 = arith.addf %374, %373 : vector<2x128xf32>
    %376 = arith.divf %374, %375 : vector<2x128xf32>
    %377 = arith.mulf %368, %317 : vector<2x128xf32>
    %378 = arith.mulf %362, %370 : vector<2x128xf32>
    %379 = arith.addf %377, %378 : vector<2x128xf32>
    %380 = math.tanh %379 : vector<2x128xf32>
    %381 = arith.mulf %376, %380 : vector<2x128xf32>
    %c6_i32 = arith.constant 6 : i32
    %382 = arith.index_cast %c6_i32 : i32 to index
    %c0_74 = arith.constant 0 : index
    %c0_75 = arith.constant 0 : index
    %383 = vector.load %arg2[%382, %c0_74, %c0_75] : memref<8x2x512xf32, #tpu.memory_space<vmem>>, vector<1x2x512xf32>
    %384 = vector.shape_cast %383 : vector<1x2x512xf32> to vector<2x512xf32>
    %385 = arith.truncf %350 : vector<2x128xf32> to vector<2x128xbf16>
    %cst_76 = arith.constant dense<0.000000e+00> : vector<2x512xf32>
    %386 = tpu.matmul %385, %3, %cst_76 {dimension_numbers = #tpu.dot_dimension_numbers<[1], [0], [0], [1], [0, 0, 1, 1], [], []>} : vector<2x128xbf16>, vector<128x512xbf16>, vector<2x512xf32> -> vector<2x512xf32>
    %387 = arith.addf %384, %386 : vector<2x512xf32>
    %388 = vector.extract_strided_slice %387 {offsets = [0, 0], sizes = [2, 128], strides = [1, 1]} : vector<2x512xf32> to vector<2x128xf32>
    %389 = arith.negf %388 : vector<2x128xf32>
    %390 = math.exp %389 : vector<2x128xf32>
    %cst_77 = arith.constant 1.000000e+00 : f32
    %391 = vector.broadcast %cst_77 : f32 to vector<2x128xf32>
    %392 = arith.addf %391, %390 : vector<2x128xf32>
    %393 = arith.divf %391, %392 : vector<2x128xf32>
    %394 = vector.extract_strided_slice %387 {offsets = [0, 128], sizes = [2, 128], strides = [1, 1]} : vector<2x512xf32> to vector<2x128xf32>
    %395 = arith.negf %394 : vector<2x128xf32>
    %396 = math.exp %395 : vector<2x128xf32>
    %cst_78 = arith.constant 1.000000e+00 : f32
    %397 = vector.broadcast %cst_78 : f32 to vector<2x128xf32>
    %398 = arith.addf %397, %396 : vector<2x128xf32>
    %399 = arith.divf %397, %398 : vector<2x128xf32>
    %400 = vector.extract_strided_slice %387 {offsets = [0, 256], sizes = [2, 128], strides = [1, 1]} : vector<2x512xf32> to vector<2x128xf32>
    %401 = math.tanh %400 : vector<2x128xf32>
    %402 = vector.extract_strided_slice %387 {offsets = [0, 384], sizes = [2, 128], strides = [1, 1]} : vector<2x512xf32> to vector<2x128xf32>
    %403 = arith.negf %402 : vector<2x128xf32>
    %404 = math.exp %403 : vector<2x128xf32>
    %cst_79 = arith.constant 1.000000e+00 : f32
    %405 = vector.broadcast %cst_79 : f32 to vector<2x128xf32>
    %406 = arith.addf %405, %404 : vector<2x128xf32>
    %407 = arith.divf %405, %406 : vector<2x128xf32>
    %408 = arith.mulf %399, %348 : vector<2x128xf32>
    %409 = arith.mulf %393, %401 : vector<2x128xf32>
    %410 = arith.addf %408, %409 : vector<2x128xf32>
    %411 = math.tanh %410 : vector<2x128xf32>
    %412 = arith.mulf %407, %411 : vector<2x128xf32>
    %413 = arith.truncf %412 : vector<2x128xf32> to vector<2x128xbf16>
    %414 = arith.truncf %381 : vector<2x128xf32> to vector<2x128xbf16>
    %415 = tpu.concatenate %413, %414 in 1 : vector<2x128xbf16>, vector<2x128xbf16> -> vector<2x256xbf16>
    %cst_80 = arith.constant dense<0.000000e+00> : vector<2x512xf32>
    %416 = tpu.matmul %415, %4, %cst_80 {dimension_numbers = #tpu.dot_dimension_numbers<[1], [0], [0], [1], [0, 0, 1, 1], [], []>} : vector<2x256xbf16>, vector<256x512xbf16>, vector<2x512xf32> -> vector<2x512xf32>
    %417 = vector.broadcast %5 : vector<1x512xf32> to vector<2x512xf32>
    %418 = arith.addf %416, %417 : vector<2x512xf32>
    %419 = vector.extract_strided_slice %418 {offsets = [0, 0], sizes = [2, 128], strides = [1, 1]} : vector<2x512xf32> to vector<2x128xf32>
    %420 = arith.negf %419 : vector<2x128xf32>
    %421 = math.exp %420 : vector<2x128xf32>
    %cst_81 = arith.constant 1.000000e+00 : f32
    %422 = vector.broadcast %cst_81 : f32 to vector<2x128xf32>
    %423 = arith.addf %422, %421 : vector<2x128xf32>
    %424 = arith.divf %422, %423 : vector<2x128xf32>
    %425 = vector.extract_strided_slice %418 {offsets = [0, 128], sizes = [2, 128], strides = [1, 1]} : vector<2x512xf32> to vector<2x128xf32>
    %426 = arith.negf %425 : vector<2x128xf32>
    %427 = math.exp %426 : vector<2x128xf32>
    %cst_82 = arith.constant 1.000000e+00 : f32
    %428 = vector.broadcast %cst_82 : f32 to vector<2x128xf32>
    %429 = arith.addf %428, %427 : vector<2x128xf32>
    %430 = arith.divf %428, %429 : vector<2x128xf32>
    %431 = vector.extract_strided_slice %418 {offsets = [0, 256], sizes = [2, 128], strides = [1, 1]} : vector<2x512xf32> to vector<2x128xf32>
    %432 = math.tanh %431 : vector<2x128xf32>
    %433 = vector.extract_strided_slice %418 {offsets = [0, 384], sizes = [2, 128], strides = [1, 1]} : vector<2x512xf32> to vector<2x128xf32>
    %434 = arith.negf %433 : vector<2x128xf32>
    %435 = math.exp %434 : vector<2x128xf32>
    %cst_83 = arith.constant 1.000000e+00 : f32
    %436 = vector.broadcast %cst_83 : f32 to vector<2x128xf32>
    %437 = arith.addf %436, %435 : vector<2x128xf32>
    %438 = arith.divf %436, %437 : vector<2x128xf32>
    %439 = arith.mulf %430, %379 : vector<2x128xf32>
    %440 = arith.mulf %424, %432 : vector<2x128xf32>
    %441 = arith.addf %439, %440 : vector<2x128xf32>
    %442 = math.tanh %441 : vector<2x128xf32>
    %443 = arith.mulf %438, %442 : vector<2x128xf32>
    %c7_i32 = arith.constant 7 : i32
    %444 = arith.index_cast %c7_i32 : i32 to index
    %c0_84 = arith.constant 0 : index
    %c0_85 = arith.constant 0 : index
    %445 = vector.load %arg2[%444, %c0_84, %c0_85] : memref<8x2x512xf32, #tpu.memory_space<vmem>>, vector<1x2x512xf32>
    %446 = vector.shape_cast %445 : vector<1x2x512xf32> to vector<2x512xf32>
    %447 = arith.truncf %412 : vector<2x128xf32> to vector<2x128xbf16>
    %cst_86 = arith.constant dense<0.000000e+00> : vector<2x512xf32>
    %448 = tpu.matmul %447, %3, %cst_86 {dimension_numbers = #tpu.dot_dimension_numbers<[1], [0], [0], [1], [0, 0, 1, 1], [], []>} : vector<2x128xbf16>, vector<128x512xbf16>, vector<2x512xf32> -> vector<2x512xf32>
    %449 = arith.addf %446, %448 : vector<2x512xf32>
    %450 = vector.extract_strided_slice %449 {offsets = [0, 0], sizes = [2, 128], strides = [1, 1]} : vector<2x512xf32> to vector<2x128xf32>
    %451 = arith.negf %450 : vector<2x128xf32>
    %452 = math.exp %451 : vector<2x128xf32>
    %cst_87 = arith.constant 1.000000e+00 : f32
    %453 = vector.broadcast %cst_87 : f32 to vector<2x128xf32>
    %454 = arith.addf %453, %452 : vector<2x128xf32>
    %455 = arith.divf %453, %454 : vector<2x128xf32>
    %456 = vector.extract_strided_slice %449 {offsets = [0, 128], sizes = [2, 128], strides = [1, 1]} : vector<2x512xf32> to vector<2x128xf32>
    %457 = arith.negf %456 : vector<2x128xf32>
    %458 = math.exp %457 : vector<2x128xf32>
    %cst_88 = arith.constant 1.000000e+00 : f32
    %459 = vector.broadcast %cst_88 : f32 to vector<2x128xf32>
    %460 = arith.addf %459, %458 : vector<2x128xf32>
    %461 = arith.divf %459, %460 : vector<2x128xf32>
    %462 = vector.extract_strided_slice %449 {offsets = [0, 256], sizes = [2, 128], strides = [1, 1]} : vector<2x512xf32> to vector<2x128xf32>
    %463 = math.tanh %462 : vector<2x128xf32>
    %464 = vector.extract_strided_slice %449 {offsets = [0, 384], sizes = [2, 128], strides = [1, 1]} : vector<2x512xf32> to vector<2x128xf32>
    %465 = arith.negf %464 : vector<2x128xf32>
    %466 = math.exp %465 : vector<2x128xf32>
    %cst_89 = arith.constant 1.000000e+00 : f32
    %467 = vector.broadcast %cst_89 : f32 to vector<2x128xf32>
    %468 = arith.addf %467, %466 : vector<2x128xf32>
    %469 = arith.divf %467, %468 : vector<2x128xf32>
    %470 = arith.mulf %461, %410 : vector<2x128xf32>
    %471 = arith.mulf %455, %463 : vector<2x128xf32>
    %472 = arith.addf %470, %471 : vector<2x128xf32>
    %473 = math.tanh %472 : vector<2x128xf32>
    %474 = arith.mulf %469, %473 : vector<2x128xf32>
    %475 = arith.truncf %474 : vector<2x128xf32> to vector<2x128xbf16>
    %476 = arith.truncf %443 : vector<2x128xf32> to vector<2x128xbf16>
    %477 = tpu.concatenate %475, %476 in 1 : vector<2x128xbf16>, vector<2x128xbf16> -> vector<2x256xbf16>
    %cst_90 = arith.constant dense<0.000000e+00> : vector<2x512xf32>
    %478 = tpu.matmul %477, %4, %cst_90 {dimension_numbers = #tpu.dot_dimension_numbers<[1], [0], [0], [1], [0, 0, 1, 1], [], []>} : vector<2x256xbf16>, vector<256x512xbf16>, vector<2x512xf32> -> vector<2x512xf32>
    %479 = vector.broadcast %5 : vector<1x512xf32> to vector<2x512xf32>
    %480 = arith.addf %478, %479 : vector<2x512xf32>
    %481 = vector.extract_strided_slice %480 {offsets = [0, 0], sizes = [2, 128], strides = [1, 1]} : vector<2x512xf32> to vector<2x128xf32>
    %482 = arith.negf %481 : vector<2x128xf32>
    %483 = math.exp %482 : vector<2x128xf32>
    %cst_91 = arith.constant 1.000000e+00 : f32
    %484 = vector.broadcast %cst_91 : f32 to vector<2x128xf32>
    %485 = arith.addf %484, %483 : vector<2x128xf32>
    %486 = arith.divf %484, %485 : vector<2x128xf32>
    %487 = vector.extract_strided_slice %480 {offsets = [0, 128], sizes = [2, 128], strides = [1, 1]} : vector<2x512xf32> to vector<2x128xf32>
    %488 = arith.negf %487 : vector<2x128xf32>
    %489 = math.exp %488 : vector<2x128xf32>
    %cst_92 = arith.constant 1.000000e+00 : f32
    %490 = vector.broadcast %cst_92 : f32 to vector<2x128xf32>
    %491 = arith.addf %490, %489 : vector<2x128xf32>
    %492 = arith.divf %490, %491 : vector<2x128xf32>
    %493 = vector.extract_strided_slice %480 {offsets = [0, 256], sizes = [2, 128], strides = [1, 1]} : vector<2x512xf32> to vector<2x128xf32>
    %494 = math.tanh %493 : vector<2x128xf32>
    %495 = vector.extract_strided_slice %480 {offsets = [0, 384], sizes = [2, 128], strides = [1, 1]} : vector<2x512xf32> to vector<2x128xf32>
    %496 = arith.negf %495 : vector<2x128xf32>
    %497 = math.exp %496 : vector<2x128xf32>
    %cst_93 = arith.constant 1.000000e+00 : f32
    %498 = vector.broadcast %cst_93 : f32 to vector<2x128xf32>
    %499 = arith.addf %498, %497 : vector<2x128xf32>
    %500 = arith.divf %498, %499 : vector<2x128xf32>
    %501 = arith.mulf %492, %441 : vector<2x128xf32>
    %502 = arith.mulf %486, %494 : vector<2x128xf32>
    %503 = arith.addf %501, %502 : vector<2x128xf32>
    %504 = math.tanh %503 : vector<2x128xf32>
    %505 = arith.mulf %500, %504 : vector<2x128xf32>
    %c8_i32 = arith.constant 8 : i32
    %c0_94 = arith.constant 0 : index
    %c0_95 = arith.constant 0 : index
    %506 = vector.load %arg9[%c0_94, %c0_95] : memref<2x128xf32, #tpu.memory_space<vmem>>, vector<2x128xf32>
    tpu.vector_store %arg9[%c0_94, %c0_95], %474 {strides = array<i32>} : memref<2x128xf32, #tpu.memory_space<vmem>>, vector<2x128xf32>,
    %c0_96 = arith.constant 0 : index
    %c0_97 = arith.constant 0 : index
    %507 = vector.load %arg10[%c0_96, %c0_97] : memref<2x128xf32, #tpu.memory_space<vmem>>, vector<2x128xf32>
    tpu.vector_store %arg10[%c0_96, %c0_97], %472 {strides = array<i32>} : memref<2x128xf32, #tpu.memory_space<vmem>>, vector<2x128xf32>,
    %c0_98 = arith.constant 0 : index
    %c0_99 = arith.constant 0 : index
    %508 = vector.load %arg11[%c0_98, %c0_99] : memref<2x128xf32, #tpu.memory_space<vmem>>, vector<2x128xf32>
    tpu.vector_store %arg11[%c0_98, %c0_99], %505 {strides = array<i32>} : memref<2x128xf32, #tpu.memory_space<vmem>>, vector<2x128xf32>,
    %c0_100 = arith.constant 0 : index
    %c0_101 = arith.constant 0 : index
    %509 = vector.load %arg12[%c0_100, %c0_101] : memref<2x128xf32, #tpu.memory_space<vmem>>, vector<2x128xf32>
    tpu.vector_store %arg12[%c0_100, %c0_101], %503 {strides = array<i32>} : memref<2x128xf32, #tpu.memory_space<vmem>>, vector<2x128xf32>,
    %c0_i32_102 = arith.constant 0 : i32
    %510 = arith.cmpi eq, %arg1, %c0_i32_102 : i32
    %511 = arith.extui %510 : i1 to i32
    %c0_i32_103 = arith.constant 0 : i32
    %512 = arith.cmpi ne, %511, %c0_i32_103 : i32
    scf.if %512 {
      %513 = arith.truncf %505 : vector<2x128xf32> to vector<2x128xbf16>
      %c0_104 = arith.constant 0 : index
      %c0_105 = arith.constant 0 : index
      %514 = vector.load %arg6[%c0_104, %c0_105] : memref<128x128xbf16, #tpu.memory_space<vmem>>, vector<128x128xbf16>
      %cst_106 = arith.constant dense<0.000000e+00> : vector<2x128xf32>
      %515 = tpu.matmul %513, %514, %cst_106 {dimension_numbers = #tpu.dot_dimension_numbers<[1], [0], [0], [1], [0, 0, 1, 1], [], []>} : vector<2x128xbf16>, vector<128x128xbf16>, vector<2x128xf32> -> vector<2x128xf32>
      %c0_107 = arith.constant 0 : index
      %c0_108 = arith.constant 0 : index
      %516 = vector.load %arg7[%c0_107, %c0_108] : memref<1x128xf32, #tpu.memory_space<vmem>>, vector<1x128xf32>
      %517 = vector.broadcast %516 : vector<1x128xf32> to vector<2x128xf32>
      %518 = arith.addf %515, %517 : vector<2x128xf32>
      %cst_109 = arith.constant dense<0xFF800000> : vector<2xf32>
      %519 = vector.multi_reduction <maximumf>, %518, %cst_109 [1] : vector<2x128xf32> to vector<2xf32>
      %520 = vector.shape_cast %519 : vector<2xf32> to vector<2x1xf32>
      %521 = vector.broadcast %520 : vector<2x1xf32> to vector<2x128xf32>
      %522 = arith.subf %518, %521 : vector<2x128xf32>
      %523 = math.exp %522 : vector<2x128xf32>
      %cst_110 = arith.constant dense<0.000000e+00> : vector<2xf32>
      %524 = vector.multi_reduction <add>, %523, %cst_110 [1] : vector<2x128xf32> to vector<2xf32>
      %525 = vector.shape_cast %524 : vector<2xf32> to vector<2x1xf32>
      %526 = tpu.reciprocal %525 {approx = true} : vector<2x1xf32> -> vector<2x1xf32>
      %527 = vector.broadcast %526 : vector<2x1xf32> to vector<2x128xf32>
      %528 = arith.mulf %523, %527 : vector<2x128xf32>
      %c0_111 = arith.constant 0 : index
      %c0_112 = arith.constant 0 : index
      %529 = vector.load %arg8[%c0_111, %c0_112] : memref<2x128xf32, #tpu.memory_space<vmem>>, vector<2x128xf32>
      tpu.vector_store %arg8[%c0_111, %c0_112], %528 {strides = array<i32>} : memref<2x128xf32, #tpu.memory_space<vmem>>, vector<2x128xf32>,
    } else {
    }
    return
  }
  func.func @transform_0(%arg0: i32, %arg1: i32) -> (i32, i32, i32) {
    %c0_i32 = arith.constant 0 : i32
    %c0_i32_0 = arith.constant 0 : i32
    return %arg1, %arg0, %c0_i32 : i32, i32, i32
  }
  func.func @transform_1(%arg0: i32, %arg1: i32) -> (i32, i32) {
    %c0_i32 = arith.constant 0 : i32
    %c0_i32_0 = arith.constant 0 : i32
    %c0_i32_1 = arith.constant 0 : i32
    return %c0_i32, %c0_i32_0 : i32, i32
  }
  func.func @transform_2(%arg0: i32, %arg1: i32) -> (i32, i32) {
    %c0_i32 = arith.constant 0 : i32
    %c0_i32_0 = arith.constant 0 : i32
    %c0_i32_1 = arith.constant 0 : i32
    return %c0_i32, %c0_i32_0 : i32, i32
  }
  func.func @transform_3(%arg0: i32, %arg1: i32) -> (i32, i32) {
    %c0_i32 = arith.constant 0 : i32
    %c0_i32_0 = arith.constant 0 : i32
    %c0_i32_1 = arith.constant 0 : i32
    return %c0_i32, %c0_i32_0 : i32, i32
  }
  func.func @transform_4(%arg0: i32, %arg1: i32) -> (i32, i32) {
    %c0_i32 = arith.constant 0 : i32
    %c0_i32_0 = arith.constant 0 : i32
    %c0_i32_1 = arith.constant 0 : i32
    return %c0_i32, %c0_i32_0 : i32, i32
  }
  func.func @transform_5(%arg0: i32, %arg1: i32) -> (i32, i32) {
    %c0_i32 = arith.constant 0 : i32
    %c0_i32_0 = arith.constant 0 : i32
    %c0_i32_1 = arith.constant 0 : i32
    return %c0_i32, %c0_i32_0 : i32, i32
  }
  func.func @transform_6(%arg0: i32, %arg1: i32) -> (i32, i32) {
    %c0_i32 = arith.constant 0 : i32
    %c0_i32_0 = arith.constant 0 : i32
    return %arg0, %c0_i32 : i32, i32
  }
}

</mosaic_0001>

<bundles_post_ra>
// kernel: lstm_classification_forward.1
= control target key start
LH: loop header
LB: loop body
LE: loop exit
PB: predicated region body
PF: predicated region fallthrough
CT: control target
= control target key end

     0   :  { %v6044_v2 = vmov 0   ;;  %v6042_v3 = vmov 0.0   ;;  %s6035_s0 = inlined_call_operand.vmem [shape: f32[8,2,512], index: 0, kind: input, shape index: {}]   ;;  %s6036_s1 = inlined_call_operand.vmem [shape: bf16[128,512], index: 1, kind: input, shape index: {}]   ;;  %s6037_s2 = inlined_call_operand.vmem [shape: bf16[256,512], index: 2, kind: input, shape index: {}]   ;;  %s6038_s3 = inlined_call_operand.vmem [shape: f32[1,512], index: 3, kind: input, shape index: {}]   ;;  %s6039_s4 = inlined_call_operand.vmem [shape: bf16[128,128], index: 4, kind: input, shape index: {}]   ;;  %s6040_s5 = inlined_call_operand.vmem [shape: f32[1,128], index: 5, kind: input, shape index: {}]   ;;  %s6041_s6 = inlined_call_operand.hbm [shape: f32[2,128], index: 6, kind: output, shape index: {}]  }
   0x1   :  { %v3614_v0 = vld [vmem:[%s6036_s1 + $0x4] ss:$16 sps:$4 sm:$0xff]   ;;  %v3619_v1 = vld [vmem:[%s6036_s1 + $0xc] ss:$16 sps:$4 sm:$0xff]   ;;  %328 = vmatprep.mubr.bf16.mxu0 %v6044_v2  ;;  %369 = vmatprep.mubr.bf16.mxu1 %v6044_v2  ;;  %29 = vst [vmem:[#allocation2] sm:$0x3] %v6042_v3 }
   0x2   :  { %6349 = vst [vmem:[#allocation9_spill] sm:$0xff] %v3614_v0  ;;  %6350 = vst [vmem:[#allocation10_spill] sm:$0xff] %v3619_v1  ;;  %296 = vmatprep.subr.bf16.mxu0 %v3614_v0  ;;  %v3631_v4 = vld [vmem:[%s6036_s1] ss:$16 sps:$4 sm:$0xff]   ;;  %v3636_v5 = vld [vmem:[%s6036_s1 + $0x8] ss:$16 sps:$4 sm:$0xff]   ;;  %337 = vmatprep.subr.bf16.mxu1 %v3619_v1 }
   0x3   :  { %30 = vst [vmem:[#allocation3] sm:$0x3] %v6042_v3  ;;  %31 = vst [vmem:[#allocation4] sm:$0x3] %v6042_v3  ;;  %v3642_v6 = vld [vmem:[%s6036_s1 + $0x24] ss:$16 sps:$4 sm:$0xff]   ;;  %297 = vmatpush1.bf16.msra.mxu0 %v3631_v4  ;;  %338 = vmatpush1.bf16.msra.mxu1 %v3636_v5 }
   0x4   :  { %32 = vst [vmem:[#allocation5] sm:$0x3] %v6042_v3  ;;  %v3649_v7 = vld [vmem:[%s6036_s1 + $0x2c] ss:$16 sps:$4 sm:$0xff]   ;;  %v3654_v8 = vld [vmem:[%s6036_s1 + $0x20] ss:$16 sps:$4 sm:$0xff]   ;;  %298 = vmatprep.subr.bf16.mxu0 %v3642_v6 }
   0x5   :  { %v3660_v9 = vld [vmem:[%s6036_s1 + $0x28] ss:$16 sps:$4 sm:$0xff]   ;;  %339 = vmatprep.subr.bf16.mxu1 %v3649_v7  ;;  %v3666_v10 = vld [vmem:[%s6036_s1 + $0x44] ss:$16 sps:$4 sm:$0xff]   ;;  %v3671_v11 = vld [vmem:[%s6036_s1 + $0x4c] ss:$16 sps:$4 sm:$0xff]  }
   0x6   :  { %v3676_v12 = vld [vmem:[%s6036_s1 + $0x40] ss:$16 sps:$4 sm:$0xff]   ;;  %v3681_v13 = vld [vmem:[%s6036_s1 + $0x48] ss:$16 sps:$4 sm:$0xff]   ;;  %v3688_v14 = vld [vmem:[%s6036_s1 + $0x64] ss:$16 sps:$4 sm:$0xff]  }
   0x7   :  { %299 = vmatpush1.bf16.msra.mxu0 %v3654_v8  ;;  %340 = vmatpush1.bf16.msra.mxu1 %v3660_v9  ;;  %v3695_v15 = vld [vmem:[%s6036_s1 + $0x6c] ss:$16 sps:$4 sm:$0xff]   ;;  %v3700_v16 = vld [vmem:[%s6036_s1 + $0x60] ss:$16 sps:$4 sm:$0xff]   ;;  %v3707_v17 = vld [vmem:[%s6036_s1 + $0x68] ss:$16 sps:$4 sm:$0xff]  }
   0x8   :  { %300 = vmatprep.subr.bf16.mxu0 %v3666_v10  ;;  %341 = vmatprep.subr.bf16.mxu1 %v3671_v11  ;;  %v3712_v18 = vld [vmem:[%s6036_s1 + $0x84] ss:$16 sps:$4 sm:$0xff]   ;;  %v3719_v19 = vld [vmem:[%s6036_s1 + $0x8c] ss:$16 sps:$4 sm:$0xff]   ;;  %v3724_v20 = vld [vmem:[%s6036_s1 + $0x80] ss:$16 sps:$4 sm:$0xff]  }
   0x9   :  { %v3729_v21 = vld [vmem:[%s6036_s1 + $0x88] ss:$16 sps:$4 sm:$0xff]   ;;  %v3736_v22 = vld [vmem:[%s6036_s1 + $0xa4] ss:$16 sps:$4 sm:$0xff]   ;;  %v3743_v23 = vld [vmem:[%s6036_s1 + $0xac] ss:$16 sps:$4 sm:$0xff]  }
   0xa   :  { %v3750_v24 = vld [vmem:[%s6036_s1 + $0xa0] ss:$16 sps:$4 sm:$0xff]   ;;  %v3755_v25 = vld [vmem:[%s6036_s1 + $0xa8] ss:$16 sps:$4 sm:$0xff]   ;;  %v3762_v26 = vld [vmem:[%s6036_s1 + $0xc4] ss:$16 sps:$4 sm:$0xff]  }
   0xb   :  { %301 = vmatpush1.bf16.msra.mxu0 %v3676_v12  ;;  %342 = vmatpush1.bf16.msra.mxu1 %v3681_v13  ;;  %v3767_v27 = vld [vmem:[%s6036_s1 + $0xcc] ss:$16 sps:$4 sm:$0xff]   ;;  %v3772_v28 = vld [vmem:[%s6036_s1 + $0xc0] ss:$16 sps:$4 sm:$0xff]   ;;  %v3777_v29 = vld [vmem:[%s6036_s1 + $0xc8] ss:$16 sps:$4 sm:$0xff]  }
   0xc   :  { %302 = vmatprep.subr.bf16.mxu0 %v3688_v14  ;;  %343 = vmatprep.subr.bf16.mxu1 %v3695_v15  ;;  %v3784_v30 = vld [vmem:[%s6036_s1 + $0xe4] ss:$16 sps:$4 sm:$0xff]   ;;  %v3791_v31 = vld [vmem:[%s6036_s1 + $0xec] ss:$16 sps:$4 sm:$0xff]   ;;  %v3796_v32 = vld [vmem:[%s6036_s1 + $0xe0] ss:$16 sps:$4 sm:$0xff]  }
   0xd   :  { %v3801_v33 = vld [vmem:[%s6036_s1 + $0xe8] ss:$16 sps:$4 sm:$0xff]   ;;  %v130_v34 = vld [vmem:[#allocation2] sm:$0x3]  ;;  %v3806_v35 = vld [vmem:[%s6037_s2 + $0x4] ss:$16 sps:$4 sm:$0xff]  }
   0xe   :  { %v3811_v36 = vld [vmem:[%s6037_s2 + $0xc] ss:$16 sps:$4 sm:$0xff]   ;;  %v3820_v37 = vld [vmem:[%s6037_s2] ss:$16 sps:$4 sm:$0xff]   ;;  %v3825_v38 = vld [vmem:[%s6037_s2 + $0x8] ss:$16 sps:$4 sm:$0xff]   ;;  %v135_v39 = vpack.c.bf16 %v130_v34, %v130_v34 }
   0xf   :  { %303 = vmatpush1.bf16.msra.mxu0 %v3700_v16  ;;  %344 = vmatpush1.bf16.msra.mxu1 %v3707_v17  ;;  %v3830_v40 = vld [vmem:[%s6037_s2 + $0x24] ss:$16 sps:$4 sm:$0xff]   ;;  %v3835_v41 = vld [vmem:[%s6037_s2 + $0x2c] ss:$16 sps:$4 sm:$0xff]   ;;  %v3844_v42 = vld [vmem:[%s6037_s2 + $0x20] ss:$16 sps:$4 sm:$0xff]  }
  0x10   :  { %304 = vmatprep.subr.bf16.mxu0 %v3712_v18  ;;  %345 = vmatprep.subr.bf16.mxu1 %v3719_v19  ;;  %v3849_v43 = vld [vmem:[%s6037_s2 + $0x28] ss:$16 sps:$4 sm:$0xff]  }
  0x13   :  { %305 = vmatpush1.bf16.msra.mxu0 %v3724_v20  ;;  %346 = vmatpush1.bf16.msra.mxu1 %v3729_v21 }
  0x14   :  { %306 = vmatprep.subr.bf16.mxu0 %v3736_v22  ;;  %347 = vmatprep.subr.bf16.mxu1 %v3743_v23 }
  0x17   :  { %307 = vmatpush1.bf16.msra.mxu0 %v3750_v24  ;;  %348 = vmatpush1.bf16.msra.mxu1 %v3755_v25 }
  0x18   :  { %308 = vmatprep.subr.bf16.mxu0 %v3762_v26  ;;  %349 = vmatprep.subr.bf16.mxu1 %v3767_v27 }
  0x1b   :  { %309 = vmatpush1.bf16.msra.mxu0 %v3772_v28  ;;  %350 = vmatpush1.bf16.msra.mxu1 %v3777_v29 }
  0x1c   :  { %310 = vmatprep.subr.bf16.mxu0 %v3784_v30  ;;  %351 = vmatprep.subr.bf16.mxu1 %v3791_v31 }
  0x1f   :  { %311 = vmatpush1.bf16.msra.mxu0 %v3796_v32  ;;  %352 = vmatpush1.bf16.msra.mxu1 %v3801_v33 }
  0x20   :  { %775 = vmatprep.subr.bf16.mxu0 %v3806_v35  ;;  %816 = vmatprep.subr.bf16.mxu1 %v3811_v36 }
  0x22   :  { %329 = vmatmul.mubr.bf16.vlgmr.msra.gmra.mrb[0].mxu0 %v135_v39  ;;  %370 = vmatmul.mubr.bf16.vlgmr.msra.gmra.mrb[0].mxu1 %v135_v39 }
  0x23   :  { %776 = vmatpush1.bf16.msra.mxu0 %v3820_v37  ;;  %817 = vmatpush1.bf16.msra.mxu1 %v3825_v38 }
  0x24   :  { %777 = vmatprep.subr.bf16.mxu0 %v3830_v40  ;;  %818 = vmatprep.subr.bf16.mxu1 %v3835_v41 }
  0x27   :  { %778 = vmatpush1.bf16.msra.mxu0 %v3844_v42  ;;  %819 = vmatpush1.bf16.msra.mxu1 %v3849_v43 }
  0x28   :  { %11 = vsyncpa [#allocation7], 0  ;;  %v3860_v44 = vld [vmem:[%s6037_s2 + $0x44] ss:$16 sps:$4 sm:$0xff]   ;;  %v3865_v45 = vld [vmem:[%s6037_s2 + $0x4c] ss:$16 sps:$4 sm:$0xff]  }
  0x29   :  { %779 = vmatprep.subr.bf16.mxu0 %v3860_v44  ;;  %820 = vmatprep.subr.bf16.mxu1 %v3865_v45  ;;  %v3872_v46 = vld [vmem:[%s6037_s2 + $0x40] ss:$16 sps:$4 sm:$0xff]   ;;  %v3877_v47 = vld [vmem:[%s6037_s2 + $0x48] ss:$16 sps:$4 sm:$0xff]   ;;  %v3884_v48 = vld [vmem:[%s6037_s2 + $0x64] ss:$16 sps:$4 sm:$0xff]  }
  0x2a   :  { %v3889_v49 = vld [vmem:[%s6037_s2 + $0x6c] ss:$16 sps:$4 sm:$0xff]   ;;  %v3894_v50 = vld [vmem:[%s6037_s2 + $0x60] ss:$16 sps:$4 sm:$0xff]   ;;  %v3899_v51 = vld [vmem:[%s6037_s2 + $0x68] ss:$16 sps:$4 sm:$0xff]  }
  0x2b   :  { %780 = vmatpush1.bf16.msra.mxu0 %v3872_v46  ;;  %821 = vmatpush1.bf16.msra.mxu1 %v3877_v47  ;;  %6351 = vst [vmem:[#allocation11_spill] sm:$0xff] %v3899_v51  ;;  %v3908_v52 = vld [vmem:[%s6037_s2 + $0x84] ss:$16 sps:$4 sm:$0xff]   ;;  %v3913_v53 = vld [vmem:[%s6037_s2 + $0x8c] ss:$16 sps:$4 sm:$0xff]   ;;  %vm3574_vm0 = vmmov 0  }
  0x2c   :  { %781 = vmatprep.subr.bf16.mxu0 %v3884_v48  ;;  %822 = vmatprep.subr.bf16.mxu1 %v3889_v49  ;;  %6352 = vst [vmem:[#allocation12_spill] sm:$0xff] %v3908_v52  ;;  %6353 = vst [vmem:[#allocation13_spill] sm:$0xff] %v3913_v53  ;;  %v3918_v54 = vld [vmem:[%s6037_s2 + $0x80] ss:$16 sps:$4 sm:$0xff]   ;;  %v3923_v55 = vld [vmem:[%s6037_s2 + $0x88] ss:$16 sps:$4 sm:$0xff]  }
  0x2d   :  { %6354 = vst [vmem:[#allocation14_spill] sm:$0xff] %v3918_v54  ;;  %6355 = vst [vmem:[#allocation15_spill] sm:$0xff] %v3923_v55  ;;  %v3932_v56 = vld [vmem:[%s6037_s2 + $0xa4] ss:$16 sps:$4 sm:$0xff]   ;;  %v3937_v57 = vld [vmem:[%s6037_s2 + $0xac] ss:$16 sps:$4 sm:$0xff]  }
  0x2e   :  { %6356 = vst [vmem:[#allocation16_spill] sm:$0xff] %v3932_v56  ;;  %6357 = vst [vmem:[#allocation17_spill] sm:$0xff] %v3937_v57  ;;  %v3942_v58 = vld [vmem:[%s6037_s2 + $0xa0] ss:$16 sps:$4 sm:$0xff]   ;;  %v3947_v59 = vld [vmem:[%s6037_s2 + $0xa8] ss:$16 sps:$4 sm:$0xff]  }
  0x2f   :  { %782 = vmatpush1.bf16.msra.mxu0 %v3894_v50  ;;  %823 = vmatpush1.bf16.msra.mxu1 %v3899_v51  ;;  %6358 = vst [vmem:[#allocation18_spill] sm:$0xff] %v3942_v58  ;;  %6359 = vst [vmem:[#allocation19_spill] sm:$0xff] %v3947_v59  ;;  %v3956_v60 = vld [vmem:[%s6037_s2 + $0xc4] ss:$16 sps:$4 sm:$0xff]   ;;  %v3961_v61 = vld [vmem:[%s6037_s2 + $0xcc] ss:$16 sps:$4 sm:$0xff]  }
  0x30   :  { %783 = vmatprep.subr.bf16.mxu0 %v3908_v52  ;;  %824 = vmatprep.subr.bf16.mxu1 %v3913_v53  ;;  %6360 = vst [vmem:[#allocation20_spill] sm:$0xff] %v3956_v60  ;;  %6361 = vst [vmem:[#allocation21_spill] sm:$0xff] %v3961_v61  ;;  %v3966_v62 = vld [vmem:[%s6037_s2 + $0xc0] ss:$16 sps:$4 sm:$0xff]   ;;  %v3971_v63 = vld [vmem:[%s6037_s2 + $0xc8] ss:$16 sps:$4 sm:$0xff]  }
  0x31   :  { %6362 = vst [vmem:[#allocation22_spill] sm:$0xff] %v3966_v62  ;;  %6363 = vst [vmem:[#allocation23_spill] sm:$0xff] %v3971_v63  ;;  %v3980_v34 = vld [vmem:[%s6037_s2 + $0xe4] ss:$16 sps:$4 sm:$0xff]   ;;  %v3985_v39 = vld [vmem:[%s6037_s2 + $0xec] ss:$16 sps:$4 sm:$0xff]  }
  0x32   :  { %6364 = vst [vmem:[#allocation24_spill] sm:$0xff] %v3980_v34  ;;  %6365 = vst [vmem:[#allocation25_spill] sm:$0xff] %v3985_v39  ;;  %v3990_v3 = vld [vmem:[%s6037_s2 + $0xe0] ss:$16 sps:$4 sm:$0xff]   ;;  %v3995_v2 = vld [vmem:[%s6037_s2 + $0xe8] ss:$16 sps:$4 sm:$0xff]  }
  0x33   :  { %784 = vmatpush1.bf16.msra.mxu0 %v3918_v54  ;;  %825 = vmatpush1.bf16.msra.mxu1 %v3923_v55  ;;  %6366 = vst [vmem:[#allocation26_spill] sm:$0xff] %v3990_v3  ;;  %6367 = vst [vmem:[#allocation27_spill] sm:$0xff] %v3995_v2  ;;  %vm2722_vm1 = vcmask 1041408   ;;  %s3575_s7 = smov [#allocation6]  }
  0x34   :  { %785 = vmatprep.subr.bf16.mxu0 %v3932_v56  ;;  %826 = vmatprep.subr.bf16.mxu1 %v3937_v57  ;;  %s2741_s8 = sshll.u32 %s3575_s7, 4  ;;  %s2742_s8 = int_to_ptr.vmem [resolvable:$true] %s2741_s8 }
  0x35   :  { %p3552_p1 = scmp.lt.s32.totalorder %s2742_s8, %s2742_s8 }
  0x37   :  { %786 = vmatpush1.bf16.msra.mxu0 %v3942_v58  ;;  %827 = vmatpush1.bf16.msra.mxu1 %v3947_v59 }
  0x38   :  { %787 = vmatprep.subr.bf16.mxu0 %v3956_v60  ;;  %828 = vmatprep.subr.bf16.mxu1 %v3961_v61  ;;  %v4062_v61 = vld [vmem:[%s6037_s2 + $0x140] ss:$16 sps:$4 sm:$0xff]  }
  0x39   :  { %6378 = vst [vmem:[#allocation38_spill] sm:$0xff] %v4062_v61 }
  0x3b   :  { %788 = vmatpush1.bf16.msra.mxu0 %v3966_v62  ;;  %829 = vmatpush1.bf16.msra.mxu1 %v3971_v63  ;;  %v4004_v63 = vld [vmem:[%s6037_s2 + $0x104] ss:$16 sps:$4 sm:$0xff]   ;;  %v4009_v62 = vld [vmem:[%s6037_s2 + $0x10c] ss:$16 sps:$4 sm:$0xff]  }
  0x3c   :  { %789 = vmatprep.subr.bf16.mxu0 %v3980_v34  ;;  %830 = vmatprep.subr.bf16.mxu1 %v3985_v39  ;;  %6368 = vst [vmem:[#allocation28_spill] sm:$0xff] %v4004_v63  ;;  %6369 = vst [vmem:[#allocation29_spill] sm:$0xff] %v4009_v62  ;;  %v4014_v34 = vld [vmem:[%s6037_s2 + $0x100] ss:$16 sps:$4 sm:$0xff]   ;;  %v4033_v39 = vld [vmem:[%s6037_s2 + $0x12c] ss:$16 sps:$4 sm:$0xff]  }
  0x3d   :  { %6370 = vst [vmem:[#allocation30_spill] sm:$0xff] %v4014_v34  ;;  %6373 = vst [vmem:[#allocation33_spill] sm:$0xff] %v4033_v39 }
  0x3f   :  { %790 = vmatpush1.bf16.msra.mxu0 %v3990_v3  ;;  %831 = vmatpush1.bf16.msra.mxu1 %v3995_v2  ;;  %v4019_v3 = vld [vmem:[%s6037_s2 + $0x108] ss:$16 sps:$4 sm:$0xff]   ;;  %v4028_v2 = vld [vmem:[%s6037_s2 + $0x124] ss:$16 sps:$4 sm:$0xff]  }
  0x40   :  { %6371 = vst [vmem:[#allocation31_spill] sm:$0xff] %v4019_v3  ;;  %791 = vmatprep.subr.bf16.mxu0 %v4004_v63  ;;  %832 = vmatprep.subr.bf16.mxu1 %v4009_v62  ;;  %6372 = vst [vmem:[#allocation32_spill] sm:$0xff] %v4028_v2  ;;  %v4038_v63 = vld [vmem:[%s6037_s2 + $0x120] ss:$16 sps:$4 sm:$0xff]   ;;  %v4055_v62 = vld [vmem:[%s6037_s2 + $0x14c] ss:$16 sps:$4 sm:$0xff]  }
  0x41   :  { %6374 = vst [vmem:[#allocation34_spill] sm:$0xff] %v4038_v63  ;;  %6377 = vst [vmem:[#allocation37_spill] sm:$0xff] %v4055_v62 }
  0x43   :  { %792 = vmatpush1.bf16.msra.mxu0 %v4014_v34  ;;  %833 = vmatpush1.bf16.msra.mxu1 %v4019_v3  ;;  %v4043_v34 = vld [vmem:[%s6037_s2 + $0x128] ss:$16 sps:$4 sm:$0xff]   ;;  %v4048_v3 = vld [vmem:[%s6037_s2 + $0x144] ss:$16 sps:$4 sm:$0xff]  }
  0x44   :  { %6375 = vst [vmem:[#allocation35_spill] sm:$0xff] %v4043_v34  ;;  %6376 = vst [vmem:[#allocation36_spill] sm:$0xff] %v4048_v3  ;;  %793 = vmatprep.subr.bf16.mxu0 %v4028_v2  ;;  %834 = vmatprep.subr.bf16.mxu1 %v4033_v39  ;;  %v4067_v2 = vld [vmem:[%s6037_s2 + $0x148] ss:$16 sps:$4 sm:$0xff]   ;;  %v132_v39 = vld [vmem:[#allocation4] sm:$0x3] }
  0x45   :  { %6379 = vst [vmem:[#allocation39_spill] sm:$0xff] %v4067_v2  ;;  %v433_v60 = vpack.c.bf16 %v132_v39, %v132_v39  ;;  %v4122_v39 = vld [vmem:[%s6037_s2 + $0x1a4] ss:$16 sps:$4 sm:$0xff]  }
  0x46   :  { %6388 = vst [vmem:[#allocation48_spill] sm:$0xff] %v4122_v39 }
  0x47   :  { %794 = vmatpush1.bf16.msra.mxu0 %v4038_v63  ;;  %835 = vmatpush1.bf16.msra.mxu1 %v4043_v34  ;;  %v4074_v63 = vld [vmem:[%s6037_s2 + $0x164] ss:$16 sps:$4 sm:$0xff]   ;;  %v4079_v34 = vld [vmem:[%s6037_s2 + $0x16c] ss:$16 sps:$4 sm:$0xff]  }
  0x48   :  { %795 = vmatprep.subr.bf16.mxu0 %v4048_v3  ;;  %836 = vmatprep.subr.bf16.mxu1 %v4055_v62  ;;  %6380 = vst [vmem:[#allocation40_spill] sm:$0xff] %v4074_v63  ;;  %6381 = vst [vmem:[#allocation41_spill] sm:$0xff] %v4079_v34  ;;  %v4086_v3 = vld [vmem:[%s6037_s2 + $0x160] ss:$16 sps:$4 sm:$0xff]   ;;  %v4091_v62 = vld [vmem:[%s6037_s2 + $0x168] ss:$16 sps:$4 sm:$0xff]  }
  0x49   :  { %6382 = vst [vmem:[#allocation42_spill] sm:$0xff] %v4086_v3  ;;  %6383 = vst [vmem:[#allocation43_spill] sm:$0xff] %v4091_v62  ;;  %807 = vmatprep.mubr.bf16.mxu0 %v433_v60  ;;  %848 = vmatprep.mubr.bf16.mxu1 %v433_v60  ;;  %v4146_v60 = vld [vmem:[%s6037_s2 + $0x1c4] ss:$16 sps:$4 sm:$0xff]  }
  0x4a   :  { %6392 = vst [vmem:[#allocation52_spill] sm:$0xff] %v4146_v60 }
  0x4b   :  { %796 = vmatpush1.bf16.msra.mxu0 %v4062_v61  ;;  %837 = vmatpush1.bf16.msra.mxu1 %v4067_v2  ;;  %v4098_v61 = vld [vmem:[%s6037_s2 + $0x184] ss:$16 sps:$4 sm:$0xff]   ;;  %v4103_v2 = vld [vmem:[%s6037_s2 + $0x18c] ss:$16 sps:$4 sm:$0xff]  }
  0x4c   :  { %797 = vmatprep.subr.bf16.mxu0 %v4074_v63  ;;  %838 = vmatprep.subr.bf16.mxu1 %v4079_v34  ;;  %6384 = vst [vmem:[#allocation44_spill] sm:$0xff] %v4098_v61  ;;  %6385 = vst [vmem:[#allocation45_spill] sm:$0xff] %v4103_v2  ;;  %v4110_v34 = vld [vmem:[%s6037_s2 + $0x180] ss:$16 sps:$4 sm:$0xff]   ;;  %v4115_v63 = vld [vmem:[%s6037_s2 + $0x188] ss:$16 sps:$4 sm:$0xff]  }
  0x4d   :  { %6386 = vst [vmem:[#allocation46_spill] sm:$0xff] %v4110_v34  ;;  %6387 = vst [vmem:[#allocation47_spill] sm:$0xff] %v4115_v63 }
  0x4f   :  { %798 = vmatpush1.bf16.msra.mxu0 %v4086_v3  ;;  %839 = vmatpush1.bf16.msra.mxu1 %v4091_v62  ;;  %v4127_v62 = vld [vmem:[%s6037_s2 + $0x1ac] ss:$16 sps:$4 sm:$0xff]  }
  0x50   :  { %799 = vmatprep.subr.bf16.mxu0 %v4098_v61  ;;  %840 = vmatprep.subr.bf16.mxu1 %v4103_v2  ;;  %6389 = vst [vmem:[#allocation49_spill] sm:$0xff] %v4127_v62  ;;  %v4134_v2 = vld [vmem:[%s6037_s2 + $0x1a0] ss:$16 sps:$4 sm:$0xff]   ;;  %v4139_v61 = vld [vmem:[%s6037_s2 + $0x1a8] ss:$16 sps:$4 sm:$0xff]  }
  0x51   :  { %6390 = vst [vmem:[#allocation50_spill] sm:$0xff] %v4134_v2  ;;  %6391 = vst [vmem:[#allocation51_spill] sm:$0xff] %v4139_v61 }
  0x53   :  { %800 = vmatpush1.bf16.msra.mxu0 %v4110_v34  ;;  %841 = vmatpush1.bf16.msra.mxu1 %v4115_v63  ;;  %v4151_v63 = vld [vmem:[%s6037_s2 + $0x1cc] ss:$16 sps:$4 sm:$0xff]   ;;  %v387_v34 = vlaneseq }
  0x54   :  { %801 = vmatprep.subr.bf16.mxu0 %v4122_v39  ;;  %842 = vmatprep.subr.bf16.mxu1 %v4127_v62  ;;  %6393 = vst [vmem:[#allocation53_spill] sm:$0xff] %v4151_v63  ;;  %v4158_v39 = vld [vmem:[%s6037_s2 + $0x1c0] ss:$16 sps:$4 sm:$0xff]   ;;  %v4163_v62 = vld [vmem:[%s6037_s2 + $0x1c8] ss:$16 sps:$4 sm:$0xff]  }
  0x55   :  { %6394 = vst [vmem:[#allocation54_spill] sm:$0xff] %v4158_v39  ;;  %6395 = vst [vmem:[#allocation55_spill] sm:$0xff] %v4163_v62  ;;  %v4195_v59 = vshrl.u32 %v387_v34, 7  ;;  %v134_v34 = vld [vmem:[%s6035_s0] sm:$0xff] }
  0x57   :  { %802 = vmatpush1.bf16.msra.mxu0 %v4134_v2  ;;  %843 = vmatpush1.bf16.msra.mxu1 %v4139_v61  ;;  %v4170_v2 = vld [vmem:[%s6037_s2 + $0x1e4] ss:$16 sps:$4 sm:$0xff]   ;;  %v4175_v61 = vld [vmem:[%s6037_s2 + $0x1ec] ss:$16 sps:$4 sm:$0xff]   ;;  %6400 = vst [vmem:[#allocation60_spill] sm:$0xff] %v4195_v59 }
  0x58   :  { %803 = vmatprep.subr.bf16.mxu0 %v4146_v60  ;;  %844 = vmatprep.subr.bf16.mxu1 %v4151_v63  ;;  %6396 = vst [vmem:[#allocation56_spill] sm:$0xff] %v4170_v2  ;;  %6397 = vst [vmem:[#allocation57_spill] sm:$0xff] %v4175_v61  ;;  %v4182_v60 = vld [vmem:[%s6037_s2 + $0x1e0] ss:$16 sps:$4 sm:$0xff]   ;;  %v4187_v63 = vld [vmem:[%s6037_s2 + $0x1e8] ss:$16 sps:$4 sm:$0xff]  }
  0x59   :  { %6398 = vst [vmem:[#allocation58_spill] sm:$0xff] %v4182_v60  ;;  %6399 = vst [vmem:[#allocation59_spill] sm:$0xff] %v4187_v63 }
  0x5b   :  { %804 = vmatpush1.bf16.msra.mxu0 %v4158_v39  ;;  %845 = vmatpush1.bf16.msra.mxu1 %v4163_v62  ;;  %v3573_v62 = vmov 1983009808  }
  0x5c   :  { %805 = vmatprep.subr.bf16.mxu0 %v4170_v2  ;;  %846 = vmatprep.subr.bf16.mxu1 %v4175_v61  ;;  %v385_v39 = vunpack.c.l.s4 %v3573_v62 }
  0x5e   :  { %v386_v3 = vunpack.c.0.s8 %v385_v39 }
  0x5f   :  { %806 = vmatpush1.bf16.msra.mxu0 %v4182_v60  ;;  %847 = vmatpush1.bf16.msra.mxu1 %v4187_v63 }
  0x60   :  { %883 = vmatprep.subr.bf16.mxu0 %v3614_v0  ;;  %924 = vmatprep.subr.bf16.mxu1 %v3619_v1  ;;  %v4198_v2 = vsub.s32 %v386_v3, %v4195_v59 }
  0xf5   :  { %v330_v58 = vpop.f32.mrb[0].mxu0  ;;  %v371_v57 = vpop.f32.mrb[0].mxu1 }
  0xf6   :  { %v332_v61 = vpop.f32.mrb[1].mxu0  ;;  %v373_v56 = vpop.f32.mrb[1].mxu1 }
  0xf7   :  { %v382_v60 = vcombine.low %v330_v58, %v332_v61  ;;  %v383_v55 = vcombine.low %v371_v57, %v373_v56  ;;  %v334_v63 = vpop.f32.mrb[2].mxu0  ;;  %v375_v54 = vpop.f32.mrb[2].mxu1 }
  0xf8   :  { %v335_v0 = vpop.f32.mrb[3].mxu0  ;;  %v376_v53 = vpop.f32.mrb[3].mxu1 }
  0xf9   :  { %v390_v1 = vrot.slane %v382_v60, %v4198_v2  ;;  %v397_v62 = vrot.slane %v383_v55, %v4198_v2 }
  0xfb   :  { %v398_v39 = vcombine.low %v390_v1, %v397_v62  ;;  %v131_v1 = vld [vmem:[#allocation3] sm:$0x3] }
  0xfd   :  { %v400_v52 = vadd.f32 %v398_v39, %v134_v34 }
  0xff   :  { %v2781_v3 = vmul.f32 -1.442695, %v400_v52  ;;  %v408_v59 = vrot.slane %v400_v52, 2  ;;  %v419_v56 = vrot.slane %v400_v52, 6  ;;  %v416_v0 = vrot.slane %v400_v52, 4 }
 0x101   :  { %3095 = vpow2.f32 %v2781_v3  ;;  %v2782_v51 = vmul.f32 -1.442695, %v408_v59  ;;  %v2783_v57 = vmul.f32 -1.442695, %v419_v56 }
 0x103   :  { %3097 = vpow2.f32 %v2782_v51 }
 0x104   :  { %3099 = vpow2.f32 %v2783_v57 }
 0x10b   :  { %v3096_v54 = vpop.eup %3095 }
 0x10c   :  { %v404_v53 = vadd.f32 1.0, %v3096_v54  ;;  %v6401_v54 = vmov 0  }
 0x10d   :  { %v3098_v58 = vpop.eup %3097 }
 0x10e   :  { %3101 = vrcp.f32 %v404_v53  ;;  %v413_v55 = vadd.f32 1.0, %v3098_v58  ;;  %v3100_v61 = vpop.eup %3099  ;;  %v6427_v53 = vld [vmem:[#allocation36_spill] sm:$0xff]  ;;  %v6428_v58 = vld [vmem:[#allocation37_spill] sm:$0xff] }
 0x10f   :  { %3103 = vtanh.f32 %v416_v0  ;;  %v424_v34 = vadd.f32 1.0, %v3100_v61  ;;  %v6426_v0 = vld [vmem:[#allocation35_spill] sm:$0xff] }
 0x110   :  { %3105 = vrcp.f32 %v413_v55  ;;  %v6429_v55 = vld [vmem:[#allocation38_spill] sm:$0xff]  ;;  %v6430_v61 = vld [vmem:[#allocation39_spill] sm:$0xff] }
 0x111   :  { %3107 = vrcp.f32 %v424_v34  ;;  %v6435_v34 = vld [vmem:[#allocation44_spill] sm:$0xff] }
 0x118   :  { %v3102_v63 = vpop.eup %3101 }
 0x119   :  { %v3104_v60 = vpop.eup %3103 }
 0x11a   :  { %v3106_v62 = vpop.eup %3105  ;;  %v428_v59 = vmul.f32 %v3104_v60, %v3102_v63  ;;  %v6431_v63 = vld [vmem:[#allocation40_spill] sm:$0xff]  ;;  %v6433_v60 = vld [vmem:[#allocation42_spill] sm:$0xff] }
 0x11b   :  { %v427_v39 = vmul.f32 %v3106_v62, %v131_v1  ;;  %v3108_v52 = vpop.eup %3107  ;;  %v6432_v1 = vld [vmem:[#allocation41_spill] sm:$0xff]  ;;  %v6434_v62 = vld [vmem:[#allocation43_spill] sm:$0xff] }
 0x11d   :  { %v4205_v51 = vadd.f32 %v428_v59, %v427_v39  ;;  %v6436_v39 = vld [vmem:[#allocation45_spill] sm:$0xff]  ;;  %v6437_v59 = vld [vmem:[#allocation46_spill] sm:$0xff] }
 0x11f   :  { %3109 = vtanh.f32 %v4205_v51 }
 0x129   :  { %v3110_v3 = vpop.eup %3109 }
 0x12a   :  { %v431_v56 = vmul.f32 %v3110_v3, %v3108_v52  ;;  %v6438_v52 = vld [vmem:[#allocation47_spill] sm:$0xff]  ;;  %v6439_v3 = vld [vmem:[#allocation48_spill] sm:$0xff] }
 0x12c   :  { %v432_v57 = vpack.c.bf16 %v431_v56, %v431_v56  ;;  %v6440_v56 = vld [vmem:[#allocation49_spill] sm:$0xff] }
 0x12e   :  { %808 = vmatmul.mubr.bf16.vlgmr.msra.gmra.mrb[4].mxu0 %v432_v57  ;;  %849 = vmatmul.mubr.bf16.vlgmr.msra.gmra.mrb[4].mxu1 %v432_v57 }
 0x12f   :  { %884 = vmatpush1.bf16.msra.mxu0 %v3631_v4  ;;  %925 = vmatpush1.bf16.msra.mxu1 %v3636_v5  ;;  %v6402_v4 = vld [vmem:[#allocation11_spill] sm:$0xff]  ;;  %v6403_v5 = vld [vmem:[#allocation12_spill] sm:$0xff] }
 0x130   :  { %885 = vmatprep.subr.bf16.mxu0 %v3642_v6  ;;  %926 = vmatprep.subr.bf16.mxu1 %v3649_v7  ;;  %v6404_v6 = vld [vmem:[#allocation13_spill] sm:$0xff]  ;;  %v6405_v7 = vld [vmem:[#allocation14_spill] sm:$0xff] }
 0x131   :  { %915 = vmatprep.mubr.bf16.mxu0 %v6401_v54  ;;  %956 = vmatprep.mubr.bf16.mxu1 %v6401_v54 }
 0x133   :  { %886 = vmatpush1.bf16.msra.mxu0 %v3654_v8  ;;  %927 = vmatpush1.bf16.msra.mxu1 %v3660_v9  ;;  %v6406_v8 = vld [vmem:[#allocation15_spill] sm:$0xff]  ;;  %v6407_v9 = vld [vmem:[#allocation16_spill] sm:$0xff] }
 0x134   :  { %887 = vmatprep.subr.bf16.mxu0 %v3666_v10  ;;  %928 = vmatprep.subr.bf16.mxu1 %v3671_v11  ;;  %v6408_v10 = vld [vmem:[#allocation17_spill] sm:$0xff]  ;;  %v6409_v11 = vld [vmem:[#allocation18_spill] sm:$0xff] }
 0x137   :  { %888 = vmatpush1.bf16.msra.mxu0 %v3676_v12  ;;  %929 = vmatpush1.bf16.msra.mxu1 %v3681_v13  ;;  %v6410_v12 = vld [vmem:[#allocation19_spill] sm:$0xff]  ;;  %v6411_v13 = vld [vmem:[#allocation20_spill] sm:$0xff] }
 0x138   :  { %889 = vmatprep.subr.bf16.mxu0 %v3688_v14  ;;  %930 = vmatprep.subr.bf16.mxu1 %v3695_v15  ;;  %v6412_v14 = vld [vmem:[#allocation21_spill] sm:$0xff]  ;;  %v6413_v15 = vld [vmem:[#allocation22_spill] sm:$0xff] }
 0x13b   :  { %890 = vmatpush1.bf16.msra.mxu0 %v3700_v16  ;;  %931 = vmatpush1.bf16.msra.mxu1 %v3707_v17  ;;  %v6414_v16 = vld [vmem:[#allocation23_spill] sm:$0xff]  ;;  %v6415_v17 = vld [vmem:[#allocation24_spill] sm:$0xff] }
 0x13c   :  { %891 = vmatprep.subr.bf16.mxu0 %v3712_v18  ;;  %932 = vmatprep.subr.bf16.mxu1 %v3719_v19  ;;  %v6416_v18 = vld [vmem:[#allocation25_spill] sm:$0xff]  ;;  %v6417_v19 = vld [vmem:[#allocation26_spill] sm:$0xff] }
 0x13f   :  { %892 = vmatpush1.bf16.msra.mxu0 %v3724_v20  ;;  %933 = vmatpush1.bf16.msra.mxu1 %v3729_v21  ;;  %v6418_v20 = vld [vmem:[#allocation27_spill] sm:$0xff]  ;;  %v6419_v21 = vld [vmem:[#allocation28_spill] sm:$0xff] }
 0x140   :  { %893 = vmatprep.subr.bf16.mxu0 %v3736_v22  ;;  %934 = vmatprep.subr.bf16.mxu1 %v3743_v23  ;;  %v6420_v22 = vld [vmem:[#allocation29_spill] sm:$0xff]  ;;  %v6421_v23 = vld [vmem:[#allocation30_spill] sm:$0xff] }
 0x143   :  { %894 = vmatpush1.bf16.msra.mxu0 %v3750_v24  ;;  %935 = vmatpush1.bf16.msra.mxu1 %v3755_v25  ;;  %v6422_v24 = vld [vmem:[#allocation31_spill] sm:$0xff]  ;;  %v6423_v25 = vld [vmem:[#allocation32_spill] sm:$0xff] }
 0x144   :  { %895 = vmatprep.subr.bf16.mxu0 %v3762_v26  ;;  %936 = vmatprep.subr.bf16.mxu1 %v3767_v27  ;;  %v6424_v26 = vld [vmem:[#allocation33_spill] sm:$0xff]  ;;  %v6425_v27 = vld [vmem:[#allocation34_spill] sm:$0xff] }
 0x147   :  { %896 = vmatpush1.bf16.msra.mxu0 %v3772_v28  ;;  %937 = vmatpush1.bf16.msra.mxu1 %v3777_v29 }
 0x148   :  { %897 = vmatprep.subr.bf16.mxu0 %v3784_v30  ;;  %938 = vmatprep.subr.bf16.mxu1 %v3791_v31 }
 0x14b   :  { %898 = vmatpush1.bf16.msra.mxu0 %v3796_v32  ;;  %939 = vmatpush1.bf16.msra.mxu1 %v3801_v33 }
 0x14c   :  { %1021 = vmatprep.subr.bf16.mxu0 %v3806_v35  ;;  %1062 = vmatprep.subr.bf16.mxu1 %v3811_v36 }
 0x14e   :  { %916 = vmatmul.mubr.bf16.vlgmr.msra.gmra.mrb[8].mxu0 %v432_v57  ;;  %957 = vmatmul.mubr.bf16.vlgmr.msra.gmra.mrb[8].mxu1 %v432_v57  ;;  %v6441_v57 = vld [vmem:[#allocation50_spill] sm:$0xff] }
 0x14f   :  { %1022 = vmatpush1.bf16.msra.mxu0 %v3820_v37  ;;  %1063 = vmatpush1.bf16.msra.mxu1 %v3825_v38 }
 0x150   :  { %1023 = vmatprep.subr.bf16.mxu0 %v3830_v40  ;;  %1064 = vmatprep.subr.bf16.mxu1 %v3835_v41 }
 0x153   :  { %1024 = vmatpush1.bf16.msra.mxu0 %v3844_v42  ;;  %1065 = vmatpush1.bf16.msra.mxu1 %v3849_v43 }
 0x154   :  { %1025 = vmatprep.subr.bf16.mxu0 %v3860_v44  ;;  %1066 = vmatprep.subr.bf16.mxu1 %v3865_v45 }
 0x157   :  { %1026 = vmatpush1.bf16.msra.mxu0 %v3872_v46  ;;  %1067 = vmatpush1.bf16.msra.mxu1 %v3877_v47 }
 0x158   :  { %1027 = vmatprep.subr.bf16.mxu0 %v3884_v48  ;;  %1068 = vmatprep.subr.bf16.mxu1 %v3889_v49 }
 0x15b   :  { %1028 = vmatpush1.bf16.msra.mxu0 %v3894_v50  ;;  %1069 = vmatpush1.bf16.msra.mxu1 %v6402_v4 }
 0x15c   :  { %1029 = vmatprep.subr.bf16.mxu0 %v6403_v5  ;;  %1070 = vmatprep.subr.bf16.mxu1 %v6404_v6 }
 0x15f   :  { %1030 = vmatpush1.bf16.msra.mxu0 %v6405_v7  ;;  %1071 = vmatpush1.bf16.msra.mxu1 %v6406_v8 }
 0x160   :  { %1031 = vmatprep.subr.bf16.mxu0 %v6407_v9  ;;  %1072 = vmatprep.subr.bf16.mxu1 %v6408_v10 }
 0x163   :  { %1032 = vmatpush1.bf16.msra.mxu0 %v6409_v11  ;;  %1073 = vmatpush1.bf16.msra.mxu1 %v6410_v12 }
 0x164   :  { %1033 = vmatprep.subr.bf16.mxu0 %v6411_v13  ;;  %1074 = vmatprep.subr.bf16.mxu1 %v6412_v14 }
 0x167   :  { %1034 = vmatpush1.bf16.msra.mxu0 %v6413_v15  ;;  %1075 = vmatpush1.bf16.msra.mxu1 %v6414_v16 }
 0x168   :  { %1035 = vmatprep.subr.bf16.mxu0 %v6415_v17  ;;  %1076 = vmatprep.subr.bf16.mxu1 %v6416_v18 }
 0x16b   :  { %1036 = vmatpush1.bf16.msra.mxu0 %v6417_v19  ;;  %1077 = vmatpush1.bf16.msra.mxu1 %v6418_v20 }
 0x16c   :  { %1037 = vmatprep.subr.bf16.mxu0 %v6419_v21  ;;  %1078 = vmatprep.subr.bf16.mxu1 %v6420_v22 }
 0x16f   :  { %1038 = vmatpush1.bf16.msra.mxu0 %v6421_v23  ;;  %1079 = vmatpush1.bf16.msra.mxu1 %v6422_v24 }
 0x170   :  { %1039 = vmatprep.subr.bf16.mxu0 %v6423_v25  ;;  %1080 = vmatprep.subr.bf16.mxu1 %v6424_v26 }
 0x173   :  { %1040 = vmatpush1.bf16.msra.mxu0 %v6425_v27  ;;  %1081 = vmatpush1.bf16.msra.mxu1 %v6426_v0 }
 0x174   :  { %1041 = vmatprep.subr.bf16.mxu0 %v6427_v53  ;;  %1082 = vmatprep.subr.bf16.mxu1 %v6428_v58 }
 0x177   :  { %1042 = vmatpush1.bf16.msra.mxu0 %v6429_v55  ;;  %1083 = vmatpush1.bf16.msra.mxu1 %v6430_v61 }
 0x178   :  { %1043 = vmatprep.subr.bf16.mxu0 %v6431_v63  ;;  %1084 = vmatprep.subr.bf16.mxu1 %v6432_v1  ;;  %v6442_v63 = vld [vmem:[#allocation51_spill] sm:$0xff]  ;;  %v6443_v1 = vld [vmem:[#allocation52_spill] sm:$0xff] }
 0x17b   :  { %1044 = vmatpush1.bf16.msra.mxu0 %v6433_v60  ;;  %1085 = vmatpush1.bf16.msra.mxu1 %v6434_v62  ;;  %v6444_v60 = vld [vmem:[#allocation53_spill] sm:$0xff]  ;;  %v6445_v62 = vld [vmem:[#allocation54_spill] sm:$0xff] }
 0x17c   :  { %1045 = vmatprep.subr.bf16.mxu0 %v6435_v34  ;;  %1086 = vmatprep.subr.bf16.mxu1 %v6436_v39  ;;  %v6446_v34 = vld [vmem:[#allocation55_spill] sm:$0xff]  ;;  %v6447_v39 = vld [vmem:[#allocation56_spill] sm:$0xff] }
 0x17f   :  { %1046 = vmatpush1.bf16.msra.mxu0 %v6437_v59  ;;  %1087 = vmatpush1.bf16.msra.mxu1 %v6438_v52  ;;  %v6448_v59 = vld [vmem:[#allocation57_spill] sm:$0xff]  ;;  %v6449_v52 = vld [vmem:[#allocation58_spill] sm:$0xff] }
 0x180   :  { %1047 = vmatprep.subr.bf16.mxu0 %v6439_v3  ;;  %1088 = vmatprep.subr.bf16.mxu1 %v6440_v56  ;;  %v6450_v3 = vld [vmem:[#allocation59_spill] sm:$0xff]  ;;  %v6451_v56 = vld [vmem:[#allocation9_spill] sm:$0xff] }
 0x183   :  { %1048 = vmatpush1.bf16.msra.mxu0 %v6441_v57  ;;  %1089 = vmatpush1.bf16.msra.mxu1 %v6442_v63  ;;  %v6452_v57 = vld [vmem:[#allocation10_spill] sm:$0xff]  ;;  %v6453_v63 = vld [vmem:[#allocation60_spill] sm:$0xff] }
 0x184   :  { %1049 = vmatprep.subr.bf16.mxu0 %v6443_v1  ;;  %1090 = vmatprep.subr.bf16.mxu1 %v6444_v60  ;;  %v437_v1 = vsub.s32 0, %v6453_v63 }
 0x187   :  { %1050 = vmatpush1.bf16.msra.mxu0 %v6445_v62  ;;  %1091 = vmatpush1.bf16.msra.mxu1 %v6446_v34  ;;  %v129_v62 = vld [vmem:[%s6038_s3] sm:$0xf]  ;;  %v441_v34 = vsub.s32 1, %v6453_v63 }
 0x188   :  { %1051 = vmatprep.subr.bf16.mxu0 %v6447_v39  ;;  %1092 = vmatprep.subr.bf16.mxu1 %v6448_v59  ;;  %v4311_v60 = vrot.slane %v129_v62, %v437_v1 }
 0x189   :  { %v4313_v39 = vrot.slane %v129_v62, %v441_v34  ;;  %v445_v34 = vsub.s32 2, %v6453_v63 }
 0x18a   :  { %6454 = vst [vmem:[#allocation11_spill] sm:$0xff] %v4311_v60 }
 0x18b   :  { %1052 = vmatpush1.bf16.msra.mxu0 %v6449_v52  ;;  %1093 = vmatpush1.bf16.msra.mxu1 %v6450_v3  ;;  %v449_v3 = vsub.s32 3, %v6453_v63  ;;  %v4322_v23 = vrot.slane %v129_v62, %v445_v34 }
 0x18c   :  { %1129 = vmatprep.subr.bf16.mxu0 %v6451_v56  ;;  %1170 = vmatprep.subr.bf16.mxu1 %v6452_v57 }
 0x18d   :  { %v4318_v1 = vrot.slane %v129_v62, %v449_v3  ;;  %6456 = vst [vmem:[#allocation13_spill] sm:$0xff] %v4322_v23 }
 0x18f   :  { %6455 = vst [vmem:[#allocation12_spill] sm:$0xff] %v4318_v1 }
 0x201   :  { %v809_v59 = vpop.f32.mrb[4].mxu0  ;;  %v850_v52 = vpop.f32.mrb[4].mxu1 }
 0x202   :  { %v810_v56 = vadd.f32 %v809_v59, %v4311_v60  ;;  %v811_v61 = vpop.f32.mrb[5].mxu0  ;;  %v852_v57 = vpop.f32.mrb[5].mxu1  ;;  %v851_v60 = vadd.f32 %v850_v52, %v4322_v23 }
 0x203   :  { %v812_v55 = vadd.f32 %v811_v61, %v4313_v39  ;;  %v813_v58 = vpop.f32.mrb[6].mxu0  ;;  %v854_v53 = vpop.f32.mrb[6].mxu1  ;;  %v853_v24 = vadd.f32 %v852_v57, %v4318_v1 }
 0x204   :  { %v2848_v0 = vmul.f32 -1.442695, %v810_v56  ;;  %v814_v27 = vpop.f32.mrb[7].mxu0  ;;  %v855_v26 = vpop.f32.mrb[7].mxu1 }
 0x205   :  { %v2849_v25 = vmul.f32 -1.442695, %v812_v55  ;;  %v2850_v59 = vmul.f32 -1.442695, %v853_v24  ;;  %v133_v55 = vld [vmem:[#allocation5] sm:$0x3] }
 0x206   :  { %3111 = vpow2.f32 %v2848_v0 }
 0x207   :  { %3113 = vpow2.f32 %v2849_v25 }
 0x208   :  { %3115 = vpow2.f32 %v2850_v59 }
 0x209   :  { %3117 = vtanh.f32 %v851_v60 }
 0x210   :  { %v3112_v61 = vpop.eup %3111 }
 0x211   :  { %v3114_v58 = vpop.eup %3113  ;;  %v860_v53 = vadd.f32 1.0, %v3112_v61 }
 0x212   :  { %v866_v26 = vadd.f32 1.0, %v3114_v58  ;;  %v3116_v27 = vpop.eup %3115 }
 0x213   :  { %3119 = vrcp.f32 %v860_v53  ;;  %v3118_v0 = vpop.eup %3117  ;;  %v873_v56 = vadd.f32 1.0, %v3116_v27 }
 0x214   :  { %3121 = vrcp.f32 %v866_v26 }
 0x215   :  { %3123 = vrcp.f32 %v873_v56 }
 0x21d   :  { %v3120_v63 = vpop.eup %3119 }
 0x21e   :  { %v3122_v25 = vpop.eup %3121  ;;  %v877_v3 = vmul.f32 %v3120_v63, %v3118_v0  ;;  %v2851_v0 = vld [vmem:[%s6035_s0 + $0x8] sm:$0xff] }
 0x21f   :  { %v876_v62 = vmul.f32 %v3122_v25, %v133_v55  ;;  %v3124_v56 = vpop.eup %3123 }
 0x221   :  { %v917_v57 = vpop.f32.mrb[8].mxu0  ;;  %v958_v24 = vpop.f32.mrb[8].mxu1  ;;  %v4325_v34 = vadd.f32 %v877_v3, %v876_v62 }
 0x222   :  { %v919_v52 = vpop.f32.mrb[9].mxu0  ;;  %v960_v61 = vpop.f32.mrb[9].mxu1 }
 0x223   :  { %v969_v59 = vcombine.low %v917_v57, %v919_v52  ;;  %v970_v60 = vcombine.low %v958_v24, %v960_v61  ;;  %v921_v58 = vpop.f32.mrb[10].mxu0  ;;  %v962_v53 = vpop.f32.mrb[10].mxu1  ;;  %3125 = vtanh.f32 %v4325_v34 }
 0x224   :  { %v922_v26 = vpop.f32.mrb[11].mxu0  ;;  %v963_v23 = vpop.f32.mrb[11].mxu1 }
 0x225   :  { %v977_v1 = vrot.slane %v969_v59, %v4198_v2  ;;  %v984_v27 = vrot.slane %v970_v60, %v4198_v2 }
 0x227   :  { %v985_v55 = vcombine.low %v977_v1, %v984_v27 }
 0x229   :  { %v987_v63 = vadd.f32 %v2851_v0, %v985_v55 }
 0x22b   :  { %v2852_v25 = vmul.f32 -1.442695, %v987_v63  ;;  %v995_v3 = vrot.slane %v987_v63, 2  ;;  %v1006_v23 = vrot.slane %v987_v63, 6  ;;  %v1003_v60 = vrot.slane %v987_v63, 4 }
 0x22d   :  { %v3126_v62 = vpop.eup %3125  ;;  %3127 = vpow2.f32 %v2852_v25  ;;  %v2853_v57 = vmul.f32 -1.442695, %v995_v3  ;;  %v2854_v61 = vmul.f32 -1.442695, %v1006_v23  ;;  %v4340_v23 = vld [vmem:[%s6036_s1] ss:$16 sps:$4 sm:$0xff]  }
 0x22e   :  { %v880_v24 = vmul.f32 %v3126_v62, %v3124_v56 }
 0x22f   :  { %3129 = vpow2.f32 %v2853_v57 }
 0x230   :  { %v1020_v52 = vpack.c.bf16 %v880_v24, %v880_v24  ;;  %3131 = vpow2.f32 %v2854_v61  ;;  %v4352_v61 = vld [vmem:[%s6036_s1 + $0x24] ss:$16 sps:$4 sm:$0xff]  }
 0x232   :  { %1053 = vmatprep.mubr.bf16.mxu0 %v1020_v52  ;;  %1094 = vmatprep.mubr.bf16.mxu1 %v1020_v52 }
 0x237   :  { %v3128_v59 = vpop.eup %3127 }
 0x238   :  { %v991_v58 = vadd.f32 1.0, %v3128_v59  ;;  %v4358_v59 = vld [vmem:[%s6036_s1 + $0x2c] ss:$16 sps:$4 sm:$0xff]  }
 0x239   :  { %v3130_v53 = vpop.eup %3129 }
 0x23a   :  { %3133 = vrcp.f32 %v991_v58  ;;  %v1000_v1 = vadd.f32 1.0, %v3130_v53  ;;  %v3132_v26 = vpop.eup %3131  ;;  %v4372_v58 = vld [vmem:[%s6036_s1 + $0x28] ss:$16 sps:$4 sm:$0xff]   ;;  %v4378_v53 = vld [vmem:[%s6036_s1 + $0x44] ss:$16 sps:$4 sm:$0xff]  }
 0x23b   :  { %3135 = vtanh.f32 %v1003_v60  ;;  %v1011_v25 = vadd.f32 1.0, %v3132_v26  ;;  %v4366_v60 = vld [vmem:[%s6036_s1 + $0x20] ss:$16 sps:$4 sm:$0xff]  }
 0x23c   :  { %3137 = vrcp.f32 %v1000_v1  ;;  %v4384_v1 = vld [vmem:[%s6036_s1 + $0x4c] ss:$16 sps:$4 sm:$0xff]   ;;  %v4390_v26 = vld [vmem:[%s6036_s1 + $0x40] ss:$16 sps:$4 sm:$0xff]  }
 0x23d   :  { %3139 = vrcp.f32 %v1011_v25  ;;  %v4414_v25 = vld [vmem:[%s6036_s1 + $0x60] ss:$16 sps:$4 sm:$0xff]  }
 0x244   :  { %v3134_v27 = vpop.eup %3133 }
 0x245   :  { %v3136_v0 = vpop.eup %3135 }
 0x246   :  { %v3138_v55 = vpop.eup %3137  ;;  %v1015_v56 = vmul.f32 %v3136_v0, %v3134_v27  ;;  %v4396_v27 = vld [vmem:[%s6036_s1 + $0x48] ss:$16 sps:$4 sm:$0xff]   ;;  %v4402_v0 = vld [vmem:[%s6036_s1 + $0x64] ss:$16 sps:$4 sm:$0xff]  }
 0x247   :  { %v1014_v3 = vmul.f32 %v3138_v55, %v4205_v51  ;;  %v3140_v63 = vpop.eup %3139  ;;  %v4346_v51 = vld [vmem:[%s6036_s1 + $0x8] ss:$16 sps:$4 sm:$0xff]   ;;  %v4408_v55 = vld [vmem:[%s6036_s1 + $0x6c] ss:$16 sps:$4 sm:$0xff]  }
 0x249   :  { %v4334_v62 = vadd.f32 %v1015_v56, %v1014_v3  ;;  %v4420_v3 = vld [vmem:[%s6036_s1 + $0x68] ss:$16 sps:$4 sm:$0xff]   ;;  %v4426_v56 = vld [vmem:[%s6036_s1 + $0x84] ss:$16 sps:$4 sm:$0xff]  }
 0x24a   :  { %6457 = vst [vmem:[#allocation14_spill] sm:$0xff] %v4426_v56 }
 0x24b   :  { %3141 = vtanh.f32 %v4334_v62 }
 0x255   :  { %v3142_v57 = vpop.eup %3141 }
 0x256   :  { %v1018_v24 = vmul.f32 %v3142_v57, %v3140_v63  ;;  %v4432_v63 = vld [vmem:[%s6036_s1 + $0x8c] ss:$16 sps:$4 sm:$0xff]   ;;  %v4438_v57 = vld [vmem:[%s6036_s1 + $0x80] ss:$16 sps:$4 sm:$0xff]  }
 0x257   :  { %6458 = vst [vmem:[#allocation15_spill] sm:$0xff] %v4432_v63  ;;  %6459 = vst [vmem:[#allocation16_spill] sm:$0xff] %v4438_v57 }
 0x258   :  { %v1019_v52 = vpack.c.bf16 %v1018_v24, %v1018_v24  ;;  %v4444_v24 = vld [vmem:[%s6036_s1 + $0x88] ss:$16 sps:$4 sm:$0xff]  }
 0x259   :  { %6460 = vst [vmem:[#allocation17_spill] sm:$0xff] %v4444_v24 }
 0x25a   :  { %1054 = vmatmul.mubr.bf16.vlgmr.msra.gmra.mrb[12].mxu0 %v1019_v52  ;;  %1095 = vmatmul.mubr.bf16.vlgmr.msra.gmra.mrb[12].mxu1 %v1019_v52 }
 0x25b   :  { %1130 = vmatpush1.bf16.msra.mxu0 %v4340_v23  ;;  %1171 = vmatpush1.bf16.msra.mxu1 %v4346_v51 }
 0x25c   :  { %1131 = vmatprep.subr.bf16.mxu0 %v4352_v61  ;;  %1172 = vmatprep.subr.bf16.mxu1 %v4358_v59 }
 0x25d   :  { %1161 = vmatprep.mubr.bf16.mxu0 %v6401_v54  ;;  %1202 = vmatprep.mubr.bf16.mxu1 %v6401_v54 }
 0x25f   :  { %1132 = vmatpush1.bf16.msra.mxu0 %v4366_v60  ;;  %1173 = vmatpush1.bf16.msra.mxu1 %v4372_v58 }
 0x260   :  { %1133 = vmatprep.subr.bf16.mxu0 %v4378_v53  ;;  %1174 = vmatprep.subr.bf16.mxu1 %v4384_v1 }
 0x263   :  { %1134 = vmatpush1.bf16.msra.mxu0 %v4390_v26  ;;  %1175 = vmatpush1.bf16.msra.mxu1 %v4396_v27 }
 0x264   :  { %1135 = vmatprep.subr.bf16.mxu0 %v4402_v0  ;;  %1176 = vmatprep.subr.bf16.mxu1 %v4408_v55 }
 0x267   :  { %1136 = vmatpush1.bf16.msra.mxu0 %v4414_v25  ;;  %1177 = vmatpush1.bf16.msra.mxu1 %v4420_v3 }
 0x268   :  { %1137 = vmatprep.subr.bf16.mxu0 %v4426_v56  ;;  %1178 = vmatprep.subr.bf16.mxu1 %v4432_v63  ;;  %v4450_v56 = vld [vmem:[%s6036_s1 + $0xa4] ss:$16 sps:$4 sm:$0xff]   ;;  %v4456_v63 = vld [vmem:[%s6036_s1 + $0xac] ss:$16 sps:$4 sm:$0xff]  }
 0x269   :  { %6461 = vst [vmem:[#allocation18_spill] sm:$0xff] %v4450_v56  ;;  %6462 = vst [vmem:[#allocation19_spill] sm:$0xff] %v4456_v63 }
 0x26b   :  { %1138 = vmatpush1.bf16.msra.mxu0 %v4438_v57  ;;  %1179 = vmatpush1.bf16.msra.mxu1 %v4444_v24  ;;  %v4462_v57 = vld [vmem:[%s6036_s1 + $0xa0] ss:$16 sps:$4 sm:$0xff]   ;;  %v4468_v24 = vld [vmem:[%s6036_s1 + $0xa8] ss:$16 sps:$4 sm:$0xff]  }
 0x26c   :  { %1139 = vmatprep.subr.bf16.mxu0 %v4450_v56  ;;  %1180 = vmatprep.subr.bf16.mxu1 %v4456_v63  ;;  %v4474_v56 = vld [vmem:[%s6036_s1 + $0xc4] ss:$16 sps:$4 sm:$0xff]   ;;  %v4480_v63 = vld [vmem:[%s6036_s1 + $0xcc] ss:$16 sps:$4 sm:$0xff]  }
 0x26f   :  { %1140 = vmatpush1.bf16.msra.mxu0 %v4462_v57  ;;  %1181 = vmatpush1.bf16.msra.mxu1 %v4468_v24 }
 0x270   :  { %1141 = vmatprep.subr.bf16.mxu0 %v4474_v56  ;;  %1182 = vmatprep.subr.bf16.mxu1 %v4480_v63 }
 0x273   :  { %1142 = vmatpush1.bf16.msra.mxu0 %v3772_v28  ;;  %1183 = vmatpush1.bf16.msra.mxu1 %v3777_v29  ;;  %v6463_v28 = vld [vmem:[#allocation30_spill] sm:$0xff]  ;;  %v6464_v29 = vld [vmem:[#allocation31_spill] sm:$0xff] }
 0x274   :  { %1143 = vmatprep.subr.bf16.mxu0 %v3784_v30  ;;  %1184 = vmatprep.subr.bf16.mxu1 %v3791_v31  ;;  %v6465_v30 = vld [vmem:[#allocation32_spill] sm:$0xff]  ;;  %v6466_v31 = vld [vmem:[#allocation33_spill] sm:$0xff] }
 0x277   :  { %1144 = vmatpush1.bf16.msra.mxu0 %v3796_v32  ;;  %1185 = vmatpush1.bf16.msra.mxu1 %v3801_v33  ;;  %v6467_v32 = vld [vmem:[#allocation34_spill] sm:$0xff]  ;;  %v6468_v33 = vld [vmem:[#allocation35_spill] sm:$0xff] }
 0x278   :  { %1267 = vmatprep.subr.bf16.mxu0 %v3806_v35  ;;  %1308 = vmatprep.subr.bf16.mxu1 %v3811_v36  ;;  %v6469_v35 = vld [vmem:[#allocation36_spill] sm:$0xff]  ;;  %v6470_v36 = vld [vmem:[#allocation37_spill] sm:$0xff] }
 0x27a   :  { %1162 = vmatmul.mubr.bf16.vlgmr.msra.gmra.mrb[16].mxu0 %v1019_v52  ;;  %1203 = vmatmul.mubr.bf16.vlgmr.msra.gmra.mrb[16].mxu1 %v1019_v52 }
 0x27b   :  { %1268 = vmatpush1.bf16.msra.mxu0 %v3820_v37  ;;  %1309 = vmatpush1.bf16.msra.mxu1 %v3825_v38  ;;  %v6471_v37 = vld [vmem:[#allocation38_spill] sm:$0xff]  ;;  %v6472_v38 = vld [vmem:[#allocation39_spill] sm:$0xff] }
 0x27c   :  { %1269 = vmatprep.subr.bf16.mxu0 %v3830_v40  ;;  %1310 = vmatprep.subr.bf16.mxu1 %v3835_v41  ;;  %v6473_v40 = vld [vmem:[#allocation40_spill] sm:$0xff]  ;;  %v6474_v41 = vld [vmem:[#allocation41_spill] sm:$0xff] }
 0x27f   :  { %1270 = vmatpush1.bf16.msra.mxu0 %v3844_v42  ;;  %1311 = vmatpush1.bf16.msra.mxu1 %v3849_v43  ;;  %v6475_v42 = vld [vmem:[#allocation42_spill] sm:$0xff]  ;;  %v6476_v43 = vld [vmem:[#allocation43_spill] sm:$0xff] }
 0x280   :  { %1271 = vmatprep.subr.bf16.mxu0 %v3860_v44  ;;  %1312 = vmatprep.subr.bf16.mxu1 %v3865_v45  ;;  %v6477_v44 = vld [vmem:[#allocation44_spill] sm:$0xff]  ;;  %v6478_v45 = vld [vmem:[#allocation45_spill] sm:$0xff] }
 0x283   :  { %1272 = vmatpush1.bf16.msra.mxu0 %v3872_v46  ;;  %1313 = vmatpush1.bf16.msra.mxu1 %v3877_v47  ;;  %v6479_v46 = vld [vmem:[#allocation46_spill] sm:$0xff]  ;;  %v6480_v47 = vld [vmem:[#allocation47_spill] sm:$0xff] }
 0x284   :  { %1273 = vmatprep.subr.bf16.mxu0 %v3884_v48  ;;  %1314 = vmatprep.subr.bf16.mxu1 %v3889_v49  ;;  %v6481_v48 = vld [vmem:[#allocation48_spill] sm:$0xff]  ;;  %v6482_v49 = vld [vmem:[#allocation49_spill] sm:$0xff] }
 0x287   :  { %1274 = vmatpush1.bf16.msra.mxu0 %v3894_v50  ;;  %1315 = vmatpush1.bf16.msra.mxu1 %v6402_v4  ;;  %v6483_v50 = vld [vmem:[#allocation50_spill] sm:$0xff]  ;;  %v6484_v4 = vld [vmem:[#allocation51_spill] sm:$0xff] }
 0x288   :  { %1275 = vmatprep.subr.bf16.mxu0 %v6403_v5  ;;  %1316 = vmatprep.subr.bf16.mxu1 %v6404_v6  ;;  %v6485_v5 = vld [vmem:[#allocation52_spill] sm:$0xff]  ;;  %v6486_v6 = vld [vmem:[#allocation53_spill] sm:$0xff] }
 0x28b   :  { %1276 = vmatpush1.bf16.msra.mxu0 %v6405_v7  ;;  %1317 = vmatpush1.bf16.msra.mxu1 %v6406_v8  ;;  %v6487_v7 = vld [vmem:[#allocation54_spill] sm:$0xff]  ;;  %v6488_v8 = vld [vmem:[#allocation55_spill] sm:$0xff] }
 0x28c   :  { %1277 = vmatprep.subr.bf16.mxu0 %v6407_v9  ;;  %1318 = vmatprep.subr.bf16.mxu1 %v6408_v10  ;;  %v6489_v9 = vld [vmem:[#allocation56_spill] sm:$0xff]  ;;  %v6490_v10 = vld [vmem:[#allocation57_spill] sm:$0xff] }
 0x28f   :  { %1278 = vmatpush1.bf16.msra.mxu0 %v6409_v11  ;;  %1319 = vmatpush1.bf16.msra.mxu1 %v6410_v12  ;;  %v6491_v11 = vld [vmem:[#allocation58_spill] sm:$0xff]  ;;  %v6492_v12 = vld [vmem:[#allocation59_spill] sm:$0xff] }
 0x290   :  { %1279 = vmatprep.subr.bf16.mxu0 %v6411_v13  ;;  %1320 = vmatprep.subr.bf16.mxu1 %v6412_v14  ;;  %v4556_v13 = vld [vmem:[%s6036_s1 + $0x4] ss:$16 sps:$4 sm:$0xff]   ;;  %v4562_v14 = vld [vmem:[%s6036_s1 + $0xc] ss:$16 sps:$4 sm:$0xff]  }
 0x291   :  { %6493 = vst [vmem:[#allocation20_spill] sm:$0xff] %v4556_v13  ;;  %6494 = vst [vmem:[#allocation21_spill] sm:$0xff] %v4562_v14 }
 0x293   :  { %1280 = vmatpush1.bf16.msra.mxu0 %v6413_v15  ;;  %1321 = vmatpush1.bf16.msra.mxu1 %v6414_v16 }
 0x294   :  { %1281 = vmatprep.subr.bf16.mxu0 %v6415_v17  ;;  %1322 = vmatprep.subr.bf16.mxu1 %v6416_v18  ;;  %v6495_v17 = vld [vmem:[#allocation11_spill] sm:$0xff] }
 0x297   :  { %1282 = vmatpush1.bf16.msra.mxu0 %v6417_v19  ;;  %1323 = vmatpush1.bf16.msra.mxu1 %v6418_v20 }
 0x298   :  { %1283 = vmatprep.subr.bf16.mxu0 %v6419_v21  ;;  %1324 = vmatprep.subr.bf16.mxu1 %v6420_v22 }
 0x29b   :  { %1284 = vmatpush1.bf16.msra.mxu0 %v6463_v28  ;;  %1325 = vmatpush1.bf16.msra.mxu1 %v6464_v29 }
 0x29c   :  { %1285 = vmatprep.subr.bf16.mxu0 %v6465_v30  ;;  %1326 = vmatprep.subr.bf16.mxu1 %v6466_v31 }
 0x29f   :  { %1286 = vmatpush1.bf16.msra.mxu0 %v6467_v32  ;;  %1327 = vmatpush1.bf16.msra.mxu1 %v6468_v33  ;;  %v6496_v32 = vld [vmem:[#allocation12_spill] sm:$0xff] }
 0x2a0   :  { %1287 = vmatprep.subr.bf16.mxu0 %v6469_v35  ;;  %1328 = vmatprep.subr.bf16.mxu1 %v6470_v36  ;;  %v6497_v36 = vld [vmem:[#allocation13_spill] sm:$0xff] }
 0x2a3   :  { %1288 = vmatpush1.bf16.msra.mxu0 %v6471_v37  ;;  %1329 = vmatpush1.bf16.msra.mxu1 %v6472_v38 }
 0x2a4   :  { %1289 = vmatprep.subr.bf16.mxu0 %v6473_v40  ;;  %1330 = vmatprep.subr.bf16.mxu1 %v6474_v41 }
 0x2a7   :  { %1290 = vmatpush1.bf16.msra.mxu0 %v6475_v42  ;;  %1331 = vmatpush1.bf16.msra.mxu1 %v6476_v43 }
 0x2a8   :  { %1291 = vmatprep.subr.bf16.mxu0 %v6477_v44  ;;  %1332 = vmatprep.subr.bf16.mxu1 %v6478_v45 }
 0x2ab   :  { %1292 = vmatpush1.bf16.msra.mxu0 %v6479_v46  ;;  %1333 = vmatpush1.bf16.msra.mxu1 %v6480_v47 }
 0x2ac   :  { %1293 = vmatprep.subr.bf16.mxu0 %v6481_v48  ;;  %1334 = vmatprep.subr.bf16.mxu1 %v6482_v49 }
 0x2af   :  { %1294 = vmatpush1.bf16.msra.mxu0 %v6483_v50  ;;  %1335 = vmatpush1.bf16.msra.mxu1 %v6484_v4 }
 0x2b0   :  { %1295 = vmatprep.subr.bf16.mxu0 %v6485_v5  ;;  %1336 = vmatprep.subr.bf16.mxu1 %v6486_v6 }
 0x2b3   :  { %1296 = vmatpush1.bf16.msra.mxu0 %v6487_v7  ;;  %1337 = vmatpush1.bf16.msra.mxu1 %v6488_v8 }
 0x2b4   :  { %1297 = vmatprep.subr.bf16.mxu0 %v6489_v9  ;;  %1338 = vmatprep.subr.bf16.mxu1 %v6490_v10 }
 0x2b7   :  { %1298 = vmatpush1.bf16.msra.mxu0 %v6491_v11  ;;  %1339 = vmatpush1.bf16.msra.mxu1 %v6492_v12 }
 0x2b8   :  { %1375 = vmatprep.subr.bf16.mxu0 %v4556_v13  ;;  %1416 = vmatprep.subr.bf16.mxu1 %v4562_v14 }
 0x32d   :  { %v1055_v15 = vpop.f32.mrb[12].mxu0  ;;  %v1096_v16 = vpop.f32.mrb[12].mxu1 }
 0x32e   :  { %v1056_v18 = vadd.f32 %v1055_v15, %v6495_v17  ;;  %v1057_v19 = vpop.f32.mrb[13].mxu0  ;;  %v1098_v20 = vpop.f32.mrb[13].mxu1  ;;  %v1097_v37 = vadd.f32 %v1096_v16, %v6497_v36 }
 0x32f   :  { %v1058_v21 = vadd.f32 %v1057_v19, %v4313_v39  ;;  %v1059_v22 = vpop.f32.mrb[14].mxu0  ;;  %v1100_v52 = vpop.f32.mrb[14].mxu1  ;;  %v1099_v33 = vadd.f32 %v1098_v20, %v6496_v32 }
 0x330   :  { %v2855_v28 = vmul.f32 -1.442695, %v1056_v18  ;;  %v1060_v29 = vpop.f32.mrb[15].mxu0  ;;  %v1101_v30 = vpop.f32.mrb[15].mxu1 }
 0x331   :  { %v2856_v31 = vmul.f32 -1.442695, %v1058_v21  ;;  %v2857_v35 = vmul.f32 -1.442695, %v1099_v33 }
 0x332   :  { %3143 = vpow2.f32 %v2855_v28 }
 0x333   :  { %3145 = vpow2.f32 %v2856_v31 }
 0x334   :  { %3147 = vpow2.f32 %v2857_v35 }
 0x335   :  { %3149 = vtanh.f32 %v1097_v37 }
 0x33c   :  { %v3144_v38 = vpop.eup %3143 }
 0x33d   :  { %v3146_v40 = vpop.eup %3145  ;;  %v1106_v41 = vadd.f32 1.0, %v3144_v38 }
 0x33e   :  { %v1112_v42 = vadd.f32 1.0, %v3146_v40  ;;  %v3148_v43 = vpop.eup %3147 }
 0x33f   :  { %3151 = vrcp.f32 %v1106_v41  ;;  %v3150_v44 = vpop.eup %3149  ;;  %v1119_v48 = vadd.f32 1.0, %v3148_v43 }
 0x340   :  { %3153 = vrcp.f32 %v1112_v42 }
 0x341   :  { %3155 = vrcp.f32 %v1119_v48 }
 0x349   :  { %v3152_v45 = vpop.eup %3151 }
 0x34a   :  { %v3154_v46 = vpop.eup %3153  ;;  %v1123_v47 = vmul.f32 %v3152_v45, %v3150_v44 }
 0x34b   :  { %v1122_v49 = vmul.f32 %v3154_v46, %v4325_v34  ;;  %v2858_v34 = vld [vmem:[%s6035_s0 + $0x10] sm:$0xff]  ;;  %v3156_v52 = vpop.eup %3155 }
 0x34d   :  { %v1163_v50 = vpop.f32.mrb[16].mxu0  ;;  %v1204_v4 = vpop.f32.mrb[16].mxu1  ;;  %v4570_v5 = vadd.f32 %v1123_v47, %v1122_v49 }
 0x34e   :  { %v1165_v6 = vpop.f32.mrb[17].mxu0  ;;  %v1206_v7 = vpop.f32.mrb[17].mxu1 }
 0x34f   :  { %v1215_v8 = vcombine.low %v1163_v50, %v1165_v6  ;;  %v1216_v9 = vcombine.low %v1204_v4, %v1206_v7  ;;  %v1167_v10 = vpop.f32.mrb[18].mxu0  ;;  %v1208_v11 = vpop.f32.mrb[18].mxu1  ;;  %3157 = vtanh.f32 %v4570_v5 }
 0x350   :  { %v1168_v12 = vpop.f32.mrb[19].mxu0  ;;  %v1209_v15 = vpop.f32.mrb[19].mxu1  ;;  %v6500_v10 = vld [vmem:[#allocation16_spill] sm:$0xff]  ;;  %v6501_v11 = vld [vmem:[#allocation17_spill] sm:$0xff] }
 0x351   :  { %v1223_v16 = vrot.slane %v1215_v8, %v4198_v2  ;;  %v1230_v18 = vrot.slane %v1216_v9, %v4198_v2  ;;  %v6499_v9 = vld [vmem:[#allocation15_spill] sm:$0xff]  ;;  %v6502_v12 = vld [vmem:[#allocation18_spill] sm:$0xff] }
 0x352   :  { %v6503_v15 = vld [vmem:[#allocation19_spill] sm:$0xff] }
 0x353   :  { %v1231_v19 = vcombine.low %v1223_v16, %v1230_v18  ;;  %v4611_v16 = vld [vmem:[%s6036_s1 + $0xc0] ss:$16 sps:$4 sm:$0xff]   ;;  %v4617_v18 = vld [vmem:[%s6036_s1 + $0xc8] ss:$16 sps:$4 sm:$0xff]  }
 0x355   :  { %v1233_v20 = vadd.f32 %v2858_v34, %v1231_v19  ;;  %v4623_v34 = vld [vmem:[%s6036_s1 + $0xe4] ss:$16 sps:$4 sm:$0xff]   ;;  %v4629_v19 = vld [vmem:[%s6036_s1 + $0xec] ss:$16 sps:$4 sm:$0xff]  }
 0x357   :  { %v2859_v21 = vmul.f32 -1.442695, %v1233_v20  ;;  %v1241_v22 = vrot.slane %v1233_v20, 2  ;;  %v1252_v33 = vrot.slane %v1233_v20, 6  ;;  %v1249_v38 = vrot.slane %v1233_v20, 4 }
 0x358   :  { %v4635_v20 = vld [vmem:[%s6036_s1 + $0xe0] ss:$16 sps:$4 sm:$0xff]  }
 0x359   :  { %v3158_v28 = vpop.eup %3157  ;;  %3159 = vpow2.f32 %v2859_v21  ;;  %v2860_v29 = vmul.f32 -1.442695, %v1241_v22  ;;  %v2861_v35 = vmul.f32 -1.442695, %v1252_v33  ;;  %v4641_v21 = vld [vmem:[%s6036_s1 + $0xe8] ss:$16 sps:$4 sm:$0xff]  }
 0x35a   :  { %v1126_v30 = vmul.f32 %v3158_v28, %v3156_v52  ;;  %v4647_v22 = vld [vmem:[%s6037_s2 + $0x4] ss:$16 sps:$4 sm:$0xff]   ;;  %v4653_v52 = vld [vmem:[%s6037_s2 + $0xc] ss:$16 sps:$4 sm:$0xff]   ;;  %v4659_v28 = vld [vmem:[%s6037_s2] ss:$16 sps:$4 sm:$0xff]  }
 0x35b   :  { %3161 = vpow2.f32 %v2860_v29  ;;  %v4665_v29 = vld [vmem:[%s6037_s2 + $0x8] ss:$16 sps:$4 sm:$0xff]   ;;  %v4683_v33 = vld [vmem:[%s6037_s2 + $0x20] ss:$16 sps:$4 sm:$0xff]  }
 0x35c   :  { %v1266_v31 = vpack.c.bf16 %v1126_v30, %v1126_v30  ;;  %3163 = vpow2.f32 %v2861_v35  ;;  %v4671_v30 = vld [vmem:[%s6037_s2 + $0x24] ss:$16 sps:$4 sm:$0xff]   ;;  %v4689_v35 = vld [vmem:[%s6037_s2 + $0x28] ss:$16 sps:$4 sm:$0xff]  }
 0x35e   :  { %1299 = vmatprep.mubr.bf16.mxu0 %v1266_v31  ;;  %1340 = vmatprep.mubr.bf16.mxu1 %v1266_v31  ;;  %v4677_v31 = vld [vmem:[%s6037_s2 + $0x2c] ss:$16 sps:$4 sm:$0xff]  }
 0x363   :  { %v3160_v37 = vpop.eup %3159 }
 0x364   :  { %v1237_v40 = vadd.f32 1.0, %v3160_v37  ;;  %v4695_v37 = vld [vmem:[%s6037_s2 + $0x44] ss:$16 sps:$4 sm:$0xff]  }
 0x365   :  { %v3162_v41 = vpop.eup %3161 }
 0x366   :  { %3165 = vrcp.f32 %v1237_v40  ;;  %v1246_v42 = vadd.f32 1.0, %v3162_v41  ;;  %v3164_v43 = vpop.eup %3163  ;;  %v4707_v40 = vld [vmem:[%s6037_s2 + $0x40] ss:$16 sps:$4 sm:$0xff]   ;;  %v4713_v41 = vld [vmem:[%s6037_s2 + $0x48] ss:$16 sps:$4 sm:$0xff]  }
 0x367   :  { %3167 = vtanh.f32 %v1249_v38  ;;  %v1257_v47 = vadd.f32 1.0, %v3164_v43  ;;  %v4701_v38 = vld [vmem:[%s6037_s2 + $0x4c] ss:$16 sps:$4 sm:$0xff]   ;;  %6505 = vst [vmem:[#allocation23_spill] sm:$0xff] %v4707_v40  ;;  %6506 = vst [vmem:[#allocation24_spill] sm:$0xff] %v4713_v41 }
 0x368   :  { %3169 = vrcp.f32 %v1246_v42  ;;  %6504 = vst [vmem:[#allocation22_spill] sm:$0xff] %v4701_v38  ;;  %v4719_v42 = vld [vmem:[%s6037_s2 + $0x64] ss:$16 sps:$4 sm:$0xff]   ;;  %v4725_v43 = vld [vmem:[%s6037_s2 + $0x6c] ss:$16 sps:$4 sm:$0xff]  }
 0x369   :  { %3171 = vrcp.f32 %v1257_v47  ;;  %6507 = vst [vmem:[#allocation25_spill] sm:$0xff] %v4719_v42  ;;  %6508 = vst [vmem:[#allocation26_spill] sm:$0xff] %v4725_v43  ;;  %v4749_v47 = vld [vmem:[%s6037_s2 + $0x8c] ss:$16 sps:$4 sm:$0xff]  }
 0x36a   :  { %6512 = vst [vmem:[#allocation9_spill] sm:$0xff] %v4749_v47 }
 0x370   :  { %v3166_v44 = vpop.eup %3165 }
 0x371   :  { %v3168_v45 = vpop.eup %3167 }
 0x372   :  { %v3170_v46 = vpop.eup %3169  ;;  %v1261_v49 = vmul.f32 %v3168_v45, %v3166_v44  ;;  %v4731_v44 = vld [vmem:[%s6037_s2 + $0x60] ss:$16 sps:$4 sm:$0xff]   ;;  %v4737_v45 = vld [vmem:[%s6037_s2 + $0x68] ss:$16 sps:$4 sm:$0xff]  }
 0x373   :  { %v1260_v48 = vmul.f32 %v3170_v46, %v4334_v62  ;;  %v3172_v4 = vpop.eup %3171  ;;  %v6498_v62 = vld [vmem:[#allocation14_spill] sm:$0xff]  ;;  %6509 = vst [vmem:[#allocation27_spill] sm:$0xff] %v4731_v44  ;;  %6510 = vst [vmem:[#allocation28_spill] sm:$0xff] %v4737_v45 }
 0x374   :  { %v4743_v46 = vld [vmem:[%s6037_s2 + $0x84] ss:$16 sps:$4 sm:$0xff]  }
 0x375   :  { %v4579_v50 = vadd.f32 %v1261_v49, %v1260_v48  ;;  %6511 = vst [vmem:[#allocation29_spill] sm:$0xff] %v4743_v46  ;;  %v4755_v48 = vld [vmem:[%s6037_s2 + $0x80] ss:$16 sps:$4 sm:$0xff]   ;;  %v4761_v49 = vld [vmem:[%s6037_s2 + $0x88] ss:$16 sps:$4 sm:$0xff]  }
 0x376   :  { %6513 = vst [vmem:[#allocation10_spill] sm:$0xff] %v4755_v48  ;;  %6514 = vst [vmem:[#allocation60_spill] sm:$0xff] %v4761_v49 }
 0x377   :  { %3173 = vtanh.f32 %v4579_v50 }
 0x381   :  { %v3174_v6 = vpop.eup %3173 }
 0x382   :  { %v1264_v7 = vmul.f32 %v3174_v6, %v3172_v4  ;;  %v4767_v4 = vld [vmem:[%s6037_s2 + $0xa4] ss:$16 sps:$4 sm:$0xff]   ;;  %v4773_v6 = vld [vmem:[%s6037_s2 + $0xac] ss:$16 sps:$4 sm:$0xff]  }
 0x383   :  { %6515 = vst [vmem:[#allocation30_spill] sm:$0xff] %v4767_v4  ;;  %6516 = vst [vmem:[#allocation31_spill] sm:$0xff] %v4773_v6 }
 0x384   :  { %v1265_v8 = vpack.c.bf16 %v1264_v7, %v1264_v7  ;;  %v4779_v7 = vld [vmem:[%s6037_s2 + $0xa0] ss:$16 sps:$4 sm:$0xff]  }
 0x385   :  { %6517 = vst [vmem:[#allocation32_spill] sm:$0xff] %v4779_v7 }
 0x386   :  { %1300 = vmatmul.mubr.bf16.vlgmr.msra.gmra.mrb[20].mxu0 %v1265_v8  ;;  %1341 = vmatmul.mubr.bf16.vlgmr.msra.gmra.mrb[20].mxu1 %v1265_v8 }
 0x387   :  { %1376 = vmatpush1.bf16.msra.mxu0 %v4340_v23  ;;  %1417 = vmatpush1.bf16.msra.mxu1 %v4346_v51 }
 0x388   :  { %1377 = vmatprep.subr.bf16.mxu0 %v4352_v61  ;;  %1418 = vmatprep.subr.bf16.mxu1 %v4358_v59 }
 0x389   :  { %1407 = vmatprep.mubr.bf16.mxu0 %v6401_v54  ;;  %1448 = vmatprep.mubr.bf16.mxu1 %v6401_v54 }
 0x38b   :  { %1378 = vmatpush1.bf16.msra.mxu0 %v4366_v60  ;;  %1419 = vmatpush1.bf16.msra.mxu1 %v4372_v58 }
 0x38c   :  { %1379 = vmatprep.subr.bf16.mxu0 %v4378_v53  ;;  %1420 = vmatprep.subr.bf16.mxu1 %v4384_v1 }
 0x38f   :  { %1380 = vmatpush1.bf16.msra.mxu0 %v4390_v26  ;;  %1421 = vmatpush1.bf16.msra.mxu1 %v4396_v27 }
 0x390   :  { %1381 = vmatprep.subr.bf16.mxu0 %v4402_v0  ;;  %1422 = vmatprep.subr.bf16.mxu1 %v4408_v55 }
 0x393   :  { %1382 = vmatpush1.bf16.msra.mxu0 %v4414_v25  ;;  %1423 = vmatpush1.bf16.msra.mxu1 %v4420_v3 }
 0x394   :  { %1383 = vmatprep.subr.bf16.mxu0 %v6498_v62  ;;  %1424 = vmatprep.subr.bf16.mxu1 %v6499_v9 }
 0x397   :  { %1384 = vmatpush1.bf16.msra.mxu0 %v6500_v10  ;;  %1425 = vmatpush1.bf16.msra.mxu1 %v6501_v11 }
 0x398   :  { %1385 = vmatprep.subr.bf16.mxu0 %v6502_v12  ;;  %1426 = vmatprep.subr.bf16.mxu1 %v6503_v15 }
 0x39b   :  { %1386 = vmatpush1.bf16.msra.mxu0 %v4462_v57  ;;  %1427 = vmatpush1.bf16.msra.mxu1 %v4468_v24 }
 0x39c   :  { %1387 = vmatprep.subr.bf16.mxu0 %v4474_v56  ;;  %1428 = vmatprep.subr.bf16.mxu1 %v4480_v63 }
 0x39f   :  { %1388 = vmatpush1.bf16.msra.mxu0 %v4611_v16  ;;  %1429 = vmatpush1.bf16.msra.mxu1 %v4617_v18 }
 0x3a0   :  { %1389 = vmatprep.subr.bf16.mxu0 %v4623_v34  ;;  %1430 = vmatprep.subr.bf16.mxu1 %v4629_v19 }
 0x3a3   :  { %1390 = vmatpush1.bf16.msra.mxu0 %v4635_v20  ;;  %1431 = vmatpush1.bf16.msra.mxu1 %v4641_v21 }
 0x3a4   :  { %1513 = vmatprep.subr.bf16.mxu0 %v4647_v22  ;;  %1554 = vmatprep.subr.bf16.mxu1 %v4653_v52 }
 0x3a6   :  { %1408 = vmatmul.mubr.bf16.vlgmr.msra.gmra.mrb[24].mxu0 %v1265_v8  ;;  %1449 = vmatmul.mubr.bf16.vlgmr.msra.gmra.mrb[24].mxu1 %v1265_v8  ;;  %v4785_v8 = vld [vmem:[%s6037_s2 + $0xa8] ss:$16 sps:$4 sm:$0xff]  }
 0x3a7   :  { %1514 = vmatpush1.bf16.msra.mxu0 %v4659_v28  ;;  %1555 = vmatpush1.bf16.msra.mxu1 %v4665_v29  ;;  %6518 = vst [vmem:[#allocation33_spill] sm:$0xff] %v4785_v8 }
 0x3a8   :  { %1515 = vmatprep.subr.bf16.mxu0 %v4671_v30  ;;  %1556 = vmatprep.subr.bf16.mxu1 %v4677_v31 }
 0x3ab   :  { %1516 = vmatpush1.bf16.msra.mxu0 %v4683_v33  ;;  %1557 = vmatpush1.bf16.msra.mxu1 %v4689_v35 }
 0x3ac   :  { %1517 = vmatprep.subr.bf16.mxu0 %v4695_v37  ;;  %1558 = vmatprep.subr.bf16.mxu1 %v4701_v38 }
 0x3af   :  { %1518 = vmatpush1.bf16.msra.mxu0 %v4707_v40  ;;  %1559 = vmatpush1.bf16.msra.mxu1 %v4713_v41 }
 0x3b0   :  { %1519 = vmatprep.subr.bf16.mxu0 %v4719_v42  ;;  %1560 = vmatprep.subr.bf16.mxu1 %v4725_v43 }
 0x3b3   :  { %1520 = vmatpush1.bf16.msra.mxu0 %v4731_v44  ;;  %1561 = vmatpush1.bf16.msra.mxu1 %v4737_v45 }
 0x3b4   :  { %1521 = vmatprep.subr.bf16.mxu0 %v4743_v46  ;;  %1562 = vmatprep.subr.bf16.mxu1 %v4749_v47 }
 0x3b7   :  { %1522 = vmatpush1.bf16.msra.mxu0 %v4755_v48  ;;  %1563 = vmatpush1.bf16.msra.mxu1 %v4761_v49 }
 0x3b8   :  { %1523 = vmatprep.subr.bf16.mxu0 %v4767_v4  ;;  %1564 = vmatprep.subr.bf16.mxu1 %v4773_v6  ;;  %v4791_v4 = vld [vmem:[%s6037_s2 + $0xc4] ss:$16 sps:$4 sm:$0xff]   ;;  %v4797_v6 = vld [vmem:[%s6037_s2 + $0xcc] ss:$16 sps:$4 sm:$0xff]  }
 0x3b9   :  { %6519 = vst [vmem:[#allocation34_spill] sm:$0xff] %v4791_v4  ;;  %6520 = vst [vmem:[#allocation35_spill] sm:$0xff] %v4797_v6 }
 0x3bb   :  { %1524 = vmatpush1.bf16.msra.mxu0 %v4779_v7  ;;  %1565 = vmatpush1.bf16.msra.mxu1 %v4785_v8  ;;  %v4803_v7 = vld [vmem:[%s6037_s2 + $0xc0] ss:$16 sps:$4 sm:$0xff]   ;;  %v4809_v8 = vld [vmem:[%s6037_s2 + $0xc8] ss:$16 sps:$4 sm:$0xff]  }
 0x3bc   :  { %1525 = vmatprep.subr.bf16.mxu0 %v4791_v4  ;;  %1566 = vmatprep.subr.bf16.mxu1 %v4797_v6  ;;  %6521 = vst [vmem:[#allocation36_spill] sm:$0xff] %v4803_v7  ;;  %6522 = vst [vmem:[#allocation37_spill] sm:$0xff] %v4809_v8  ;;  %v4815_v4 = vld [vmem:[%s6037_s2 + $0xe4] ss:$16 sps:$4 sm:$0xff]   ;;  %v4821_v6 = vld [vmem:[%s6037_s2 + $0xec] ss:$16 sps:$4 sm:$0xff]  }
 0x3bd   :  { %6523 = vst [vmem:[#allocation38_spill] sm:$0xff] %v4815_v4  ;;  %6524 = vst [vmem:[#allocation39_spill] sm:$0xff] %v4821_v6 }
 0x3bf   :  { %1526 = vmatpush1.bf16.msra.mxu0 %v4803_v7  ;;  %1567 = vmatpush1.bf16.msra.mxu1 %v4809_v8  ;;  %v4827_v7 = vld [vmem:[%s6037_s2 + $0xe0] ss:$16 sps:$4 sm:$0xff]   ;;  %v4833_v8 = vld [vmem:[%s6037_s2 + $0xe8] ss:$16 sps:$4 sm:$0xff]  }
 0x3c0   :  { %1527 = vmatprep.subr.bf16.mxu0 %v4815_v4  ;;  %1568 = vmatprep.subr.bf16.mxu1 %v4821_v6  ;;  %6525 = vst [vmem:[#allocation40_spill] sm:$0xff] %v4827_v7  ;;  %6526 = vst [vmem:[#allocation41_spill] sm:$0xff] %v4833_v8  ;;  %v4839_v4 = vld [vmem:[%s6037_s2 + $0x104] ss:$16 sps:$4 sm:$0xff]   ;;  %v4845_v6 = vld [vmem:[%s6037_s2 + $0x10c] ss:$16 sps:$4 sm:$0xff]  }
 0x3c1   :  { %6527 = vst [vmem:[#allocation42_spill] sm:$0xff] %v4839_v4  ;;  %6528 = vst [vmem:[#allocation43_spill] sm:$0xff] %v4845_v6 }
 0x3c3   :  { %1528 = vmatpush1.bf16.msra.mxu0 %v4827_v7  ;;  %1569 = vmatpush1.bf16.msra.mxu1 %v4833_v8  ;;  %v4851_v7 = vld [vmem:[%s6037_s2 + $0x100] ss:$16 sps:$4 sm:$0xff]   ;;  %v4857_v8 = vld [vmem:[%s6037_s2 + $0x108] ss:$16 sps:$4 sm:$0xff]  }
 0x3c4   :  { %1529 = vmatprep.subr.bf16.mxu0 %v4839_v4  ;;  %1570 = vmatprep.subr.bf16.mxu1 %v4845_v6  ;;  %6529 = vst [vmem:[#allocation44_spill] sm:$0xff] %v4851_v7  ;;  %6530 = vst [vmem:[#allocation45_spill] sm:$0xff] %v4857_v8  ;;  %v4863_v4 = vld [vmem:[%s6037_s2 + $0x124] ss:$16 sps:$4 sm:$0xff]   ;;  %v4869_v6 = vld [vmem:[%s6037_s2 + $0x12c] ss:$16 sps:$4 sm:$0xff]  }
 0x3c5   :  { %6531 = vst [vmem:[#allocation46_spill] sm:$0xff] %v4863_v4  ;;  %6532 = vst [vmem:[#allocation47_spill] sm:$0xff] %v4869_v6 }
 0x3c7   :  { %1530 = vmatpush1.bf16.msra.mxu0 %v4851_v7  ;;  %1571 = vmatpush1.bf16.msra.mxu1 %v4857_v8  ;;  %v4875_v7 = vld [vmem:[%s6037_s2 + $0x120] ss:$16 sps:$4 sm:$0xff]   ;;  %v4881_v8 = vld [vmem:[%s6037_s2 + $0x128] ss:$16 sps:$4 sm:$0xff]  }
 0x3c8   :  { %1531 = vmatprep.subr.bf16.mxu0 %v4863_v4  ;;  %1572 = vmatprep.subr.bf16.mxu1 %v4869_v6  ;;  %6533 = vst [vmem:[#allocation48_spill] sm:$0xff] %v4875_v7  ;;  %6534 = vst [vmem:[#allocation49_spill] sm:$0xff] %v4881_v8  ;;  %v4887_v4 = vld [vmem:[%s6037_s2 + $0x144] ss:$16 sps:$4 sm:$0xff]   ;;  %v4893_v6 = vld [vmem:[%s6037_s2 + $0x14c] ss:$16 sps:$4 sm:$0xff]  }
 0x3c9   :  { %6535 = vst [vmem:[#allocation50_spill] sm:$0xff] %v4887_v4  ;;  %6536 = vst [vmem:[#allocation51_spill] sm:$0xff] %v4893_v6 }
 0x3cb   :  { %1532 = vmatpush1.bf16.msra.mxu0 %v4875_v7  ;;  %1573 = vmatpush1.bf16.msra.mxu1 %v4881_v8  ;;  %v4899_v7 = vld [vmem:[%s6037_s2 + $0x140] ss:$16 sps:$4 sm:$0xff]   ;;  %v4905_v8 = vld [vmem:[%s6037_s2 + $0x148] ss:$16 sps:$4 sm:$0xff]  }
 0x3cc   :  { %1533 = vmatprep.subr.bf16.mxu0 %v4887_v4  ;;  %1574 = vmatprep.subr.bf16.mxu1 %v4893_v6  ;;  %6537 = vst [vmem:[#allocation52_spill] sm:$0xff] %v4899_v7  ;;  %6538 = vst [vmem:[#allocation53_spill] sm:$0xff] %v4905_v8  ;;  %v4911_v4 = vld [vmem:[%s6037_s2 + $0x164] ss:$16 sps:$4 sm:$0xff]   ;;  %v4917_v6 = vld [vmem:[%s6037_s2 + $0x16c] ss:$16 sps:$4 sm:$0xff]  }
 0x3cd   :  { %6539 = vst [vmem:[#allocation54_spill] sm:$0xff] %v4911_v4  ;;  %6540 = vst [vmem:[#allocation55_spill] sm:$0xff] %v4917_v6 }
 0x3cf   :  { %1534 = vmatpush1.bf16.msra.mxu0 %v4899_v7  ;;  %1575 = vmatpush1.bf16.msra.mxu1 %v4905_v8  ;;  %v4923_v7 = vld [vmem:[%s6037_s2 + $0x160] ss:$16 sps:$4 sm:$0xff]   ;;  %v4929_v8 = vld [vmem:[%s6037_s2 + $0x168] ss:$16 sps:$4 sm:$0xff]  }
 0x3d0   :  { %1535 = vmatprep.subr.bf16.mxu0 %v4911_v4  ;;  %1576 = vmatprep.subr.bf16.mxu1 %v4917_v6  ;;  %6541 = vst [vmem:[#allocation56_spill] sm:$0xff] %v4923_v7  ;;  %6542 = vst [vmem:[#allocation57_spill] sm:$0xff] %v4929_v8  ;;  %v4935_v4 = vld [vmem:[%s6037_s2 + $0x184] ss:$16 sps:$4 sm:$0xff]   ;;  %v4941_v6 = vld [vmem:[%s6037_s2 + $0x18c] ss:$16 sps:$4 sm:$0xff]  }
 0x3d1   :  { %6543 = vst [vmem:[#allocation58_spill] sm:$0xff] %v4935_v4  ;;  %6544 = vst [vmem:[#allocation59_spill] sm:$0xff] %v4941_v6 }
 0x3d3   :  { %1536 = vmatpush1.bf16.msra.mxu0 %v4923_v7  ;;  %1577 = vmatpush1.bf16.msra.mxu1 %v4929_v8  ;;  %v4947_v7 = vld [vmem:[%s6037_s2 + $0x180] ss:$16 sps:$4 sm:$0xff]   ;;  %v4953_v8 = vld [vmem:[%s6037_s2 + $0x188] ss:$16 sps:$4 sm:$0xff]  }
 0x3d4   :  { %1537 = vmatprep.subr.bf16.mxu0 %v4935_v4  ;;  %1578 = vmatprep.subr.bf16.mxu1 %v4941_v6  ;;  %6545 = vst [vmem:[#allocation12_spill] sm:$0xff] %v4947_v7  ;;  %6546 = vst [vmem:[#allocation13_spill] sm:$0xff] %v4953_v8  ;;  %v4959_v4 = vld [vmem:[%s6037_s2 + $0x1a4] ss:$16 sps:$4 sm:$0xff]   ;;  %v4965_v6 = vld [vmem:[%s6037_s2 + $0x1ac] ss:$16 sps:$4 sm:$0xff]  }
 0x3d5   :  { %6547 = vst [vmem:[#allocation14_spill] sm:$0xff] %v4959_v4  ;;  %6548 = vst [vmem:[#allocation15_spill] sm:$0xff] %v4965_v6 }
 0x3d7   :  { %1538 = vmatpush1.bf16.msra.mxu0 %v4947_v7  ;;  %1579 = vmatpush1.bf16.msra.mxu1 %v4953_v8  ;;  %v4971_v7 = vld [vmem:[%s6037_s2 + $0x1a0] ss:$16 sps:$4 sm:$0xff]   ;;  %v4977_v8 = vld [vmem:[%s6037_s2 + $0x1a8] ss:$16 sps:$4 sm:$0xff]  }
 0x3d8   :  { %1539 = vmatprep.subr.bf16.mxu0 %v4959_v4  ;;  %1580 = vmatprep.subr.bf16.mxu1 %v4965_v6  ;;  %6549 = vst [vmem:[#allocation16_spill] sm:$0xff] %v4971_v7  ;;  %6550 = vst [vmem:[#allocation17_spill] sm:$0xff] %v4977_v8  ;;  %v4983_v4 = vld [vmem:[%s6037_s2 + $0x1c4] ss:$16 sps:$4 sm:$0xff]   ;;  %v4989_v6 = vld [vmem:[%s6037_s2 + $0x1cc] ss:$16 sps:$4 sm:$0xff]  }
 0x3d9   :  { %6551 = vst [vmem:[#allocation18_spill] sm:$0xff] %v4983_v4  ;;  %6552 = vst [vmem:[#allocation19_spill] sm:$0xff] %v4989_v6 }
 0x3db   :  { %1540 = vmatpush1.bf16.msra.mxu0 %v4971_v7  ;;  %1581 = vmatpush1.bf16.msra.mxu1 %v4977_v8  ;;  %v4995_v7 = vld [vmem:[%s6037_s2 + $0x1c0] ss:$16 sps:$4 sm:$0xff]   ;;  %v5001_v8 = vld [vmem:[%s6037_s2 + $0x1c8] ss:$16 sps:$4 sm:$0xff]  }
 0x3dc   :  { %1541 = vmatprep.subr.bf16.mxu0 %v4983_v4  ;;  %1582 = vmatprep.subr.bf16.mxu1 %v4989_v6  ;;  %6553 = vst [vmem:[#allocation61_spill] sm:$0xff] %v4995_v7  ;;  %6554 = vst [vmem:[#allocation62_spill] sm:$0xff] %v5001_v8  ;;  %v5007_v4 = vld [vmem:[%s6037_s2 + $0x1e4] ss:$16 sps:$4 sm:$0xff]   ;;  %v5013_v6 = vld [vmem:[%s6037_s2 + $0x1ec] ss:$16 sps:$4 sm:$0xff]  }
 0x3dd   :  { %6555 = vst [vmem:[#allocation63_spill] sm:$0xff] %v5007_v4  ;;  %6556 = vst [vmem:[#allocation64_spill] sm:$0xff] %v5013_v6 }
 0x3df   :  { %1542 = vmatpush1.bf16.msra.mxu0 %v4995_v7  ;;  %1583 = vmatpush1.bf16.msra.mxu1 %v5001_v8  ;;  %v5019_v7 = vld [vmem:[%s6037_s2 + $0x1e0] ss:$16 sps:$4 sm:$0xff]   ;;  %v5025_v8 = vld [vmem:[%s6037_s2 + $0x1e8] ss:$16 sps:$4 sm:$0xff]  }
 0x3e0   :  { %1543 = vmatprep.subr.bf16.mxu0 %v5007_v4  ;;  %1584 = vmatprep.subr.bf16.mxu1 %v5013_v6  ;;  %6557 = vst [vmem:[#allocation65_spill] sm:$0xff] %v5019_v7  ;;  %6558 = vst [vmem:[#allocation66_spill] sm:$0xff] %v5025_v8 }
 0x3e3   :  { %1544 = vmatpush1.bf16.msra.mxu0 %v5019_v7  ;;  %1585 = vmatpush1.bf16.msra.mxu1 %v5025_v8 }
 0x3e4   :  { %1621 = vmatprep.subr.bf16.mxu0 %v4556_v13  ;;  %1662 = vmatprep.subr.bf16.mxu1 %v4562_v14 }
 0x459   :  { %v1301_v4 = vpop.f32.mrb[20].mxu0  ;;  %v1342_v6 = vpop.f32.mrb[20].mxu1 }
 0x45a   :  { %v1302_v49 = vadd.f32 %v1301_v4, %v6495_v17  ;;  %v1303_v48 = vpop.f32.mrb[21].mxu0  ;;  %v1344_v47 = vpop.f32.mrb[21].mxu1  ;;  %v1343_v14 = vadd.f32 %v1342_v6, %v6497_v36 }
 0x45b   :  { %v1304_v46 = vadd.f32 %v1303_v48, %v4313_v39  ;;  %v1305_v7 = vpop.f32.mrb[22].mxu0  ;;  %v1346_v45 = vpop.f32.mrb[22].mxu1  ;;  %v1345_v13 = vadd.f32 %v1344_v47, %v6496_v32 }
 0x45c   :  { %v2862_v44 = vmul.f32 -1.442695, %v1302_v49  ;;  %v1306_v43 = vpop.f32.mrb[23].mxu0  ;;  %v1347_v42 = vpop.f32.mrb[23].mxu1 }
 0x45d   :  { %v2863_v41 = vmul.f32 -1.442695, %v1304_v46  ;;  %v2864_v8 = vmul.f32 -1.442695, %v1345_v13 }
 0x45e   :  { %3175 = vpow2.f32 %v2862_v44 }
 0x45f   :  { %3177 = vpow2.f32 %v2863_v41 }
 0x460   :  { %3179 = vpow2.f32 %v2864_v8 }
 0x461   :  { %3181 = vtanh.f32 %v1343_v14 }
 0x468   :  { %v3176_v40 = vpop.eup %3175 }
 0x469   :  { %v3178_v38 = vpop.eup %3177  ;;  %v1352_v4 = vadd.f32 1.0, %v3176_v40 }
 0x46a   :  { %v1358_v17 = vadd.f32 1.0, %v3178_v38  ;;  %v3180_v45 = vpop.eup %3179 }
 0x46b   :  { %3183 = vrcp.f32 %v1352_v4  ;;  %v3182_v48 = vpop.eup %3181  ;;  %v1365_v44 = vadd.f32 1.0, %v3180_v45 }
 0x46c   :  { %3185 = vrcp.f32 %v1358_v17 }
 0x46d   :  { %3187 = vrcp.f32 %v1365_v44 }
 0x475   :  { %v3184_v43 = vpop.eup %3183 }
 0x476   :  { %v3186_v42 = vpop.eup %3185  ;;  %v1369_v46 = vmul.f32 %v3184_v43, %v3182_v48 }
 0x477   :  { %v1368_v41 = vmul.f32 %v3186_v42, %v4570_v5  ;;  %v2865_v5 = vld [vmem:[%s6035_s0 + $0x18] sm:$0xff] }
 0x479   :  { %v1409_v47 = vpop.f32.mrb[24].mxu0  ;;  %v1450_v13 = vpop.f32.mrb[24].mxu1  ;;  %v5035_v49 = vadd.f32 %v1369_v46, %v1368_v41 }
 0x47a   :  { %v1411_v6 = vpop.f32.mrb[25].mxu0  ;;  %v1452_v40 = vpop.f32.mrb[25].mxu1 }
 0x47b   :  { %v1461_v7 = vcombine.low %v1409_v47, %v1411_v6  ;;  %v1462_v14 = vcombine.low %v1450_v13, %v1452_v40  ;;  %v1413_v38 = vpop.f32.mrb[26].mxu0  ;;  %v1454_v8 = vpop.f32.mrb[26].mxu1  ;;  %3189 = vtanh.f32 %v5035_v49 }
 0x47c   :  { %v1414_v17 = vpop.f32.mrb[27].mxu0  ;;  %v1455_v4 = vpop.f32.mrb[27].mxu1 }
 0x47d   :  { %v1469_v48 = vrot.slane %v1461_v7, %v4198_v2  ;;  %v1476_v45 = vrot.slane %v1462_v14, %v4198_v2  ;;  %v3188_v41 = vpop.eup %3187 }
 0x47f   :  { %v1477_v43 = vcombine.low %v1469_v48, %v1476_v45 }
 0x481   :  { %v1479_v42 = vadd.f32 %v2865_v5, %v1477_v43 }
 0x483   :  { %v2866_v46 = vmul.f32 -1.442695, %v1479_v42  ;;  %v1487_v44 = vrot.slane %v1479_v42, 2  ;;  %v1498_v38 = vrot.slane %v1479_v42, 6  ;;  %v1495_v8 = vrot.slane %v1479_v42, 4 }
 0x485   :  { %v3190_v47 = vpop.eup %3189  ;;  %3191 = vpow2.f32 %v2866_v46  ;;  %v2867_v13 = vmul.f32 -1.442695, %v1487_v44  ;;  %v2868_v7 = vmul.f32 -1.442695, %v1498_v38 }
 0x486   :  { %v1372_v6 = vmul.f32 %v3190_v47, %v3188_v41 }
 0x487   :  { %3193 = vpow2.f32 %v2867_v13 }
 0x488   :  { %v1512_v40 = vpack.c.bf16 %v1372_v6, %v1372_v6  ;;  %3195 = vpow2.f32 %v2868_v7  ;;  %v6584_v7 = vld [vmem:[#allocation44_spill] sm:$0xff] }
 0x48a   :  { %1545 = vmatprep.mubr.bf16.mxu0 %v1512_v40  ;;  %1586 = vmatprep.mubr.bf16.mxu1 %v1512_v40 }
 0x48f   :  { %v3192_v14 = vpop.eup %3191 }
 0x490   :  { %v1483_v17 = vadd.f32 1.0, %v3192_v14  ;;  %v6585_v14 = vld [vmem:[#allocation45_spill] sm:$0xff] }
 0x491   :  { %v3194_v4 = vpop.eup %3193 }
 0x492   :  { %3197 = vrcp.f32 %v1483_v17  ;;  %v1492_v48 = vadd.f32 1.0, %v3194_v4  ;;  %v3196_v45 = vpop.eup %3195  ;;  %v6587_v17 = vld [vmem:[#allocation47_spill] sm:$0xff]  ;;  %v6588_v4 = vld [vmem:[#allocation48_spill] sm:$0xff] }
 0x493   :  { %3199 = vtanh.f32 %v1495_v8  ;;  %v1503_v44 = vadd.f32 1.0, %v3196_v45  ;;  %v6586_v8 = vld [vmem:[#allocation46_spill] sm:$0xff] }
 0x494   :  { %3201 = vrcp.f32 %v1492_v48  ;;  %v6589_v48 = vld [vmem:[#allocation49_spill] sm:$0xff]  ;;  %v6590_v45 = vld [vmem:[#allocation50_spill] sm:$0xff] }
 0x495   :  { %3203 = vrcp.f32 %v1503_v44  ;;  %v6594_v44 = vld [vmem:[#allocation54_spill] sm:$0xff] }
 0x49c   :  { %v3198_v5 = vpop.eup %3197 }
 0x49d   :  { %v3200_v43 = vpop.eup %3199 }
 0x49e   :  { %v3202_v46 = vpop.eup %3201  ;;  %v1507_v47 = vmul.f32 %v3200_v43, %v3198_v5  ;;  %v6591_v5 = vld [vmem:[#allocation51_spill] sm:$0xff]  ;;  %v6592_v43 = vld [vmem:[#allocation52_spill] sm:$0xff] }
 0x49f   :  { %v1506_v41 = vmul.f32 %v3202_v46, %v4579_v50  ;;  %v3204_v42 = vpop.eup %3203  ;;  %v6577_v50 = vld [vmem:[#allocation37_spill] sm:$0xff] }
 0x4a0   :  { %v6593_v46 = vld [vmem:[#allocation53_spill] sm:$0xff] }
 0x4a1   :  { %v5044_v13 = vadd.f32 %v1507_v47, %v1506_v41  ;;  %v6595_v41 = vld [vmem:[#allocation55_spill] sm:$0xff]  ;;  %v6596_v47 = vld [vmem:[#allocation56_spill] sm:$0xff] }
 0x4a3   :  { %3205 = vtanh.f32 %v5044_v13 }
 0x4ad   :  { %v3206_v6 = vpop.eup %3205 }
 0x4ae   :  { %v1510_v40 = vmul.f32 %v3206_v6, %v3204_v42  ;;  %v6597_v42 = vld [vmem:[#allocation57_spill] sm:$0xff]  ;;  %v6598_v6 = vld [vmem:[#allocation58_spill] sm:$0xff] }
 0x4b0   :  { %v1511_v38 = vpack.c.bf16 %v1510_v40, %v1510_v40  ;;  %v6599_v40 = vld [vmem:[#allocation59_spill] sm:$0xff] }
 0x4b2   :  { %1546 = vmatmul.mubr.bf16.vlgmr.msra.gmra.mrb[28].mxu0 %v1511_v38  ;;  %1587 = vmatmul.mubr.bf16.vlgmr.msra.gmra.mrb[28].mxu1 %v1511_v38 }
 0x4b3   :  { %1622 = vmatpush1.bf16.msra.mxu0 %v4340_v23  ;;  %1663 = vmatpush1.bf16.msra.mxu1 %v4346_v51  ;;  %v6559_v23 = vld [vmem:[#allocation22_spill] sm:$0xff]  ;;  %v6560_v51 = vld [vmem:[#allocation23_spill] sm:$0xff] }
 0x4b4   :  { %1623 = vmatprep.subr.bf16.mxu0 %v4352_v61  ;;  %1664 = vmatprep.subr.bf16.mxu1 %v4358_v59  ;;  %v6561_v61 = vld [vmem:[#allocation24_spill] sm:$0xff]  ;;  %v6562_v59 = vld [vmem:[#allocation25_spill] sm:$0xff] }
 0x4b5   :  { %1653 = vmatprep.mubr.bf16.mxu0 %v6401_v54  ;;  %1694 = vmatprep.mubr.bf16.mxu1 %v6401_v54 }
 0x4b7   :  { %1624 = vmatpush1.bf16.msra.mxu0 %v4366_v60  ;;  %1665 = vmatpush1.bf16.msra.mxu1 %v4372_v58  ;;  %v6563_v60 = vld [vmem:[#allocation26_spill] sm:$0xff]  ;;  %v6564_v58 = vld [vmem:[#allocation27_spill] sm:$0xff] }
 0x4b8   :  { %1625 = vmatprep.subr.bf16.mxu0 %v4378_v53  ;;  %1666 = vmatprep.subr.bf16.mxu1 %v4384_v1  ;;  %v6565_v53 = vld [vmem:[#allocation28_spill] sm:$0xff]  ;;  %v6566_v1 = vld [vmem:[#allocation29_spill] sm:$0xff] }
 0x4bb   :  { %1626 = vmatpush1.bf16.msra.mxu0 %v4390_v26  ;;  %1667 = vmatpush1.bf16.msra.mxu1 %v4396_v27  ;;  %v6567_v26 = vld [vmem:[#allocation9_spill] sm:$0xff]  ;;  %v6568_v27 = vld [vmem:[#allocation10_spill] sm:$0xff] }
 0x4bc   :  { %1627 = vmatprep.subr.bf16.mxu0 %v4402_v0  ;;  %1668 = vmatprep.subr.bf16.mxu1 %v4408_v55  ;;  %v6569_v0 = vld [vmem:[#allocation60_spill] sm:$0xff]  ;;  %v6570_v55 = vld [vmem:[#allocation30_spill] sm:$0xff] }
 0x4bf   :  { %1628 = vmatpush1.bf16.msra.mxu0 %v4414_v25  ;;  %1669 = vmatpush1.bf16.msra.mxu1 %v4420_v3  ;;  %v6571_v25 = vld [vmem:[#allocation31_spill] sm:$0xff]  ;;  %v6572_v3 = vld [vmem:[#allocation32_spill] sm:$0xff] }
 0x4c0   :  { %1629 = vmatprep.subr.bf16.mxu0 %v6498_v62  ;;  %1670 = vmatprep.subr.bf16.mxu1 %v6499_v9  ;;  %v6578_v62 = vld [vmem:[#allocation38_spill] sm:$0xff]  ;;  %v6579_v9 = vld [vmem:[#allocation39_spill] sm:$0xff] }
 0x4c3   :  { %1630 = vmatpush1.bf16.msra.mxu0 %v6500_v10  ;;  %1671 = vmatpush1.bf16.msra.mxu1 %v6501_v11  ;;  %v6580_v10 = vld [vmem:[#allocation40_spill] sm:$0xff]  ;;  %v6581_v11 = vld [vmem:[#allocation41_spill] sm:$0xff] }
 0x4c4   :  { %1631 = vmatprep.subr.bf16.mxu0 %v6502_v12  ;;  %1672 = vmatprep.subr.bf16.mxu1 %v6503_v15  ;;  %v6582_v12 = vld [vmem:[#allocation42_spill] sm:$0xff]  ;;  %v6583_v15 = vld [vmem:[#allocation43_spill] sm:$0xff] }
 0x4c7   :  { %1632 = vmatpush1.bf16.msra.mxu0 %v4462_v57  ;;  %1673 = vmatpush1.bf16.msra.mxu1 %v4468_v24  ;;  %v6575_v57 = vld [vmem:[#allocation35_spill] sm:$0xff]  ;;  %v6576_v24 = vld [vmem:[#allocation36_spill] sm:$0xff] }
 0x4c8   :  { %1633 = vmatprep.subr.bf16.mxu0 %v4474_v56  ;;  %1674 = vmatprep.subr.bf16.mxu1 %v4480_v63  ;;  %v6573_v56 = vld [vmem:[#allocation33_spill] sm:$0xff]  ;;  %v6574_v63 = vld [vmem:[#allocation34_spill] sm:$0xff] }
 0x4cb   :  { %1634 = vmatpush1.bf16.msra.mxu0 %v4611_v16  ;;  %1675 = vmatpush1.bf16.msra.mxu1 %v4617_v18 }
 0x4cc   :  { %1635 = vmatprep.subr.bf16.mxu0 %v4623_v34  ;;  %1676 = vmatprep.subr.bf16.mxu1 %v4629_v19 }
 0x4cf   :  { %1636 = vmatpush1.bf16.msra.mxu0 %v4635_v20  ;;  %1677 = vmatpush1.bf16.msra.mxu1 %v4641_v21 }
 0x4d0   :  { %1759 = vmatprep.subr.bf16.mxu0 %v4647_v22  ;;  %1800 = vmatprep.subr.bf16.mxu1 %v4653_v52 }
 0x4d2   :  { %1654 = vmatmul.mubr.bf16.vlgmr.msra.gmra.mrb[32].mxu0 %v1511_v38  ;;  %1695 = vmatmul.mubr.bf16.vlgmr.msra.gmra.mrb[32].mxu1 %v1511_v38  ;;  %v6600_v38 = vld [vmem:[#allocation12_spill] sm:$0xff] }
 0x4d3   :  { %1760 = vmatpush1.bf16.msra.mxu0 %v4659_v28  ;;  %1801 = vmatpush1.bf16.msra.mxu1 %v4665_v29 }
 0x4d4   :  { %1761 = vmatprep.subr.bf16.mxu0 %v4671_v30  ;;  %1802 = vmatprep.subr.bf16.mxu1 %v4677_v31 }
 0x4d7   :  { %1762 = vmatpush1.bf16.msra.mxu0 %v4683_v33  ;;  %1803 = vmatpush1.bf16.msra.mxu1 %v4689_v35 }
 0x4d8   :  { %1763 = vmatprep.subr.bf16.mxu0 %v4695_v37  ;;  %1804 = vmatprep.subr.bf16.mxu1 %v6559_v23 }
 0x4db   :  { %1764 = vmatpush1.bf16.msra.mxu0 %v6560_v51  ;;  %1805 = vmatpush1.bf16.msra.mxu1 %v6561_v61 }
 0x4dc   :  { %1765 = vmatprep.subr.bf16.mxu0 %v6562_v59  ;;  %1806 = vmatprep.subr.bf16.mxu1 %v6563_v60 }
 0x4df   :  { %1766 = vmatpush1.bf16.msra.mxu0 %v6564_v58  ;;  %1807 = vmatpush1.bf16.msra.mxu1 %v6565_v53 }
 0x4e0   :  { %1767 = vmatprep.subr.bf16.mxu0 %v6566_v1  ;;  %1808 = vmatprep.subr.bf16.mxu1 %v6567_v26 }
 0x4e3   :  { %1768 = vmatpush1.bf16.msra.mxu0 %v6568_v27  ;;  %1809 = vmatpush1.bf16.msra.mxu1 %v6569_v0 }
 0x4e4   :  { %1769 = vmatprep.subr.bf16.mxu0 %v6570_v55  ;;  %1810 = vmatprep.subr.bf16.mxu1 %v6571_v25 }
 0x4e7   :  { %1770 = vmatpush1.bf16.msra.mxu0 %v6572_v3  ;;  %1811 = vmatpush1.bf16.msra.mxu1 %v6573_v56 }
 0x4e8   :  { %1771 = vmatprep.subr.bf16.mxu0 %v6574_v63  ;;  %1812 = vmatprep.subr.bf16.mxu1 %v6575_v57 }
 0x4eb   :  { %1772 = vmatpush1.bf16.msra.mxu0 %v6576_v24  ;;  %1813 = vmatpush1.bf16.msra.mxu1 %v6577_v50 }
 0x4ec   :  { %1773 = vmatprep.subr.bf16.mxu0 %v6578_v62  ;;  %1814 = vmatprep.subr.bf16.mxu1 %v6579_v9 }
 0x4ef   :  { %1774 = vmatpush1.bf16.msra.mxu0 %v6580_v10  ;;  %1815 = vmatpush1.bf16.msra.mxu1 %v6581_v11 }
 0x4f0   :  { %1775 = vmatprep.subr.bf16.mxu0 %v6582_v12  ;;  %1816 = vmatprep.subr.bf16.mxu1 %v6583_v15 }
 0x4f3   :  { %1776 = vmatpush1.bf16.msra.mxu0 %v6584_v7  ;;  %1817 = vmatpush1.bf16.msra.mxu1 %v6585_v14 }
 0x4f4   :  { %1777 = vmatprep.subr.bf16.mxu0 %v6586_v8  ;;  %1818 = vmatprep.subr.bf16.mxu1 %v6587_v17 }
 0x4f7   :  { %1778 = vmatpush1.bf16.msra.mxu0 %v6588_v4  ;;  %1819 = vmatpush1.bf16.msra.mxu1 %v6589_v48  ;;  %v6616_v48 = vld [vmem:[#allocation11_spill] sm:$0xff] }
 0x4f8   :  { %1779 = vmatprep.subr.bf16.mxu0 %v6590_v45  ;;  %1820 = vmatprep.subr.bf16.mxu1 %v6591_v5  ;;  %v6601_v45 = vld [vmem:[#allocation13_spill] sm:$0xff]  ;;  %v6602_v5 = vld [vmem:[#allocation14_spill] sm:$0xff] }
 0x4fb   :  { %1780 = vmatpush1.bf16.msra.mxu0 %v6592_v43  ;;  %1821 = vmatpush1.bf16.msra.mxu1 %v6593_v46  ;;  %v6603_v43 = vld [vmem:[#allocation15_spill] sm:$0xff]  ;;  %v6604_v46 = vld [vmem:[#allocation16_spill] sm:$0xff] }
 0x4fc   :  { %1781 = vmatprep.subr.bf16.mxu0 %v6594_v44  ;;  %1822 = vmatprep.subr.bf16.mxu1 %v6595_v41  ;;  %v6605_v44 = vld [vmem:[#allocation17_spill] sm:$0xff]  ;;  %v6606_v41 = vld [vmem:[#allocation18_spill] sm:$0xff] }
 0x4ff   :  { %1782 = vmatpush1.bf16.msra.mxu0 %v6596_v47  ;;  %1823 = vmatpush1.bf16.msra.mxu1 %v6597_v42  ;;  %v6607_v47 = vld [vmem:[#allocation19_spill] sm:$0xff]  ;;  %v6608_v42 = vld [vmem:[#allocation61_spill] sm:$0xff] }
 0x500   :  { %1783 = vmatprep.subr.bf16.mxu0 %v6598_v6  ;;  %1824 = vmatprep.subr.bf16.mxu1 %v6599_v40  ;;  %v6609_v6 = vld [vmem:[#allocation62_spill] sm:$0xff]  ;;  %v6610_v40 = vld [vmem:[#allocation63_spill] sm:$0xff] }
 0x503   :  { %1784 = vmatpush1.bf16.msra.mxu0 %v6600_v38  ;;  %1825 = vmatpush1.bf16.msra.mxu1 %v6601_v45  ;;  %v6611_v38 = vld [vmem:[#allocation64_spill] sm:$0xff]  ;;  %v6612_v45 = vld [vmem:[#allocation65_spill] sm:$0xff] }
 0x504   :  { %1785 = vmatprep.subr.bf16.mxu0 %v6602_v5  ;;  %1826 = vmatprep.subr.bf16.mxu1 %v6603_v43  ;;  %v6613_v5 = vld [vmem:[#allocation66_spill] sm:$0xff]  ;;  %v6614_v43 = vld [vmem:[#allocation20_spill] sm:$0xff] }
 0x507   :  { %1786 = vmatpush1.bf16.msra.mxu0 %v6604_v46  ;;  %1827 = vmatpush1.bf16.msra.mxu1 %v6605_v44  ;;  %v6615_v46 = vld [vmem:[#allocation21_spill] sm:$0xff] }
 0x508   :  { %1787 = vmatprep.subr.bf16.mxu0 %v6606_v41  ;;  %1828 = vmatprep.subr.bf16.mxu1 %v6607_v47 }
 0x50b   :  { %1788 = vmatpush1.bf16.msra.mxu0 %v6608_v42  ;;  %1829 = vmatpush1.bf16.msra.mxu1 %v6609_v6 }
 0x50c   :  { %1789 = vmatprep.subr.bf16.mxu0 %v6610_v40  ;;  %1830 = vmatprep.subr.bf16.mxu1 %v6611_v38 }
 0x50f   :  { %1790 = vmatpush1.bf16.msra.mxu0 %v6612_v45  ;;  %1831 = vmatpush1.bf16.msra.mxu1 %v6613_v5 }
 0x510   :  { %1867 = vmatprep.subr.bf16.mxu0 %v6614_v43  ;;  %1908 = vmatprep.subr.bf16.mxu1 %v6615_v46 }
 0x585   :  { %v1547_v44 = vpop.f32.mrb[28].mxu0  ;;  %v1588_v41 = vpop.f32.mrb[28].mxu1 }
 0x586   :  { %v1548_v47 = vadd.f32 %v1547_v44, %v6616_v48  ;;  %v1549_v4 = vpop.f32.mrb[29].mxu0  ;;  %v1590_v42 = vpop.f32.mrb[29].mxu1  ;;  %v1589_v46 = vadd.f32 %v1588_v41, %v6497_v36 }
 0x587   :  { %v1550_v6 = vadd.f32 %v1549_v4, %v4313_v39  ;;  %v1551_v17 = vpop.f32.mrb[30].mxu0  ;;  %v1592_v40 = vpop.f32.mrb[30].mxu1  ;;  %v1591_v43 = vadd.f32 %v1590_v42, %v6496_v32 }
 0x588   :  { %v2869_v8 = vmul.f32 -1.442695, %v1548_v47  ;;  %v1552_v38 = vpop.f32.mrb[31].mxu0  ;;  %v1593_v14 = vpop.f32.mrb[31].mxu1 }
 0x589   :  { %v2870_v45 = vmul.f32 -1.442695, %v1550_v6  ;;  %v2871_v5 = vmul.f32 -1.442695, %v1591_v43 }
 0x58a   :  { %3207 = vpow2.f32 %v2869_v8 }
 0x58b   :  { %3209 = vpow2.f32 %v2870_v45 }
 0x58c   :  { %3211 = vpow2.f32 %v2871_v5 }
 0x58d   :  { %3213 = vtanh.f32 %v1589_v46 }
 0x594   :  { %v3208_v7 = vpop.eup %3207 }
 0x595   :  { %v3210_v15 = vpop.eup %3209  ;;  %v1598_v44 = vadd.f32 1.0, %v3208_v7 }
 0x596   :  { %v1604_v48 = vadd.f32 1.0, %v3210_v15  ;;  %v3212_v17 = vpop.eup %3211 }
 0x597   :  { %3215 = vrcp.f32 %v1598_v44  ;;  %v3214_v4 = vpop.eup %3213  ;;  %v1611_v8 = vadd.f32 1.0, %v3212_v17 }
 0x598   :  { %3217 = vrcp.f32 %v1604_v48 }
 0x599   :  { %3219 = vrcp.f32 %v1611_v8 }
 0x5a1   :  { %v3216_v47 = vpop.eup %3215 }
 0x5a2   :  { %v3218_v14 = vpop.eup %3217  ;;  %v1615_v6 = vmul.f32 %v3216_v47, %v3214_v4 }
 0x5a3   :  { %v1614_v45 = vmul.f32 %v3218_v14, %v5035_v49  ;;  %v2872_v49 = vld [vmem:[%s6035_s0 + $0x20] sm:$0xff] }
 0x5a5   :  { %v1655_v42 = vpop.f32.mrb[32].mxu0  ;;  %v1696_v40 = vpop.f32.mrb[32].mxu1  ;;  %v5150_v38 = vadd.f32 %v1615_v6, %v1614_v45 }
 0x5a6   :  { %v1657_v41 = vpop.f32.mrb[33].mxu0  ;;  %v1698_v7 = vpop.f32.mrb[33].mxu1 }
 0x5a7   :  { %v1707_v5 = vcombine.low %v1655_v42, %v1657_v41  ;;  %v1708_v43 = vcombine.low %v1696_v40, %v1698_v7  ;;  %v1659_v15 = vpop.f32.mrb[34].mxu0  ;;  %v1700_v46 = vpop.f32.mrb[34].mxu1  ;;  %3221 = vtanh.f32 %v5150_v38 }
 0x5a8   :  { %v1660_v48 = vpop.f32.mrb[35].mxu0  ;;  %v1701_v44 = vpop.f32.mrb[35].mxu1 }
 0x5a9   :  { %v1715_v4 = vrot.slane %v1707_v5, %v4198_v2  ;;  %v1722_v17 = vrot.slane %v1708_v43, %v4198_v2  ;;  %v3220_v45 = vpop.eup %3219 }
 0x5ab   :  { %v1723_v47 = vcombine.low %v1715_v4, %v1722_v17 }
 0x5ad   :  { %v1725_v14 = vadd.f32 %v2872_v49, %v1723_v47 }
 0x5af   :  { %v2873_v6 = vmul.f32 -1.442695, %v1725_v14  ;;  %v1733_v8 = vrot.slane %v1725_v14, 2  ;;  %v1744_v15 = vrot.slane %v1725_v14, 6  ;;  %v1741_v46 = vrot.slane %v1725_v14, 4 }
 0x5b1   :  { %v3222_v42 = vpop.eup %3221  ;;  %3223 = vpow2.f32 %v2873_v6  ;;  %v2874_v40 = vmul.f32 -1.442695, %v1733_v8  ;;  %v2875_v5 = vmul.f32 -1.442695, %v1744_v15 }
 0x5b2   :  { %v1618_v41 = vmul.f32 %v3222_v42, %v3220_v45 }
 0x5b3   :  { %3225 = vpow2.f32 %v2874_v40 }
 0x5b4   :  { %v1758_v7 = vpack.c.bf16 %v1618_v41, %v1618_v41  ;;  %3227 = vpow2.f32 %v2875_v5  ;;  %v5165_v5 = vld [vmem:[%s6036_s1] ss:$16 sps:$4 sm:$0xff]  }
 0x5b6   :  { %1791 = vmatprep.mubr.bf16.mxu0 %v1758_v7  ;;  %1832 = vmatprep.mubr.bf16.mxu1 %v1758_v7 }
 0x5bb   :  { %v3224_v43 = vpop.eup %3223 }
 0x5bc   :  { %v1729_v48 = vadd.f32 1.0, %v3224_v43  ;;  %v5177_v43 = vld [vmem:[%s6036_s1 + $0x24] ss:$16 sps:$4 sm:$0xff]  }
 0x5bd   :  { %v3226_v44 = vpop.eup %3225 }
 0x5be   :  { %3229 = vrcp.f32 %v1729_v48  ;;  %v1738_v4 = vadd.f32 1.0, %v3226_v44  ;;  %v3228_v17 = vpop.eup %3227  ;;  %v5191_v48 = vld [vmem:[%s6036_s1 + $0x20] ss:$16 sps:$4 sm:$0xff]   ;;  %v5197_v44 = vld [vmem:[%s6036_s1 + $0x28] ss:$16 sps:$4 sm:$0xff]  }
 0x5bf   :  { %3231 = vtanh.f32 %v1741_v46  ;;  %v1749_v8 = vadd.f32 1.0, %v3228_v17  ;;  %v5183_v46 = vld [vmem:[%s6036_s1 + $0x2c] ss:$16 sps:$4 sm:$0xff]  }
 0x5c0   :  { %3233 = vrcp.f32 %v1738_v4  ;;  %v5203_v4 = vld [vmem:[%s6036_s1 + $0x44] ss:$16 sps:$4 sm:$0xff]   ;;  %v5209_v17 = vld [vmem:[%s6036_s1 + $0x4c] ss:$16 sps:$4 sm:$0xff]  }
 0x5c1   :  { %3235 = vrcp.f32 %v1749_v8  ;;  %v5233_v8 = vld [vmem:[%s6036_s1 + $0x6c] ss:$16 sps:$4 sm:$0xff]  }
 0x5c8   :  { %v3230_v49 = vpop.eup %3229 }
 0x5c9   :  { %v3232_v47 = vpop.eup %3231 }
 0x5ca   :  { %v3234_v6 = vpop.eup %3233  ;;  %v1753_v42 = vmul.f32 %v3232_v47, %v3230_v49  ;;  %v5215_v49 = vld [vmem:[%s6036_s1 + $0x40] ss:$16 sps:$4 sm:$0xff]   ;;  %v5221_v47 = vld [vmem:[%s6036_s1 + $0x48] ss:$16 sps:$4 sm:$0xff]  }
 0x5cb   :  { %v1752_v45 = vmul.f32 %v3234_v6, %v5044_v13  ;;  %v3236_v14 = vpop.eup %3235  ;;  %v5171_v13 = vld [vmem:[%s6036_s1 + $0x8] ss:$16 sps:$4 sm:$0xff]   ;;  %v5227_v6 = vld [vmem:[%s6036_s1 + $0x64] ss:$16 sps:$4 sm:$0xff]  }
 0x5cd   :  { %v5159_v40 = vadd.f32 %v1753_v42, %v1752_v45  ;;  %v5239_v45 = vld [vmem:[%s6036_s1 + $0x60] ss:$16 sps:$4 sm:$0xff]   ;;  %v5245_v42 = vld [vmem:[%s6036_s1 + $0x68] ss:$16 sps:$4 sm:$0xff]  }
 0x5ce   :  { %6617 = vst [vmem:[#allocation22_spill] sm:$0xff] %v5245_v42 }
 0x5cf   :  { %3237 = vtanh.f32 %v5159_v40 }
 0x5d9   :  { %v3238_v41 = vpop.eup %3237 }
 0x5da   :  { %v1756_v7 = vmul.f32 %v3238_v41, %v3236_v14  ;;  %v5251_v14 = vld [vmem:[%s6036_s1 + $0x84] ss:$16 sps:$4 sm:$0xff]   ;;  %v5257_v41 = vld [vmem:[%s6036_s1 + $0x8c] ss:$16 sps:$4 sm:$0xff]  }
 0x5db   :  { %6618 = vst [vmem:[#allocation23_spill] sm:$0xff] %v5251_v14  ;;  %6619 = vst [vmem:[#allocation24_spill] sm:$0xff] %v5257_v41 }
 0x5dc   :  { %v1757_v15 = vpack.c.bf16 %v1756_v7, %v1756_v7  ;;  %v5263_v7 = vld [vmem:[%s6036_s1 + $0x80] ss:$16 sps:$4 sm:$0xff]  }
 0x5dd   :  { %6620 = vst [vmem:[#allocation25_spill] sm:$0xff] %v5263_v7 }
 0x5de   :  { %1792 = vmatmul.mubr.bf16.vlgmr.msra.gmra.mrb[36].mxu0 %v1757_v15  ;;  %1833 = vmatmul.mubr.bf16.vlgmr.msra.gmra.mrb[36].mxu1 %v1757_v15 }
 0x5df   :  { %1868 = vmatpush1.bf16.msra.mxu0 %v5165_v5  ;;  %1909 = vmatpush1.bf16.msra.mxu1 %v5171_v13 }
 0x5e0   :  { %1869 = vmatprep.subr.bf16.mxu0 %v5177_v43  ;;  %1910 = vmatprep.subr.bf16.mxu1 %v5183_v46 }
 0x5e1   :  { %1899 = vmatprep.mubr.bf16.mxu0 %v6401_v54  ;;  %1940 = vmatprep.mubr.bf16.mxu1 %v6401_v54 }
 0x5e3   :  { %1870 = vmatpush1.bf16.msra.mxu0 %v5191_v48  ;;  %1911 = vmatpush1.bf16.msra.mxu1 %v5197_v44 }
 0x5e4   :  { %1871 = vmatprep.subr.bf16.mxu0 %v5203_v4  ;;  %1912 = vmatprep.subr.bf16.mxu1 %v5209_v17 }
 0x5e7   :  { %1872 = vmatpush1.bf16.msra.mxu0 %v5215_v49  ;;  %1913 = vmatpush1.bf16.msra.mxu1 %v5221_v47 }
 0x5e8   :  { %1873 = vmatprep.subr.bf16.mxu0 %v5227_v6  ;;  %1914 = vmatprep.subr.bf16.mxu1 %v5233_v8 }
 0x5eb   :  { %1874 = vmatpush1.bf16.msra.mxu0 %v5239_v45  ;;  %1915 = vmatpush1.bf16.msra.mxu1 %v5245_v42  ;;  %v5269_v42 = vld [vmem:[%s6036_s1 + $0x88] ss:$16 sps:$4 sm:$0xff]  }
 0x5ec   :  { %1875 = vmatprep.subr.bf16.mxu0 %v5251_v14  ;;  %1916 = vmatprep.subr.bf16.mxu1 %v5257_v41  ;;  %6621 = vst [vmem:[#allocation26_spill] sm:$0xff] %v5269_v42  ;;  %v5275_v14 = vld [vmem:[%s6036_s1 + $0xa4] ss:$16 sps:$4 sm:$0xff]   ;;  %v5281_v41 = vld [vmem:[%s6036_s1 + $0xac] ss:$16 sps:$4 sm:$0xff]  }
 0x5ed   :  { %6622 = vst [vmem:[#allocation27_spill] sm:$0xff] %v5275_v14  ;;  %6623 = vst [vmem:[#allocation28_spill] sm:$0xff] %v5281_v41 }
 0x5ef   :  { %1876 = vmatpush1.bf16.msra.mxu0 %v5263_v7  ;;  %1917 = vmatpush1.bf16.msra.mxu1 %v5269_v42  ;;  %v5287_v7 = vld [vmem:[%s6036_s1 + $0xa0] ss:$16 sps:$4 sm:$0xff]   ;;  %v5293_v42 = vld [vmem:[%s6036_s1 + $0xa8] ss:$16 sps:$4 sm:$0xff]  }
 0x5f0   :  { %1877 = vmatprep.subr.bf16.mxu0 %v5275_v14  ;;  %1918 = vmatprep.subr.bf16.mxu1 %v5281_v41  ;;  %v5299_v14 = vld [vmem:[%s6036_s1 + $0xc4] ss:$16 sps:$4 sm:$0xff]   ;;  %v5305_v41 = vld [vmem:[%s6036_s1 + $0xcc] ss:$16 sps:$4 sm:$0xff]  }
 0x5f3   :  { %1878 = vmatpush1.bf16.msra.mxu0 %v5287_v7  ;;  %1919 = vmatpush1.bf16.msra.mxu1 %v5293_v42 }
 0x5f4   :  { %1879 = vmatprep.subr.bf16.mxu0 %v5299_v14  ;;  %1920 = vmatprep.subr.bf16.mxu1 %v5305_v41 }
 0x5f7   :  { %1880 = vmatpush1.bf16.msra.mxu0 %v4611_v16  ;;  %1921 = vmatpush1.bf16.msra.mxu1 %v4617_v18  ;;  %v6624_v16 = vld [vmem:[#allocation43_spill] sm:$0xff]  ;;  %v6625_v18 = vld [vmem:[#allocation44_spill] sm:$0xff] }
 0x5f8   :  { %1881 = vmatprep.subr.bf16.mxu0 %v4623_v34  ;;  %1922 = vmatprep.subr.bf16.mxu1 %v4629_v19  ;;  %v6626_v34 = vld [vmem:[#allocation45_spill] sm:$0xff]  ;;  %v6627_v19 = vld [vmem:[#allocation46_spill] sm:$0xff] }
 0x5fb   :  { %1882 = vmatpush1.bf16.msra.mxu0 %v4635_v20  ;;  %1923 = vmatpush1.bf16.msra.mxu1 %v4641_v21  ;;  %v6628_v20 = vld [vmem:[#allocation47_spill] sm:$0xff]  ;;  %v6629_v21 = vld [vmem:[#allocation48_spill] sm:$0xff] }
 0x5fc   :  { %2005 = vmatprep.subr.bf16.mxu0 %v4647_v22  ;;  %2046 = vmatprep.subr.bf16.mxu1 %v4653_v52  ;;  %v6630_v22 = vld [vmem:[#allocation49_spill] sm:$0xff]  ;;  %v6631_v52 = vld [vmem:[#allocation50_spill] sm:$0xff] }
 0x5fe   :  { %1900 = vmatmul.mubr.bf16.vlgmr.msra.gmra.mrb[40].mxu0 %v1757_v15  ;;  %1941 = vmatmul.mubr.bf16.vlgmr.msra.gmra.mrb[40].mxu1 %v1757_v15 }
 0x5ff   :  { %2006 = vmatpush1.bf16.msra.mxu0 %v4659_v28  ;;  %2047 = vmatpush1.bf16.msra.mxu1 %v4665_v29  ;;  %v6632_v28 = vld [vmem:[#allocation51_spill] sm:$0xff]  ;;  %v6633_v29 = vld [vmem:[#allocation52_spill] sm:$0xff] }
 0x600   :  { %2007 = vmatprep.subr.bf16.mxu0 %v4671_v30  ;;  %2048 = vmatprep.subr.bf16.mxu1 %v4677_v31  ;;  %v6634_v30 = vld [vmem:[#allocation53_spill] sm:$0xff]  ;;  %v6635_v31 = vld [vmem:[#allocation54_spill] sm:$0xff] }
 0x603   :  { %2008 = vmatpush1.bf16.msra.mxu0 %v4683_v33  ;;  %2049 = vmatpush1.bf16.msra.mxu1 %v4689_v35  ;;  %v6636_v33 = vld [vmem:[#allocation55_spill] sm:$0xff]  ;;  %v6637_v35 = vld [vmem:[#allocation56_spill] sm:$0xff] }
 0x604   :  { %2009 = vmatprep.subr.bf16.mxu0 %v4695_v37  ;;  %2050 = vmatprep.subr.bf16.mxu1 %v6559_v23  ;;  %v6638_v37 = vld [vmem:[#allocation57_spill] sm:$0xff]  ;;  %v6639_v23 = vld [vmem:[#allocation58_spill] sm:$0xff] }
 0x607   :  { %2010 = vmatpush1.bf16.msra.mxu0 %v6560_v51  ;;  %2051 = vmatpush1.bf16.msra.mxu1 %v6561_v61  ;;  %v6640_v51 = vld [vmem:[#allocation59_spill] sm:$0xff]  ;;  %v6641_v61 = vld [vmem:[#allocation12_spill] sm:$0xff] }
 0x608   :  { %2011 = vmatprep.subr.bf16.mxu0 %v6562_v59  ;;  %2052 = vmatprep.subr.bf16.mxu1 %v6563_v60  ;;  %v6642_v59 = vld [vmem:[#allocation13_spill] sm:$0xff]  ;;  %v6643_v60 = vld [vmem:[#allocation14_spill] sm:$0xff] }
 0x60b   :  { %2012 = vmatpush1.bf16.msra.mxu0 %v6564_v58  ;;  %2053 = vmatpush1.bf16.msra.mxu1 %v6565_v53  ;;  %v6644_v58 = vld [vmem:[#allocation15_spill] sm:$0xff]  ;;  %v6645_v53 = vld [vmem:[#allocation16_spill] sm:$0xff] }
 0x60c   :  { %2013 = vmatprep.subr.bf16.mxu0 %v6566_v1  ;;  %2054 = vmatprep.subr.bf16.mxu1 %v6567_v26  ;;  %v6646_v1 = vld [vmem:[#allocation17_spill] sm:$0xff]  ;;  %v6647_v26 = vld [vmem:[#allocation18_spill] sm:$0xff] }
 0x60f   :  { %2014 = vmatpush1.bf16.msra.mxu0 %v6568_v27  ;;  %2055 = vmatpush1.bf16.msra.mxu1 %v6569_v0  ;;  %v6648_v27 = vld [vmem:[#allocation19_spill] sm:$0xff]  ;;  %v6649_v0 = vld [vmem:[#allocation61_spill] sm:$0xff] }
 0x610   :  { %2015 = vmatprep.subr.bf16.mxu0 %v6570_v55  ;;  %2056 = vmatprep.subr.bf16.mxu1 %v6571_v25  ;;  %v6650_v55 = vld [vmem:[#allocation62_spill] sm:$0xff]  ;;  %v6651_v25 = vld [vmem:[#allocation63_spill] sm:$0xff] }
 0x613   :  { %2016 = vmatpush1.bf16.msra.mxu0 %v6572_v3  ;;  %2057 = vmatpush1.bf16.msra.mxu1 %v6573_v56  ;;  %v6652_v3 = vld [vmem:[#allocation64_spill] sm:$0xff]  ;;  %v6653_v56 = vld [vmem:[#allocation65_spill] sm:$0xff] }
 0x614   :  { %2017 = vmatprep.subr.bf16.mxu0 %v6574_v63  ;;  %2058 = vmatprep.subr.bf16.mxu1 %v6575_v57  ;;  %v6654_v63 = vld [vmem:[#allocation66_spill] sm:$0xff] }
 0x615   :  { %v5381_v57 = vld [vmem:[%s6036_s1 + $0x4] ss:$16 sps:$4 sm:$0xff]  }
 0x617   :  { %2018 = vmatpush1.bf16.msra.mxu0 %v6576_v24  ;;  %2059 = vmatpush1.bf16.msra.mxu1 %v6577_v50  ;;  %v5387_v24 = vld [vmem:[%s6036_s1 + $0xc] ss:$16 sps:$4 sm:$0xff]  }
 0x618   :  { %2019 = vmatprep.subr.bf16.mxu0 %v6578_v62  ;;  %2060 = vmatprep.subr.bf16.mxu1 %v6579_v9  ;;  %v6655_v9 = vld [vmem:[#allocation11_spill] sm:$0xff] }
 0x61b   :  { %2020 = vmatpush1.bf16.msra.mxu0 %v6580_v10  ;;  %2061 = vmatpush1.bf16.msra.mxu1 %v6581_v11 }
 0x61c   :  { %2021 = vmatprep.subr.bf16.mxu0 %v6582_v12  ;;  %2062 = vmatprep.subr.bf16.mxu1 %v6624_v16 }
 0x61f   :  { %2022 = vmatpush1.bf16.msra.mxu0 %v6625_v18  ;;  %2063 = vmatpush1.bf16.msra.mxu1 %v6626_v34 }
 0x620   :  { %2023 = vmatprep.subr.bf16.mxu0 %v6627_v19  ;;  %2064 = vmatprep.subr.bf16.mxu1 %v6628_v20 }
 0x623   :  { %2024 = vmatpush1.bf16.msra.mxu0 %v6629_v21  ;;  %2065 = vmatpush1.bf16.msra.mxu1 %v6630_v22 }
 0x624   :  { %2025 = vmatprep.subr.bf16.mxu0 %v6631_v52  ;;  %2066 = vmatprep.subr.bf16.mxu1 %v6632_v28 }
 0x627   :  { %2026 = vmatpush1.bf16.msra.mxu0 %v6633_v29  ;;  %2067 = vmatpush1.bf16.msra.mxu1 %v6634_v30 }
 0x628   :  { %2027 = vmatprep.subr.bf16.mxu0 %v6635_v31  ;;  %2068 = vmatprep.subr.bf16.mxu1 %v6636_v33 }
 0x62b   :  { %2028 = vmatpush1.bf16.msra.mxu0 %v6637_v35  ;;  %2069 = vmatpush1.bf16.msra.mxu1 %v6638_v37 }
 0x62c   :  { %2029 = vmatprep.subr.bf16.mxu0 %v6639_v23  ;;  %2070 = vmatprep.subr.bf16.mxu1 %v6640_v51 }
 0x62f   :  { %2030 = vmatpush1.bf16.msra.mxu0 %v6641_v61  ;;  %2071 = vmatpush1.bf16.msra.mxu1 %v6642_v59 }
 0x630   :  { %2031 = vmatprep.subr.bf16.mxu0 %v6643_v60  ;;  %2072 = vmatprep.subr.bf16.mxu1 %v6644_v58 }
 0x633   :  { %2032 = vmatpush1.bf16.msra.mxu0 %v6645_v53  ;;  %2073 = vmatpush1.bf16.msra.mxu1 %v6646_v1 }
 0x634   :  { %2033 = vmatprep.subr.bf16.mxu0 %v6647_v26  ;;  %2074 = vmatprep.subr.bf16.mxu1 %v6648_v27 }
 0x637   :  { %2034 = vmatpush1.bf16.msra.mxu0 %v6649_v0  ;;  %2075 = vmatpush1.bf16.msra.mxu1 %v6650_v55 }
 0x638   :  { %2035 = vmatprep.subr.bf16.mxu0 %v6651_v25  ;;  %2076 = vmatprep.subr.bf16.mxu1 %v6652_v3 }
 0x63b   :  { %2036 = vmatpush1.bf16.msra.mxu0 %v6653_v56  ;;  %2077 = vmatpush1.bf16.msra.mxu1 %v6654_v63 }
 0x63c   :  { %2113 = vmatprep.subr.bf16.mxu0 %v5381_v57  ;;  %2154 = vmatprep.subr.bf16.mxu1 %v5387_v24 }
 0x6b1   :  { %v1793_v50 = vpop.f32.mrb[36].mxu0  ;;  %v1834_v62 = vpop.f32.mrb[36].mxu1 }
 0x6b2   :  { %v1794_v10 = vadd.f32 %v1793_v50, %v6655_v9  ;;  %v1795_v11 = vpop.f32.mrb[37].mxu0  ;;  %v1836_v12 = vpop.f32.mrb[37].mxu1  ;;  %v1835_v28 = vadd.f32 %v1834_v62, %v6497_v36 }
 0x6b3   :  { %v1796_v15 = vadd.f32 %v1795_v11, %v4313_v39  ;;  %v1797_v16 = vpop.f32.mrb[38].mxu0  ;;  %v1838_v18 = vpop.f32.mrb[38].mxu1  ;;  %v1837_v22 = vadd.f32 %v1836_v12, %v6496_v32 }
 0x6b4   :  { %v2876_v34 = vmul.f32 -1.442695, %v1794_v10  ;;  %v1798_v19 = vpop.f32.mrb[39].mxu0  ;;  %v1839_v20 = vpop.f32.mrb[39].mxu1 }
 0x6b5   :  { %v2877_v21 = vmul.f32 -1.442695, %v1796_v15  ;;  %v2878_v52 = vmul.f32 -1.442695, %v1837_v22 }
 0x6b6   :  { %3239 = vpow2.f32 %v2876_v34 }
 0x6b7   :  { %3241 = vpow2.f32 %v2877_v21 }
 0x6b8   :  { %3243 = vpow2.f32 %v2878_v52 }
 0x6b9   :  { %3245 = vtanh.f32 %v1835_v28 }
 0x6c0   :  { %v3240_v29 = vpop.eup %3239 }
 0x6c1   :  { %v3242_v30 = vpop.eup %3241  ;;  %v1844_v31 = vadd.f32 1.0, %v3240_v29 }
 0x6c2   :  { %v1850_v33 = vadd.f32 1.0, %v3242_v30  ;;  %v3244_v35 = vpop.eup %3243 }
 0x6c3   :  { %3247 = vrcp.f32 %v1844_v31  ;;  %v3246_v37 = vpop.eup %3245  ;;  %v1857_v59 = vadd.f32 1.0, %v3244_v35 }
 0x6c4   :  { %3249 = vrcp.f32 %v1850_v33 }
 0x6c5   :  { %3251 = vrcp.f32 %v1857_v59 }
 0x6cd   :  { %v3248_v23 = vpop.eup %3247 }
 0x6ce   :  { %v3250_v51 = vpop.eup %3249  ;;  %v1861_v61 = vmul.f32 %v3248_v23, %v3246_v37 }
 0x6cf   :  { %v1860_v60 = vmul.f32 %v3250_v51, %v5150_v38  ;;  %v2879_v38 = vld [vmem:[%s6035_s0 + $0x28] sm:$0xff]  ;;  %v3252_v16 = vpop.eup %3251 }
 0x6d1   :  { %v1901_v58 = vpop.f32.mrb[40].mxu0  ;;  %v1942_v53 = vpop.f32.mrb[40].mxu1  ;;  %v5395_v1 = vadd.f32 %v1861_v61, %v1860_v60 }
 0x6d2   :  { %v1903_v26 = vpop.f32.mrb[41].mxu0  ;;  %v1944_v27 = vpop.f32.mrb[41].mxu1 }
 0x6d3   :  { %v1953_v0 = vcombine.low %v1901_v58, %v1903_v26  ;;  %v1954_v55 = vcombine.low %v1942_v53, %v1944_v27  ;;  %v1905_v25 = vpop.f32.mrb[42].mxu0  ;;  %v1946_v3 = vpop.f32.mrb[42].mxu1  ;;  %3253 = vtanh.f32 %v5395_v1 }
 0x6d4   :  { %v1906_v56 = vpop.f32.mrb[43].mxu0  ;;  %v1947_v63 = vpop.f32.mrb[43].mxu1  ;;  %v6659_v25 = vld [vmem:[#allocation25_spill] sm:$0xff]  ;;  %v6660_v3 = vld [vmem:[#allocation26_spill] sm:$0xff] }
 0x6d5   :  { %v1961_v50 = vrot.slane %v1953_v0, %v4198_v2  ;;  %v1968_v62 = vrot.slane %v1954_v55, %v4198_v2  ;;  %v6657_v0 = vld [vmem:[#allocation23_spill] sm:$0xff]  ;;  %v6658_v55 = vld [vmem:[#allocation24_spill] sm:$0xff] }
 0x6d6   :  { %v6661_v56 = vld [vmem:[#allocation27_spill] sm:$0xff]  ;;  %v6662_v63 = vld [vmem:[#allocation28_spill] sm:$0xff] }
 0x6d7   :  { %v1969_v10 = vcombine.low %v1961_v50, %v1968_v62  ;;  %v5436_v50 = vld [vmem:[%s6036_s1 + $0xc0] ss:$16 sps:$4 sm:$0xff]   ;;  %v5442_v62 = vld [vmem:[%s6036_s1 + $0xc8] ss:$16 sps:$4 sm:$0xff]  }
 0x6d9   :  { %v1971_v11 = vadd.f32 %v2879_v38, %v1969_v10  ;;  %v5448_v38 = vld [vmem:[%s6036_s1 + $0xe4] ss:$16 sps:$4 sm:$0xff]   ;;  %v5454_v10 = vld [vmem:[%s6036_s1 + $0xec] ss:$16 sps:$4 sm:$0xff]  }
 0x6db   :  { %v2880_v12 = vmul.f32 -1.442695, %v1971_v11  ;;  %v1979_v15 = vrot.slane %v1971_v11, 2  ;;  %v1990_v21 = vrot.slane %v1971_v11, 6  ;;  %v1987_v28 = vrot.slane %v1971_v11, 4 }
 0x6dc   :  { %v5460_v11 = vld [vmem:[%s6036_s1 + $0xe0] ss:$16 sps:$4 sm:$0xff]  }
 0x6dd   :  { %v3254_v18 = vpop.eup %3253  ;;  %3255 = vpow2.f32 %v2880_v12  ;;  %v2881_v34 = vmul.f32 -1.442695, %v1979_v15  ;;  %v2882_v22 = vmul.f32 -1.442695, %v1990_v21  ;;  %v5466_v12 = vld [vmem:[%s6036_s1 + $0xe8] ss:$16 sps:$4 sm:$0xff]  }
 0x6de   :  { %v1864_v19 = vmul.f32 %v3254_v18, %v3252_v16  ;;  %v5472_v15 = vld [vmem:[%s6037_s2 + $0x4] ss:$16 sps:$4 sm:$0xff]   ;;  %v5478_v16 = vld [vmem:[%s6037_s2 + $0xc] ss:$16 sps:$4 sm:$0xff]   ;;  %v5484_v18 = vld [vmem:[%s6037_s2] ss:$16 sps:$4 sm:$0xff]  }
 0x6df   :  { %3257 = vpow2.f32 %v2881_v34  ;;  %v5490_v34 = vld [vmem:[%s6037_s2 + $0x8] ss:$16 sps:$4 sm:$0xff]   ;;  %v5508_v21 = vld [vmem:[%s6037_s2 + $0x20] ss:$16 sps:$4 sm:$0xff]  }
 0x6e0   :  { %v2004_v20 = vpack.c.bf16 %v1864_v19, %v1864_v19  ;;  %3259 = vpow2.f32 %v2882_v22  ;;  %v5496_v19 = vld [vmem:[%s6037_s2 + $0x24] ss:$16 sps:$4 sm:$0xff]   ;;  %v5514_v22 = vld [vmem:[%s6037_s2 + $0x28] ss:$16 sps:$4 sm:$0xff]  }
 0x6e2   :  { %2037 = vmatprep.mubr.bf16.mxu0 %v2004_v20  ;;  %2078 = vmatprep.mubr.bf16.mxu1 %v2004_v20  ;;  %v5502_v20 = vld [vmem:[%s6037_s2 + $0x2c] ss:$16 sps:$4 sm:$0xff]  }
 0x6e7   :  { %v3256_v52 = vpop.eup %3255 }
 0x6e8   :  { %v1975_v29 = vadd.f32 1.0, %v3256_v52  ;;  %v5520_v52 = vld [vmem:[%s6037_s2 + $0x44] ss:$16 sps:$4 sm:$0xff]  }
 0x6e9   :  { %v3258_v30 = vpop.eup %3257 }
 0x6ea   :  { %3261 = vrcp.f32 %v1975_v29  ;;  %v1984_v31 = vadd.f32 1.0, %v3258_v30  ;;  %v3260_v33 = vpop.eup %3259  ;;  %v5532_v29 = vld [vmem:[%s6037_s2 + $0x40] ss:$16 sps:$4 sm:$0xff]   ;;  %v5538_v30 = vld [vmem:[%s6037_s2 + $0x48] ss:$16 sps:$4 sm:$0xff]  }
 0x6eb   :  { %3263 = vtanh.f32 %v1987_v28  ;;  %v1995_v51 = vadd.f32 1.0, %v3260_v33  ;;  %v5526_v28 = vld [vmem:[%s6037_s2 + $0x4c] ss:$16 sps:$4 sm:$0xff]   ;;  %6664 = vst [vmem:[#allocation9_spill] sm:$0xff] %v5532_v29  ;;  %6665 = vst [vmem:[#allocation10_spill] sm:$0xff] %v5538_v30 }
 0x6ec   :  { %3265 = vrcp.f32 %v1984_v31  ;;  %6663 = vst [vmem:[#allocation29_spill] sm:$0xff] %v5526_v28  ;;  %v5544_v31 = vld [vmem:[%s6037_s2 + $0x64] ss:$16 sps:$4 sm:$0xff]   ;;  %v5550_v33 = vld [vmem:[%s6037_s2 + $0x6c] ss:$16 sps:$4 sm:$0xff]  }
 0x6ed   :  { %3267 = vrcp.f32 %v1995_v51  ;;  %6666 = vst [vmem:[#allocation60_spill] sm:$0xff] %v5544_v31  ;;  %6667 = vst [vmem:[#allocation30_spill] sm:$0xff] %v5550_v33  ;;  %v5574_v51 = vld [vmem:[%s6037_s2 + $0x8c] ss:$16 sps:$4 sm:$0xff]  }
 0x6ee   :  { %6671 = vst [vmem:[#allocation34_spill] sm:$0xff] %v5574_v51 }
 0x6f4   :  { %v3262_v35 = vpop.eup %3261 }
 0x6f5   :  { %v3264_v37 = vpop.eup %3263 }
 0x6f6   :  { %v3266_v23 = vpop.eup %3265  ;;  %v1999_v59 = vmul.f32 %v3264_v37, %v3262_v35  ;;  %v5556_v35 = vld [vmem:[%s6037_s2 + $0x60] ss:$16 sps:$4 sm:$0xff]   ;;  %v5562_v37 = vld [vmem:[%s6037_s2 + $0x68] ss:$16 sps:$4 sm:$0xff]  }
 0x6f7   :  { %v1998_v61 = vmul.f32 %v3266_v23, %v5159_v40  ;;  %v3268_v58 = vpop.eup %3267  ;;  %v6656_v40 = vld [vmem:[#allocation22_spill] sm:$0xff]  ;;  %6668 = vst [vmem:[#allocation31_spill] sm:$0xff] %v5556_v35  ;;  %6669 = vst [vmem:[#allocation32_spill] sm:$0xff] %v5562_v37 }
 0x6f8   :  { %v5568_v23 = vld [vmem:[%s6037_s2 + $0x84] ss:$16 sps:$4 sm:$0xff]  }
 0x6f9   :  { %v5404_v60 = vadd.f32 %v1999_v59, %v1998_v61  ;;  %6670 = vst [vmem:[#allocation33_spill] sm:$0xff] %v5568_v23  ;;  %v5580_v61 = vld [vmem:[%s6037_s2 + $0x80] ss:$16 sps:$4 sm:$0xff]   ;;  %v5586_v59 = vld [vmem:[%s6037_s2 + $0x88] ss:$16 sps:$4 sm:$0xff]  }
 0x6fa   :  { %6672 = vst [vmem:[#allocation35_spill] sm:$0xff] %v5580_v61  ;;  %6673 = vst [vmem:[#allocation36_spill] sm:$0xff] %v5586_v59 }
 0x6fb   :  { %3269 = vtanh.f32 %v5404_v60 }
 0x705   :  { %v3270_v53 = vpop.eup %3269 }
 0x706   :  { %v2002_v26 = vmul.f32 %v3270_v53, %v3268_v58  ;;  %v5592_v58 = vld [vmem:[%s6037_s2 + $0xa4] ss:$16 sps:$4 sm:$0xff]   ;;  %v5598_v53 = vld [vmem:[%s6037_s2 + $0xac] ss:$16 sps:$4 sm:$0xff]  }
 0x707   :  { %6674 = vst [vmem:[#allocation37_spill] sm:$0xff] %v5592_v58  ;;  %6675 = vst [vmem:[#allocation38_spill] sm:$0xff] %v5598_v53 }
 0x708   :  { %v2003_v27 = vpack.c.bf16 %v2002_v26, %v2002_v26  ;;  %v5604_v26 = vld [vmem:[%s6037_s2 + $0xa0] ss:$16 sps:$4 sm:$0xff]  }
 0x709   :  { %6676 = vst [vmem:[#allocation39_spill] sm:$0xff] %v5604_v26 }
 0x70a   :  { %2038 = vmatmul.mubr.bf16.vlgmr.msra.gmra.mrb[44].mxu0 %v2003_v27  ;;  %2079 = vmatmul.mubr.bf16.vlgmr.msra.gmra.mrb[44].mxu1 %v2003_v27 }
 0x70b   :  { %2114 = vmatpush1.bf16.msra.mxu0 %v5165_v5  ;;  %2155 = vmatpush1.bf16.msra.mxu1 %v5171_v13 }
 0x70c   :  { %2115 = vmatprep.subr.bf16.mxu0 %v5177_v43  ;;  %2156 = vmatprep.subr.bf16.mxu1 %v5183_v46 }
 0x70d   :  { %2145 = vmatprep.mubr.bf16.mxu0 %v6401_v54  ;;  %2186 = vmatprep.mubr.bf16.mxu1 %v6401_v54 }
 0x70f   :  { %2116 = vmatpush1.bf16.msra.mxu0 %v5191_v48  ;;  %2157 = vmatpush1.bf16.msra.mxu1 %v5197_v44 }
 0x710   :  { %2117 = vmatprep.subr.bf16.mxu0 %v5203_v4  ;;  %2158 = vmatprep.subr.bf16.mxu1 %v5209_v17 }
 0x713   :  { %2118 = vmatpush1.bf16.msra.mxu0 %v5215_v49  ;;  %2159 = vmatpush1.bf16.msra.mxu1 %v5221_v47 }
 0x714   :  { %2119 = vmatprep.subr.bf16.mxu0 %v5227_v6  ;;  %2160 = vmatprep.subr.bf16.mxu1 %v5233_v8 }
 0x717   :  { %2120 = vmatpush1.bf16.msra.mxu0 %v5239_v45  ;;  %2161 = vmatpush1.bf16.msra.mxu1 %v6656_v40 }
 0x718   :  { %2121 = vmatprep.subr.bf16.mxu0 %v6657_v0  ;;  %2162 = vmatprep.subr.bf16.mxu1 %v6658_v55 }
 0x71b   :  { %2122 = vmatpush1.bf16.msra.mxu0 %v6659_v25  ;;  %2163 = vmatpush1.bf16.msra.mxu1 %v6660_v3 }
 0x71c   :  { %2123 = vmatprep.subr.bf16.mxu0 %v6661_v56  ;;  %2164 = vmatprep.subr.bf16.mxu1 %v6662_v63 }
 0x71f   :  { %2124 = vmatpush1.bf16.msra.mxu0 %v5287_v7  ;;  %2165 = vmatpush1.bf16.msra.mxu1 %v5293_v42 }
 0x720   :  { %2125 = vmatprep.subr.bf16.mxu0 %v5299_v14  ;;  %2166 = vmatprep.subr.bf16.mxu1 %v5305_v41 }
 0x723   :  { %2126 = vmatpush1.bf16.msra.mxu0 %v5436_v50  ;;  %2167 = vmatpush1.bf16.msra.mxu1 %v5442_v62 }
 0x724   :  { %2127 = vmatprep.subr.bf16.mxu0 %v5448_v38  ;;  %2168 = vmatprep.subr.bf16.mxu1 %v5454_v10 }
 0x727   :  { %2128 = vmatpush1.bf16.msra.mxu0 %v5460_v11  ;;  %2169 = vmatpush1.bf16.msra.mxu1 %v5466_v12 }
 0x728   :  { %2251 = vmatprep.subr.bf16.mxu0 %v5472_v15  ;;  %2292 = vmatprep.subr.bf16.mxu1 %v5478_v16 }
 0x72a   :  { %2146 = vmatmul.mubr.bf16.vlgmr.msra.gmra.mrb[48].mxu0 %v2003_v27  ;;  %2187 = vmatmul.mubr.bf16.vlgmr.msra.gmra.mrb[48].mxu1 %v2003_v27  ;;  %v5610_v27 = vld [vmem:[%s6037_s2 + $0xa8] ss:$16 sps:$4 sm:$0xff]  }
 0x72b   :  { %2252 = vmatpush1.bf16.msra.mxu0 %v5484_v18  ;;  %2293 = vmatpush1.bf16.msra.mxu1 %v5490_v34  ;;  %6677 = vst [vmem:[#allocation40_spill] sm:$0xff] %v5610_v27 }
 0x72c   :  { %2253 = vmatprep.subr.bf16.mxu0 %v5496_v19  ;;  %2294 = vmatprep.subr.bf16.mxu1 %v5502_v20 }
 0x72f   :  { %2254 = vmatpush1.bf16.msra.mxu0 %v5508_v21  ;;  %2295 = vmatpush1.bf16.msra.mxu1 %v5514_v22 }
 0x730   :  { %2255 = vmatprep.subr.bf16.mxu0 %v5520_v52  ;;  %2296 = vmatprep.subr.bf16.mxu1 %v5526_v28 }
 0x733   :  { %2256 = vmatpush1.bf16.msra.mxu0 %v5532_v29  ;;  %2297 = vmatpush1.bf16.msra.mxu1 %v5538_v30 }
 0x734   :  { %2257 = vmatprep.subr.bf16.mxu0 %v5544_v31  ;;  %2298 = vmatprep.subr.bf16.mxu1 %v5550_v33 }
 0x737   :  { %2258 = vmatpush1.bf16.msra.mxu0 %v5556_v35  ;;  %2299 = vmatpush1.bf16.msra.mxu1 %v5562_v37 }
 0x738   :  { %2259 = vmatprep.subr.bf16.mxu0 %v5568_v23  ;;  %2300 = vmatprep.subr.bf16.mxu1 %v5574_v51 }
 0x73b   :  { %2260 = vmatpush1.bf16.msra.mxu0 %v5580_v61  ;;  %2301 = vmatpush1.bf16.msra.mxu1 %v5586_v59 }
 0x73c   :  { %2261 = vmatprep.subr.bf16.mxu0 %v5592_v58  ;;  %2302 = vmatprep.subr.bf16.mxu1 %v5598_v53  ;;  %v5616_v58 = vld [vmem:[%s6037_s2 + $0xc4] ss:$16 sps:$4 sm:$0xff]   ;;  %v5622_v53 = vld [vmem:[%s6037_s2 + $0xcc] ss:$16 sps:$4 sm:$0xff]  }
 0x73d   :  { %6678 = vst [vmem:[#allocation41_spill] sm:$0xff] %v5616_v58  ;;  %6679 = vst [vmem:[#allocation42_spill] sm:$0xff] %v5622_v53 }
 0x73f   :  { %2262 = vmatpush1.bf16.msra.mxu0 %v5604_v26  ;;  %2303 = vmatpush1.bf16.msra.mxu1 %v5610_v27  ;;  %v5628_v26 = vld [vmem:[%s6037_s2 + $0xc0] ss:$16 sps:$4 sm:$0xff]   ;;  %v5634_v27 = vld [vmem:[%s6037_s2 + $0xc8] ss:$16 sps:$4 sm:$0xff]  }
 0x740   :  { %2263 = vmatprep.subr.bf16.mxu0 %v5616_v58  ;;  %2304 = vmatprep.subr.bf16.mxu1 %v5622_v53  ;;  %6680 = vst [vmem:[#allocation20_spill] sm:$0xff] %v5628_v26  ;;  %6681 = vst [vmem:[#allocation21_spill] sm:$0xff] %v5634_v27  ;;  %v5640_v58 = vld [vmem:[%s6037_s2 + $0xe4] ss:$16 sps:$4 sm:$0xff]   ;;  %v5646_v53 = vld [vmem:[%s6037_s2 + $0xec] ss:$16 sps:$4 sm:$0xff]  }
 0x741   :  { %6682 = vst [vmem:[#allocation43_spill] sm:$0xff] %v5640_v58  ;;  %6683 = vst [vmem:[#allocation44_spill] sm:$0xff] %v5646_v53 }
 0x743   :  { %2264 = vmatpush1.bf16.msra.mxu0 %v5628_v26  ;;  %2305 = vmatpush1.bf16.msra.mxu1 %v5634_v27  ;;  %v5652_v26 = vld [vmem:[%s6037_s2 + $0xe0] ss:$16 sps:$4 sm:$0xff]   ;;  %v5658_v27 = vld [vmem:[%s6037_s2 + $0xe8] ss:$16 sps:$4 sm:$0xff]  }
 0x744   :  { %2265 = vmatprep.subr.bf16.mxu0 %v5640_v58  ;;  %2306 = vmatprep.subr.bf16.mxu1 %v5646_v53  ;;  %6684 = vst [vmem:[#allocation45_spill] sm:$0xff] %v5652_v26  ;;  %6685 = vst [vmem:[#allocation46_spill] sm:$0xff] %v5658_v27  ;;  %v5664_v58 = vld [vmem:[%s6037_s2 + $0x104] ss:$16 sps:$4 sm:$0xff]   ;;  %v5670_v53 = vld [vmem:[%s6037_s2 + $0x10c] ss:$16 sps:$4 sm:$0xff]  }
 0x745   :  { %6686 = vst [vmem:[#allocation47_spill] sm:$0xff] %v5664_v58  ;;  %6687 = vst [vmem:[#allocation48_spill] sm:$0xff] %v5670_v53 }
 0x747   :  { %2266 = vmatpush1.bf16.msra.mxu0 %v5652_v26  ;;  %2307 = vmatpush1.bf16.msra.mxu1 %v5658_v27  ;;  %v5676_v26 = vld [vmem:[%s6037_s2 + $0x100] ss:$16 sps:$4 sm:$0xff]   ;;  %v5682_v27 = vld [vmem:[%s6037_s2 + $0x108] ss:$16 sps:$4 sm:$0xff]  }
 0x748   :  { %2267 = vmatprep.subr.bf16.mxu0 %v5664_v58  ;;  %2308 = vmatprep.subr.bf16.mxu1 %v5670_v53  ;;  %6688 = vst [vmem:[#allocation49_spill] sm:$0xff] %v5676_v26  ;;  %6689 = vst [vmem:[#allocation50_spill] sm:$0xff] %v5682_v27  ;;  %v5688_v58 = vld [vmem:[%s6037_s2 + $0x124] ss:$16 sps:$4 sm:$0xff]   ;;  %v5694_v53 = vld [vmem:[%s6037_s2 + $0x12c] ss:$16 sps:$4 sm:$0xff]  }
 0x749   :  { %6690 = vst [vmem:[#allocation51_spill] sm:$0xff] %v5688_v58  ;;  %6691 = vst [vmem:[#allocation52_spill] sm:$0xff] %v5694_v53 }
 0x74b   :  { %2268 = vmatpush1.bf16.msra.mxu0 %v5676_v26  ;;  %2309 = vmatpush1.bf16.msra.mxu1 %v5682_v27  ;;  %v5700_v26 = vld [vmem:[%s6037_s2 + $0x120] ss:$16 sps:$4 sm:$0xff]   ;;  %v5706_v27 = vld [vmem:[%s6037_s2 + $0x128] ss:$16 sps:$4 sm:$0xff]  }
 0x74c   :  { %2269 = vmatprep.subr.bf16.mxu0 %v5688_v58  ;;  %2310 = vmatprep.subr.bf16.mxu1 %v5694_v53  ;;  %6692 = vst [vmem:[#allocation53_spill] sm:$0xff] %v5700_v26  ;;  %6693 = vst [vmem:[#allocation54_spill] sm:$0xff] %v5706_v27  ;;  %v5712_v58 = vld [vmem:[%s6037_s2 + $0x144] ss:$16 sps:$4 sm:$0xff]   ;;  %v5718_v53 = vld [vmem:[%s6037_s2 + $0x14c] ss:$16 sps:$4 sm:$0xff]  }
 0x74d   :  { %6694 = vst [vmem:[#allocation55_spill] sm:$0xff] %v5712_v58  ;;  %6695 = vst [vmem:[#allocation56_spill] sm:$0xff] %v5718_v53 }
 0x74f   :  { %2270 = vmatpush1.bf16.msra.mxu0 %v5700_v26  ;;  %2311 = vmatpush1.bf16.msra.mxu1 %v5706_v27  ;;  %v5724_v26 = vld [vmem:[%s6037_s2 + $0x140] ss:$16 sps:$4 sm:$0xff]   ;;  %v5730_v27 = vld [vmem:[%s6037_s2 + $0x148] ss:$16 sps:$4 sm:$0xff]  }
 0x750   :  { %2271 = vmatprep.subr.bf16.mxu0 %v5712_v58  ;;  %2312 = vmatprep.subr.bf16.mxu1 %v5718_v53  ;;  %6696 = vst [vmem:[#allocation57_spill] sm:$0xff] %v5724_v26  ;;  %6697 = vst [vmem:[#allocation58_spill] sm:$0xff] %v5730_v27  ;;  %v5736_v58 = vld [vmem:[%s6037_s2 + $0x164] ss:$16 sps:$4 sm:$0xff]   ;;  %v5742_v53 = vld [vmem:[%s6037_s2 + $0x16c] ss:$16 sps:$4 sm:$0xff]  }
 0x751   :  { %6698 = vst [vmem:[#allocation59_spill] sm:$0xff] %v5736_v58  ;;  %6699 = vst [vmem:[#allocation12_spill] sm:$0xff] %v5742_v53 }
 0x753   :  { %2272 = vmatpush1.bf16.msra.mxu0 %v5724_v26  ;;  %2313 = vmatpush1.bf16.msra.mxu1 %v5730_v27  ;;  %v5748_v26 = vld [vmem:[%s6037_s2 + $0x160] ss:$16 sps:$4 sm:$0xff]   ;;  %v5754_v27 = vld [vmem:[%s6037_s2 + $0x168] ss:$16 sps:$4 sm:$0xff]  }
 0x754   :  { %2273 = vmatprep.subr.bf16.mxu0 %v5736_v58  ;;  %2314 = vmatprep.subr.bf16.mxu1 %v5742_v53  ;;  %6700 = vst [vmem:[#allocation13_spill] sm:$0xff] %v5748_v26  ;;  %6701 = vst [vmem:[#allocation14_spill] sm:$0xff] %v5754_v27  ;;  %v5760_v58 = vld [vmem:[%s6037_s2 + $0x184] ss:$16 sps:$4 sm:$0xff]   ;;  %v5766_v53 = vld [vmem:[%s6037_s2 + $0x18c] ss:$16 sps:$4 sm:$0xff]  }
 0x755   :  { %6702 = vst [vmem:[#allocation15_spill] sm:$0xff] %v5760_v58  ;;  %6703 = vst [vmem:[#allocation16_spill] sm:$0xff] %v5766_v53 }
 0x757   :  { %2274 = vmatpush1.bf16.msra.mxu0 %v5748_v26  ;;  %2315 = vmatpush1.bf16.msra.mxu1 %v5754_v27  ;;  %v5772_v26 = vld [vmem:[%s6037_s2 + $0x180] ss:$16 sps:$4 sm:$0xff]   ;;  %v5778_v27 = vld [vmem:[%s6037_s2 + $0x188] ss:$16 sps:$4 sm:$0xff]  }
 0x758   :  { %2275 = vmatprep.subr.bf16.mxu0 %v5760_v58  ;;  %2316 = vmatprep.subr.bf16.mxu1 %v5766_v53  ;;  %6704 = vst [vmem:[#allocation17_spill] sm:$0xff] %v5772_v26  ;;  %6705 = vst [vmem:[#allocation18_spill] sm:$0xff] %v5778_v27  ;;  %v5784_v58 = vld [vmem:[%s6037_s2 + $0x1a4] ss:$16 sps:$4 sm:$0xff]   ;;  %v5790_v53 = vld [vmem:[%s6037_s2 + $0x1ac] ss:$16 sps:$4 sm:$0xff]  }
 0x759   :  { %6706 = vst [vmem:[#allocation19_spill] sm:$0xff] %v5784_v58  ;;  %6707 = vst [vmem:[#allocation61_spill] sm:$0xff] %v5790_v53 }
 0x75b   :  { %2276 = vmatpush1.bf16.msra.mxu0 %v5772_v26  ;;  %2317 = vmatpush1.bf16.msra.mxu1 %v5778_v27  ;;  %v5796_v26 = vld [vmem:[%s6037_s2 + $0x1a0] ss:$16 sps:$4 sm:$0xff]   ;;  %v5802_v27 = vld [vmem:[%s6037_s2 + $0x1a8] ss:$16 sps:$4 sm:$0xff]  }
 0x75c   :  { %2277 = vmatprep.subr.bf16.mxu0 %v5784_v58  ;;  %2318 = vmatprep.subr.bf16.mxu1 %v5790_v53  ;;  %6708 = vst [vmem:[#allocation62_spill] sm:$0xff] %v5796_v26  ;;  %6709 = vst [vmem:[#allocation63_spill] sm:$0xff] %v5802_v27  ;;  %v5808_v58 = vld [vmem:[%s6037_s2 + $0x1c4] ss:$16 sps:$4 sm:$0xff]   ;;  %v5814_v53 = vld [vmem:[%s6037_s2 + $0x1cc] ss:$16 sps:$4 sm:$0xff]  }
 0x75d   :  { %6710 = vst [vmem:[#allocation64_spill] sm:$0xff] %v5808_v58  ;;  %6711 = vst [vmem:[#allocation65_spill] sm:$0xff] %v5814_v53 }
 0x75f   :  { %2278 = vmatpush1.bf16.msra.mxu0 %v5796_v26  ;;  %2319 = vmatpush1.bf16.msra.mxu1 %v5802_v27  ;;  %v5820_v26 = vld [vmem:[%s6037_s2 + $0x1c0] ss:$16 sps:$4 sm:$0xff]   ;;  %v5826_v27 = vld [vmem:[%s6037_s2 + $0x1c8] ss:$16 sps:$4 sm:$0xff]  }
 0x760   :  { %2279 = vmatprep.subr.bf16.mxu0 %v5808_v58  ;;  %2320 = vmatprep.subr.bf16.mxu1 %v5814_v53  ;;  %6712 = vst [vmem:[#allocation66_spill] sm:$0xff] %v5820_v26  ;;  %6713 = vst [vmem:[#allocation22_spill] sm:$0xff] %v5826_v27  ;;  %v5832_v58 = vld [vmem:[%s6037_s2 + $0x1e4] ss:$16 sps:$4 sm:$0xff]   ;;  %v5838_v53 = vld [vmem:[%s6037_s2 + $0x1ec] ss:$16 sps:$4 sm:$0xff]  }
 0x761   :  { %6714 = vst [vmem:[#allocation23_spill] sm:$0xff] %v5832_v58  ;;  %6715 = vst [vmem:[#allocation24_spill] sm:$0xff] %v5838_v53 }
 0x763   :  { %2280 = vmatpush1.bf16.msra.mxu0 %v5820_v26  ;;  %2321 = vmatpush1.bf16.msra.mxu1 %v5826_v27  ;;  %v5844_v26 = vld [vmem:[%s6037_s2 + $0x1e0] ss:$16 sps:$4 sm:$0xff]   ;;  %v5850_v27 = vld [vmem:[%s6037_s2 + $0x1e8] ss:$16 sps:$4 sm:$0xff]  }
 0x764   :  { %2281 = vmatprep.subr.bf16.mxu0 %v5832_v58  ;;  %2322 = vmatprep.subr.bf16.mxu1 %v5838_v53  ;;  %6716 = vst [vmem:[#allocation25_spill] sm:$0xff] %v5844_v26  ;;  %6717 = vst [vmem:[#allocation26_spill] sm:$0xff] %v5850_v27 }
 0x767   :  { %2282 = vmatpush1.bf16.msra.mxu0 %v5844_v26  ;;  %2323 = vmatpush1.bf16.msra.mxu1 %v5850_v27 }
 0x768   :  { %2359 = vmatprep.subr.bf16.mxu0 %v5381_v57  ;;  %2400 = vmatprep.subr.bf16.mxu1 %v5387_v24 }
 0x7dd   :  { %v2039_v58 = vpop.f32.mrb[44].mxu0  ;;  %v2080_v53 = vpop.f32.mrb[44].mxu1 }
 0x7de   :  { %v2040_v59 = vadd.f32 %v2039_v58, %v6655_v9  ;;  %v2041_v61 = vpop.f32.mrb[45].mxu0  ;;  %v2082_v51 = vpop.f32.mrb[45].mxu1  ;;  %v2081_v24 = vadd.f32 %v2080_v53, %v6497_v36 }
 0x7df   :  { %v2042_v23 = vadd.f32 %v2041_v61, %v4313_v39  ;;  %v2043_v26 = vpop.f32.mrb[46].mxu0  ;;  %v2084_v37 = vpop.f32.mrb[46].mxu1  ;;  %v2083_v57 = vadd.f32 %v2082_v51, %v6496_v32 }
 0x7e0   :  { %v2883_v35 = vmul.f32 -1.442695, %v2040_v59  ;;  %v2044_v33 = vpop.f32.mrb[47].mxu0  ;;  %v2085_v31 = vpop.f32.mrb[47].mxu1 }
 0x7e1   :  { %v2884_v30 = vmul.f32 -1.442695, %v2042_v23  ;;  %v2885_v27 = vmul.f32 -1.442695, %v2083_v57 }
 0x7e2   :  { %3271 = vpow2.f32 %v2883_v35 }
 0x7e3   :  { %3273 = vpow2.f32 %v2884_v30 }
 0x7e4   :  { %3275 = vpow2.f32 %v2885_v27 }
 0x7e5   :  { %3277 = vtanh.f32 %v2081_v24 }
 0x7ec   :  { %v3272_v29 = vpop.eup %3271 }
 0x7ed   :  { %v3274_v28 = vpop.eup %3273  ;;  %v2090_v58 = vadd.f32 1.0, %v3272_v29 }
 0x7ee   :  { %v2096_v9 = vadd.f32 1.0, %v3274_v28  ;;  %v3276_v37 = vpop.eup %3275 }
 0x7ef   :  { %3279 = vrcp.f32 %v2090_v58  ;;  %v3278_v61 = vpop.eup %3277  ;;  %v2103_v35 = vadd.f32 1.0, %v3276_v37 }
 0x7f0   :  { %3281 = vrcp.f32 %v2096_v9 }
 0x7f1   :  { %3283 = vrcp.f32 %v2103_v35 }
 0x7f9   :  { %v3280_v33 = vpop.eup %3279 }
 0x7fa   :  { %v3282_v31 = vpop.eup %3281  ;;  %v2107_v23 = vmul.f32 %v3280_v33, %v3278_v61 }
 0x7fb   :  { %v2106_v30 = vmul.f32 %v3282_v31, %v5395_v1  ;;  %v2886_v1 = vld [vmem:[%s6035_s0 + $0x30] sm:$0xff] }
 0x7fd   :  { %v2147_v51 = vpop.f32.mrb[48].mxu0  ;;  %v2188_v59 = vpop.f32.mrb[48].mxu1  ;;  %v5860_v26 = vadd.f32 %v2107_v23, %v2106_v30 }
 0x7fe   :  { %v2149_v53 = vpop.f32.mrb[49].mxu0  ;;  %v2190_v29 = vpop.f32.mrb[49].mxu1 }
 0x7ff   :  { %v2199_v27 = vcombine.low %v2147_v51, %v2149_v53  ;;  %v2200_v57 = vcombine.low %v2188_v59, %v2190_v29  ;;  %v2151_v28 = vpop.f32.mrb[50].mxu0  ;;  %v2192_v24 = vpop.f32.mrb[50].mxu1  ;;  %3285 = vtanh.f32 %v5860_v26 }
 0x800   :  { %v2152_v9 = vpop.f32.mrb[51].mxu0  ;;  %v2193_v58 = vpop.f32.mrb[51].mxu1 }
 0x801   :  { %v2207_v61 = vrot.slane %v2199_v27, %v4198_v2  ;;  %v2214_v37 = vrot.slane %v2200_v57, %v4198_v2  ;;  %v3284_v30 = vpop.eup %3283 }
 0x803   :  { %v2215_v33 = vcombine.low %v2207_v61, %v2214_v37 }
 0x805   :  { %v2217_v31 = vadd.f32 %v2886_v1, %v2215_v33 }
 0x807   :  { %v2887_v23 = vmul.f32 -1.442695, %v2217_v31  ;;  %v2225_v35 = vrot.slane %v2217_v31, 2  ;;  %v2236_v28 = vrot.slane %v2217_v31, 6  ;;  %v2233_v24 = vrot.slane %v2217_v31, 4 }
 0x809   :  { %v3286_v51 = vpop.eup %3285  ;;  %3287 = vpow2.f32 %v2887_v23  ;;  %v2888_v59 = vmul.f32 -1.442695, %v2225_v35  ;;  %v2889_v27 = vmul.f32 -1.442695, %v2236_v28 }
 0x80a   :  { %v2110_v53 = vmul.f32 %v3286_v51, %v3284_v30 }
 0x80b   :  { %3289 = vpow2.f32 %v2888_v59 }
 0x80c   :  { %v2250_v29 = vpack.c.bf16 %v2110_v53, %v2110_v53  ;;  %3291 = vpow2.f32 %v2889_v27  ;;  %v6759_v27 = vld [vmem:[#allocation17_spill] sm:$0xff] }
 0x80e   :  { %2283 = vmatprep.mubr.bf16.mxu0 %v2250_v29  ;;  %2324 = vmatprep.mubr.bf16.mxu1 %v2250_v29 }
 0x813   :  { %v3288_v57 = vpop.eup %3287 }
 0x814   :  { %v2221_v9 = vadd.f32 1.0, %v3288_v57  ;;  %v6760_v57 = vld [vmem:[#allocation18_spill] sm:$0xff] }
 0x815   :  { %v3290_v58 = vpop.eup %3289 }
 0x816   :  { %3293 = vrcp.f32 %v2221_v9  ;;  %v2230_v61 = vadd.f32 1.0, %v3290_v58  ;;  %v3292_v37 = vpop.eup %3291  ;;  %v6762_v9 = vld [vmem:[#allocation61_spill] sm:$0xff]  ;;  %v6763_v58 = vld [vmem:[#allocation62_spill] sm:$0xff] }
 0x817   :  { %3295 = vtanh.f32 %v2233_v24  ;;  %v2241_v35 = vadd.f32 1.0, %v3292_v37  ;;  %v6761_v24 = vld [vmem:[#allocation19_spill] sm:$0xff]  ;;  %v6765_v37 = vld [vmem:[#allocation64_spill] sm:$0xff] }
 0x818   :  { %3297 = vrcp.f32 %v2230_v61  ;;  %v6764_v61 = vld [vmem:[#allocation63_spill] sm:$0xff] }
 0x819   :  { %3299 = vrcp.f32 %v2241_v35  ;;  %v6769_v35 = vld [vmem:[#allocation23_spill] sm:$0xff] }
 0x820   :  { %v3294_v1 = vpop.eup %3293 }
 0x821   :  { %v3296_v33 = vpop.eup %3295 }
 0x822   :  { %v3298_v23 = vpop.eup %3297  ;;  %v2245_v51 = vmul.f32 %v3296_v33, %v3294_v1  ;;  %v6766_v1 = vld [vmem:[#allocation65_spill] sm:$0xff]  ;;  %v6767_v33 = vld [vmem:[#allocation66_spill] sm:$0xff] }
 0x823   :  { %v2244_v30 = vmul.f32 %v3298_v23, %v5404_v60  ;;  %v3300_v31 = vpop.eup %3299  ;;  %v6736_v60 = vld [vmem:[#allocation21_spill] sm:$0xff]  ;;  %v6768_v23 = vld [vmem:[#allocation22_spill] sm:$0xff] }
 0x825   :  { %v5869_v59 = vadd.f32 %v2245_v51, %v2244_v30  ;;  %v6770_v30 = vld [vmem:[#allocation24_spill] sm:$0xff]  ;;  %v6771_v51 = vld [vmem:[#allocation25_spill] sm:$0xff] }
 0x827   :  { %3301 = vtanh.f32 %v5869_v59 }
 0x831   :  { %v3302_v53 = vpop.eup %3301 }
 0x832   :  { %v2248_v29 = vmul.f32 %v3302_v53, %v3300_v31  ;;  %v6772_v31 = vld [vmem:[#allocation26_spill] sm:$0xff]  ;;  %v6773_v53 = vmov 0.0  }
 0x834   :  { %v2249_v28 = vpack.c.bf16 %v2248_v29, %v2248_v29 }
 0x836   :  { %2284 = vmatmul.mubr.bf16.vlgmr.msra.gmra.mrb[52].mxu0 %v2249_v28  ;;  %2325 = vmatmul.mubr.bf16.vlgmr.msra.gmra.mrb[52].mxu1 %v2249_v28 }
 0x837   :  { %2360 = vmatpush1.bf16.msra.mxu0 %v5165_v5  ;;  %2401 = vmatpush1.bf16.msra.mxu1 %v5171_v13  ;;  %v6719_v5 = vld [vmem:[#allocation9_spill] sm:$0xff]  ;;  %v6720_v13 = vld [vmem:[#allocation10_spill] sm:$0xff] }
 0x838   :  { %2361 = vmatprep.subr.bf16.mxu0 %v5177_v43  ;;  %2402 = vmatprep.subr.bf16.mxu1 %v5183_v46  ;;  %v6721_v43 = vld [vmem:[#allocation60_spill] sm:$0xff]  ;;  %v6722_v46 = vld [vmem:[#allocation30_spill] sm:$0xff] }
 0x839   :  { %2391 = vmatprep.mubr.bf16.mxu0 %v6401_v54  ;;  %2432 = vmatprep.mubr.bf16.mxu1 %v6401_v54  ;;  %v6718_v54 = vld [vmem:[#allocation29_spill] sm:$0xff] }
 0x83b   :  { %2362 = vmatpush1.bf16.msra.mxu0 %v5191_v48  ;;  %2403 = vmatpush1.bf16.msra.mxu1 %v5197_v44  ;;  %v6723_v48 = vld [vmem:[#allocation31_spill] sm:$0xff]  ;;  %v6724_v44 = vld [vmem:[#allocation32_spill] sm:$0xff] }
 0x83c   :  { %2363 = vmatprep.subr.bf16.mxu0 %v5203_v4  ;;  %2404 = vmatprep.subr.bf16.mxu1 %v5209_v17  ;;  %v6725_v4 = vld [vmem:[#allocation33_spill] sm:$0xff]  ;;  %v6726_v17 = vld [vmem:[#allocation34_spill] sm:$0xff] }
 0x83f   :  { %2364 = vmatpush1.bf16.msra.mxu0 %v5215_v49  ;;  %2405 = vmatpush1.bf16.msra.mxu1 %v5221_v47  ;;  %v6727_v49 = vld [vmem:[#allocation35_spill] sm:$0xff]  ;;  %v6728_v47 = vld [vmem:[#allocation36_spill] sm:$0xff] }
 0x840   :  { %2365 = vmatprep.subr.bf16.mxu0 %v5227_v6  ;;  %2406 = vmatprep.subr.bf16.mxu1 %v5233_v8  ;;  %v6729_v6 = vld [vmem:[#allocation37_spill] sm:$0xff]  ;;  %v6730_v8 = vld [vmem:[#allocation38_spill] sm:$0xff] }
 0x843   :  { %2366 = vmatpush1.bf16.msra.mxu0 %v5239_v45  ;;  %2407 = vmatpush1.bf16.msra.mxu1 %v6656_v40  ;;  %v6731_v45 = vld [vmem:[#allocation39_spill] sm:$0xff] }
 0x844   :  { %2367 = vmatprep.subr.bf16.mxu0 %v6657_v0  ;;  %2408 = vmatprep.subr.bf16.mxu1 %v6658_v55  ;;  %v6737_v40 = vld [vmem:[#allocation43_spill] sm:$0xff]  ;;  %v6738_v0 = vld [vmem:[#allocation44_spill] sm:$0xff]  ;;  %v6739_v55 = vld [vmem:[#allocation45_spill] sm:$0xff] }
 0x847   :  { %2368 = vmatpush1.bf16.msra.mxu0 %v6659_v25  ;;  %2409 = vmatpush1.bf16.msra.mxu1 %v6660_v3  ;;  %v6740_v25 = vld [vmem:[#allocation46_spill] sm:$0xff]  ;;  %v6741_v3 = vld [vmem:[#allocation47_spill] sm:$0xff] }
 0x848   :  { %2369 = vmatprep.subr.bf16.mxu0 %v6661_v56  ;;  %2410 = vmatprep.subr.bf16.mxu1 %v6662_v63  ;;  %v6742_v56 = vld [vmem:[#allocation48_spill] sm:$0xff]  ;;  %v6743_v63 = vld [vmem:[#allocation49_spill] sm:$0xff] }
 0x84b   :  { %2370 = vmatpush1.bf16.msra.mxu0 %v5287_v7  ;;  %2411 = vmatpush1.bf16.msra.mxu1 %v5293_v42  ;;  %v6732_v42 = vld [vmem:[#allocation40_spill] sm:$0xff] }
 0x84c   :  { %2371 = vmatprep.subr.bf16.mxu0 %v5299_v14  ;;  %2412 = vmatprep.subr.bf16.mxu1 %v5305_v41  ;;  %v6733_v14 = vld [vmem:[#allocation41_spill] sm:$0xff]  ;;  %v6734_v41 = vld [vmem:[#allocation42_spill] sm:$0xff]  ;;  %v6735_v7 = vld [vmem:[#allocation20_spill] sm:$0xff] }
 0x84f   :  { %2372 = vmatpush1.bf16.msra.mxu0 %v5436_v50  ;;  %2413 = vmatpush1.bf16.msra.mxu1 %v5442_v62  ;;  %v6744_v50 = vld [vmem:[#allocation50_spill] sm:$0xff]  ;;  %v6745_v62 = vld [vmem:[#allocation51_spill] sm:$0xff] }
 0x850   :  { %2373 = vmatprep.subr.bf16.mxu0 %v5448_v38  ;;  %2414 = vmatprep.subr.bf16.mxu1 %v5454_v10  ;;  %v6746_v38 = vld [vmem:[#allocation52_spill] sm:$0xff]  ;;  %v6747_v10 = vld [vmem:[#allocation53_spill] sm:$0xff] }
 0x853   :  { %2374 = vmatpush1.bf16.msra.mxu0 %v5460_v11  ;;  %2415 = vmatpush1.bf16.msra.mxu1 %v5466_v12  ;;  %v6748_v11 = vld [vmem:[#allocation54_spill] sm:$0xff]  ;;  %v6749_v12 = vld [vmem:[#allocation55_spill] sm:$0xff] }
 0x854   :  { %2497 = vmatprep.subr.bf16.mxu0 %v5472_v15  ;;  %2538 = vmatprep.subr.bf16.mxu1 %v5478_v16  ;;  %v6750_v15 = vld [vmem:[#allocation56_spill] sm:$0xff]  ;;  %v6751_v16 = vld [vmem:[#allocation57_spill] sm:$0xff] }
 0x856   :  { %2392 = vmatmul.mubr.bf16.vlgmr.msra.gmra.mrb[56].mxu0 %v2249_v28  ;;  %2433 = vmatmul.mubr.bf16.vlgmr.msra.gmra.mrb[56].mxu1 %v2249_v28 }
 0x857   :  { %2498 = vmatpush1.bf16.msra.mxu0 %v5484_v18  ;;  %2539 = vmatpush1.bf16.msra.mxu1 %v5490_v34  ;;  %v6752_v18 = vld [vmem:[#allocation58_spill] sm:$0xff]  ;;  %v6753_v34 = vld [vmem:[#allocation59_spill] sm:$0xff] }
 0x858   :  { %2499 = vmatprep.subr.bf16.mxu0 %v5496_v19  ;;  %2540 = vmatprep.subr.bf16.mxu1 %v5502_v20  ;;  %v6754_v19 = vld [vmem:[#allocation12_spill] sm:$0xff]  ;;  %v6755_v20 = vld [vmem:[#allocation13_spill] sm:$0xff] }
 0x85b   :  { %2500 = vmatpush1.bf16.msra.mxu0 %v5508_v21  ;;  %2541 = vmatpush1.bf16.msra.mxu1 %v5514_v22  ;;  %v6756_v21 = vld [vmem:[#allocation14_spill] sm:$0xff]  ;;  %v6757_v22 = vld [vmem:[#allocation15_spill] sm:$0xff] }
 0x85c   :  { %2501 = vmatprep.subr.bf16.mxu0 %v5520_v52  ;;  %2542 = vmatprep.subr.bf16.mxu1 %v6718_v54  ;;  %v6758_v52 = vld [vmem:[#allocation16_spill] sm:$0xff]  ;;  %v6774_v54 = vld [vmem:[#allocation11_spill] sm:$0xff] }
 0x85f   :  { %2502 = vmatpush1.bf16.msra.mxu0 %v6719_v5  ;;  %2543 = vmatpush1.bf16.msra.mxu1 %v6720_v13 }
 0x860   :  { %2503 = vmatprep.subr.bf16.mxu0 %v6721_v43  ;;  %2544 = vmatprep.subr.bf16.mxu1 %v6722_v46 }
 0x863   :  { %2504 = vmatpush1.bf16.msra.mxu0 %v6723_v48  ;;  %2545 = vmatpush1.bf16.msra.mxu1 %v6724_v44 }
 0x864   :  { %2505 = vmatprep.subr.bf16.mxu0 %v6725_v4  ;;  %2546 = vmatprep.subr.bf16.mxu1 %v6726_v17 }
 0x867   :  { %2506 = vmatpush1.bf16.msra.mxu0 %v6727_v49  ;;  %2547 = vmatpush1.bf16.msra.mxu1 %v6728_v47 }
 0x868   :  { %2507 = vmatprep.subr.bf16.mxu0 %v6729_v6  ;;  %2548 = vmatprep.subr.bf16.mxu1 %v6730_v8 }
 0x86b   :  { %2508 = vmatpush1.bf16.msra.mxu0 %v6731_v45  ;;  %2549 = vmatpush1.bf16.msra.mxu1 %v6732_v42 }
 0x86c   :  { %2509 = vmatprep.subr.bf16.mxu0 %v6733_v14  ;;  %2550 = vmatprep.subr.bf16.mxu1 %v6734_v41 }
 0x86f   :  { %2510 = vmatpush1.bf16.msra.mxu0 %v6735_v7  ;;  %2551 = vmatpush1.bf16.msra.mxu1 %v6736_v60 }
 0x870   :  { %2511 = vmatprep.subr.bf16.mxu0 %v6737_v40  ;;  %2552 = vmatprep.subr.bf16.mxu1 %v6738_v0 }
 0x873   :  { %2512 = vmatpush1.bf16.msra.mxu0 %v6739_v55  ;;  %2553 = vmatpush1.bf16.msra.mxu1 %v6740_v25 }
 0x874   :  { %2513 = vmatprep.subr.bf16.mxu0 %v6741_v3  ;;  %2554 = vmatprep.subr.bf16.mxu1 %v6742_v56 }
 0x877   :  { %2514 = vmatpush1.bf16.msra.mxu0 %v6743_v63  ;;  %2555 = vmatpush1.bf16.msra.mxu1 %v6744_v50 }
 0x878   :  { %2515 = vmatprep.subr.bf16.mxu0 %v6745_v62  ;;  %2556 = vmatprep.subr.bf16.mxu1 %v6746_v38 }
 0x87b   :  { %2516 = vmatpush1.bf16.msra.mxu0 %v6747_v10  ;;  %2557 = vmatpush1.bf16.msra.mxu1 %v6748_v11 }
 0x87c   :  { %2517 = vmatprep.subr.bf16.mxu0 %v6749_v12  ;;  %2558 = vmatprep.subr.bf16.mxu1 %v6750_v15 }
 0x87f   :  { %2518 = vmatpush1.bf16.msra.mxu0 %v6751_v16  ;;  %2559 = vmatpush1.bf16.msra.mxu1 %v6752_v18 }
 0x880   :  { %2519 = vmatprep.subr.bf16.mxu0 %v6753_v34  ;;  %2560 = vmatprep.subr.bf16.mxu1 %v6754_v19 }
 0x883   :  { %2520 = vmatpush1.bf16.msra.mxu0 %v6755_v20  ;;  %2561 = vmatpush1.bf16.msra.mxu1 %v6756_v21 }
 0x884   :  { %2521 = vmatprep.subr.bf16.mxu0 %v6757_v22  ;;  %2562 = vmatprep.subr.bf16.mxu1 %v6758_v52 }
 0x887   :  { %2522 = vmatpush1.bf16.msra.mxu0 %v6759_v27  ;;  %2563 = vmatpush1.bf16.msra.mxu1 %v6760_v57 }
 0x888   :  { %2523 = vmatprep.subr.bf16.mxu0 %v6761_v24  ;;  %2564 = vmatprep.subr.bf16.mxu1 %v6762_v9 }
 0x88b   :  { %2524 = vmatpush1.bf16.msra.mxu0 %v6763_v58  ;;  %2565 = vmatpush1.bf16.msra.mxu1 %v6764_v61 }
 0x88c   :  { %2525 = vmatprep.subr.bf16.mxu0 %v6765_v37  ;;  %2566 = vmatprep.subr.bf16.mxu1 %v6766_v1 }
 0x88f   :  { %2526 = vmatpush1.bf16.msra.mxu0 %v6767_v33  ;;  %2567 = vmatpush1.bf16.msra.mxu1 %v6768_v23 }
 0x890   :  { %2527 = vmatprep.subr.bf16.mxu0 %v6769_v35  ;;  %2568 = vmatprep.subr.bf16.mxu1 %v6770_v30 }
 0x893   :  { %2528 = vmatpush1.bf16.msra.mxu0 %v6771_v51  ;;  %2569 = vmatpush1.bf16.msra.mxu1 %v6772_v31 }
 0x894   :  { %2918 = vmatprep.subr.bf16.mxu0 %v6773_v53 }
 0x909   :  { %v2285_v29 = vpop.f32.mrb[52].mxu0  ;;  %v2326_v28 = vpop.f32.mrb[52].mxu1 }
 0x90a   :  { %v2286_v5 = vadd.f32 %v2285_v29, %v6774_v54  ;;  %v2287_v13 = vpop.f32.mrb[53].mxu0  ;;  %v2328_v43 = vpop.f32.mrb[53].mxu1  ;;  %v2327_v45 = vadd.f32 %v2326_v28, %v6497_v36 }
 0x90b   :  { %v2288_v46 = vadd.f32 %v2287_v13, %v4313_v39  ;;  %v2289_v48 = vpop.f32.mrb[54].mxu0  ;;  %v2330_v44 = vpop.f32.mrb[54].mxu1  ;;  %v2329_v6 = vadd.f32 %v2328_v43, %v6496_v32 }
 0x90c   :  { %v2890_v4 = vmul.f32 -1.442695, %v2286_v5  ;;  %v2290_v17 = vpop.f32.mrb[55].mxu0  ;;  %v2331_v49 = vpop.f32.mrb[55].mxu1 }
 0x90d   :  { %v2891_v47 = vmul.f32 -1.442695, %v2288_v46  ;;  %v2892_v8 = vmul.f32 -1.442695, %v2329_v6  ;;  %v3087_v49 = vld [vmem:[%s6039_s4] sm:$0xff]   ;;  %v3090_v6 = vld [vmem:[%s6039_s4 + $0x18] sm:$0xff]  }
 0x90e   :  { %3303 = vpow2.f32 %v2890_v4 }
 0x90f   :  { %3305 = vpow2.f32 %v2891_v47  ;;  %v3089_v47 = vld [vmem:[%s6039_s4 + $0x10] sm:$0xff]  }
 0x910   :  { %3307 = vpow2.f32 %v2892_v8  ;;  %v3091_v8 = vld [vmem:[%s6039_s4 + $0x20] sm:$0xff]  }
 0x911   :  { %3309 = vtanh.f32 %v2327_v45  ;;  %v3092_v45 = vld [vmem:[%s6039_s4 + $0x28] sm:$0xff]  }
 0x918   :  { %v3304_v42 = vpop.eup %3303 }
 0x919   :  { %v3306_v14 = vpop.eup %3305  ;;  %v2336_v41 = vadd.f32 1.0, %v3304_v42  ;;  %v3093_v42 = vld [vmem:[%s6039_s4 + $0x30] sm:$0xff]  }
 0x91a   :  { %v2342_v7 = vadd.f32 1.0, %v3306_v14  ;;  %v3308_v60 = vpop.eup %3307  ;;  %v3094_v14 = vld [vmem:[%s6039_s4 + $0x38] sm:$0xff]  }
 0x91b   :  { %3311 = vrcp.f32 %v2336_v41  ;;  %v3310_v40 = vpop.eup %3309  ;;  %v2349_v3 = vadd.f32 1.0, %v3308_v60 }
 0x91c   :  { %3313 = vrcp.f32 %v2342_v7 }
 0x91d   :  { %3315 = vrcp.f32 %v2349_v3 }
 0x925   :  { %v3312_v0 = vpop.eup %3311 }
 0x926   :  { %v3314_v55 = vpop.eup %3313  ;;  %v2353_v25 = vmul.f32 %v3312_v0, %v3310_v40 }
 0x927   :  { %v2352_v56 = vmul.f32 %v3314_v55, %v5860_v26  ;;  %v2893_v26 = vld [vmem:[%s6035_s0 + $0x38] sm:$0xff]  ;;  %v3316_v57 = vpop.eup %3315 }
 0x929   :  { %v2393_v63 = vpop.f32.mrb[56].mxu0  ;;  %v2434_v50 = vpop.f32.mrb[56].mxu1  ;;  %v5974_v62 = vadd.f32 %v2353_v25, %v2352_v56 }
 0x92a   :  { %v2395_v38 = vpop.f32.mrb[57].mxu0  ;;  %v2436_v10 = vpop.f32.mrb[57].mxu1 }
 0x92b   :  { %v2445_v11 = vcombine.low %v2393_v63, %v2395_v38  ;;  %v2446_v12 = vcombine.low %v2434_v50, %v2436_v10  ;;  %v2397_v15 = vpop.f32.mrb[58].mxu0  ;;  %v2438_v16 = vpop.f32.mrb[58].mxu1  ;;  %3317 = vtanh.f32 %v5974_v62 }
 0x92c   :  { %v2398_v18 = vpop.f32.mrb[59].mxu0  ;;  %v2439_v34 = vpop.f32.mrb[59].mxu1 }
 0x92d   :  { %v2453_v19 = vrot.slane %v2445_v11, %v4198_v2  ;;  %v2460_v20 = vrot.slane %v2446_v12, %v4198_v2 }
 0x92f   :  { %v2461_v21 = vcombine.low %v2453_v19, %v2460_v20 }
 0x931   :  { %v2463_v22 = vadd.f32 %v2893_v26, %v2461_v21 }
 0x933   :  { %v2894_v52 = vmul.f32 -1.442695, %v2463_v22  ;;  %v2471_v27 = vrot.slane %v2463_v22, 2  ;;  %v2482_v37 = vrot.slane %v2463_v22, 6  ;;  %v2479_v33 = vrot.slane %v2463_v22, 4 }
 0x935   :  { %v3318_v24 = vpop.eup %3317  ;;  %3319 = vpow2.f32 %v2894_v52  ;;  %v2895_v9 = vmul.f32 -1.442695, %v2471_v27  ;;  %v2896_v1 = vmul.f32 -1.442695, %v2482_v37 }
 0x936   :  { %v2356_v58 = vmul.f32 %v3318_v24, %v3316_v57  ;;  %v2900_v57 = vld [vmem:[%s6040_s5] ss:$0 sm:$0xff]  ;;  %s3547_s5 = scalar_lea.vmem %s2742_s8, 32 }
 0x937   :  { %3321 = vpow2.f32 %v2895_v9  ;;  %p3548_p0 = scmp.ne.s32.totalorder %s2742_s8, %s3547_s5  ;;  %p3553_p2 = scmp.lt.s32.totalorder %s3547_s5, %s3547_s5 }
 0x938   :  { %v2496_v61 = vpack.c.bf16 %v2356_v58, %v2356_v58  ;;  %3323 = vpow2.f32 %v2896_v1 }
 0x939   :  { %p3554_p3 = por %p3553_p2, %p3552_p1 }
 0x93a   :  { %2529 = vmatprep.mubr.bf16.mxu0 %v2496_v61  ;;  %2570 = vmatprep.mubr.bf16.mxu1 %v2496_v61 }
 0x93b   :  { %p3555_p4 = pnand %p3554_p3, %p3548_p0 }
 0x93f   :  { %v3320_v2 = vpop.eup %3319 }
 0x940   :  { %v2467_v23 = vadd.f32 1.0, %v3320_v2 }
 0x941   :  { %v3322_v35 = vpop.eup %3321 }
 0x942   :  { %3325 = vrcp.f32 %v2467_v23  ;;  %v2476_v30 = vadd.f32 1.0, %v3322_v35  ;;  %v3324_v51 = vpop.eup %3323 }
 0x943   :  { %3327 = vtanh.f32 %v2479_v33  ;;  %v2487_v5 = vadd.f32 1.0, %v3324_v51 }
 0x944   :  { %3329 = vrcp.f32 %v2476_v30 }
 0x945   :  { %3331 = vrcp.f32 %v2487_v5 }
 0x94c   :  { %v3326_v31 = vpop.eup %3325 }
 0x94d   :  { %v3328_v29 = vpop.eup %3327 }
 0x94e   :  { %v3330_v28 = vpop.eup %3329  ;;  %v2491_v43 = vmul.f32 %v3328_v29, %v3326_v31 }
 0x94f   :  { %v2490_v13 = vmul.f32 %v3330_v28, %v5869_v59  ;;  %v3332_v48 = vpop.eup %3331  ;;  %v3088_v59 = vld [vmem:[%s6039_s4 + $0x8] sm:$0xff]  }
 0x951   :  { %v2492_v46 = vadd.f32 %v2491_v43, %v2490_v13 }
 0x953   :  { %3333 = vtanh.f32 %v2492_v46  ;;  %2604 = vst [vmem:[#allocation3] sm:$0x3] %v2492_v46 }
 0x95d   :  { %v3334_v44 = vpop.eup %3333 }
 0x95e   :  { %v2494_v4 = vmul.f32 %v3334_v44, %v3332_v48 }
 0x960   :  { %v2495_v17 = vpack.c.bf16 %v2494_v4, %v2494_v4  ;;  %2603 = vst [vmem:[#allocation2] sm:$0x3] %v2494_v4 }
 0x962   :  { %2530 = vmatmul.mubr.bf16.vlgmr.msra.gmra.mrb[60].mxu0 %v2495_v17  ;;  %2571 = vmatmul.mubr.bf16.vlgmr.msra.gmra.mrb[60].mxu1 %v2495_v17 }
 0x963   :  { %2919 = vmatpush3.bf16.msra.mxu0 %v3087_v49  ;;  %2934 = vmatprep.mubr.msk.bf16.mxu0 %vm3574_vm0, %v6773_v53 }
 0x964   :  { %2920 = vmatprep.subr.bf16.mxu0 %v6773_v53 }
 0x967   :  { %2921 = vmatpush3.bf16.msra.mxu0 %v3088_v59 }
 0x968   :  { %2922 = vmatprep.subr.bf16.mxu0 %v6773_v53 }
 0x96b   :  { %2923 = vmatpush3.bf16.msra.mxu0 %v3089_v47 }
 0x96c   :  { %2924 = vmatprep.subr.bf16.mxu0 %v6773_v53 }
 0x96f   :  { %2925 = vmatpush3.bf16.msra.mxu0 %v3090_v6 }
 0x970   :  { %2926 = vmatprep.subr.bf16.mxu0 %v6773_v53 }
 0x973   :  { %2927 = vmatpush3.bf16.msra.mxu0 %v3091_v8 }
 0x974   :  { %2928 = vmatprep.subr.bf16.mxu0 %v6773_v53 }
 0x977   :  { %2929 = vmatpush3.bf16.msra.mxu0 %v3092_v45 }
 0x978   :  { %2930 = vmatprep.subr.bf16.mxu0 %v6773_v53 }
 0x97b   :  { %2931 = vmatpush3.bf16.msra.mxu0 %v3093_v42 }
 0x97c   :  { %2932 = vmatprep.subr.bf16.mxu0 %v6773_v53 }
 0x97f   :  { %2933 = vmatpush3.bf16.msra.mxu0 %v3094_v14 }
 0xa35   :  { %v2531_v41 = vpop.f32.mrb[60].mxu0  ;;  %v2572_v7 = vpop.f32.mrb[60].mxu1 }
 0xa36   :  { %v2532_v60 = vadd.f32 %v2531_v41, %v6774_v54  ;;  %v2533_v40 = vpop.f32.mrb[61].mxu0  ;;  %v2574_v0 = vpop.f32.mrb[61].mxu1  ;;  %v2573_v11 = vadd.f32 %v2572_v7, %v6497_v36 }
 0xa37   :  { %v2534_v55 = vadd.f32 %v2533_v40, %v4313_v39  ;;  %v2535_v25 = vpop.f32.mrb[62].mxu0  ;;  %v2576_v3 = vpop.f32.mrb[62].mxu1  ;;  %v2575_v10 = vadd.f32 %v2574_v0, %v6496_v32 }
 0xa38   :  { %v2897_v56 = vmul.f32 -1.442695, %v2532_v60  ;;  %v2536_v63 = vpop.f32.mrb[63].mxu0  ;;  %v2577_v50 = vpop.f32.mrb[63].mxu1 }
 0xa39   :  { %v2898_v38 = vmul.f32 -1.442695, %v2534_v55  ;;  %v2899_v53 = vmul.f32 -1.442695, %v2575_v10 }
 0xa3a   :  { %3335 = vpow2.f32 %v2897_v56 }
 0xa3b   :  { %3337 = vpow2.f32 %v2898_v38 }
 0xa3c   :  { %3339 = vpow2.f32 %v2899_v53 }
 0xa3d   :  { %3341 = vtanh.f32 %v2573_v11 }
 0xa44   :  { %v3336_v12 = vpop.eup %3335 }
 0xa45   :  { %v3338_v15 = vpop.eup %3337  ;;  %v2582_v54 = vadd.f32 1.0, %v3336_v12 }
 0xa46   :  { %v2588_v16 = vadd.f32 1.0, %v3338_v15  ;;  %v3340_v39 = vpop.eup %3339 }
 0xa47   :  { %3343 = vrcp.f32 %v2582_v54  ;;  %v3342_v18 = vpop.eup %3341  ;;  %v2595_v26 = vadd.f32 1.0, %v3340_v39 }
 0xa48   :  { %3345 = vrcp.f32 %v2588_v16 }
 0xa49   :  { %3347 = vrcp.f32 %v2595_v26 }
 0xa51   :  { %v3344_v34 = vpop.eup %3343 }
 0xa52   :  { %v3346_v19 = vpop.eup %3345  ;;  %v2599_v20 = vmul.f32 %v3344_v34, %v3342_v18 }
 0xa53   :  { %v2598_v21 = vmul.f32 %v3346_v19, %v5974_v62  ;;  %v3348_v36 = vpop.eup %3347 }
 0xa55   :  { %v2600_v32 = vadd.f32 %v2599_v20, %v2598_v21 }
 0xa57   :  { %3349 = vtanh.f32 %v2600_v32  ;;  %2606 = vst [vmem:[#allocation5] sm:$0x3] %v2600_v32 }
 0xa61   :  { %v3350_v22 = vpop.eup %3349 }
 0xa62   :  { %v2602_v52 = vmul.f32 %v3350_v22, %v3348_v36 }
 0xa64   :  { %2605 = vst [vmem:[#allocation4] sm:$0x3] %v2602_v52  ;;  %v2610_v27 = vpack.c.bf16 %v2602_v52, %v2602_v52 }
 0xa66   :  { %2935 = vmatmul.mubr.bf16.vlgmr.msra.gmra.mrb[64].mxu0 %v2610_v27 }
 0xb39   :  { %v2716_v24 = vpop.f32.mrb[64].mxu0 }
 0xb3a   :  { %v2717_v9 = vadd.f32 %v2900_v57, %v2716_v24  ;;  %v2936_v58 = vpop.f32.mrb[65].mxu0 }
 0xb3b   :  { %v2719_v61 = vpop.f32.mrb[66].mxu0 }
 0xb3c   :  { %v2937_v62 = vpop.f32.mrb[67].mxu0  ;;  %v2723_v37 = vsel %vm2722_vm1, %v2717_v9, -inf }
 0xb3d   :  { %2724 = vmax.xlane.f32.xlu0 %v2723_v37 }
 0xbca   :  { %v2725_v1 = vpop.xlane.xlu0 %2724 }
 0xbcb   :  { %v2726_v2 = vsub.f32 %v2717_v9, %v2725_v1 }
 0xbcd   :  { %v2727_v33 = vmul.f32 1.442695, %v2726_v2 }
 0xbcf   :  { %3351 = vpow2.f32 %v2727_v33 }
 0xbd9   :  { %v3352_v23 = vpop.eup %3351 }
 0xbda   :  { %v2729_v35 = vsel %vm2722_vm1, %v3352_v23, 0.0 }
 0xbdb   :  { %2730 = vadd.xlane.f32.xlu0 %v2729_v35 }
 0xc68   :  { %v2731_v30 = vpop.xlane.xlu0 %2730 }
 0xc69   :  { %3353 = vrcp.f32 %v2731_v30 }
 0xc73   :  { %v3354_v51 = vpop.eup %3353 }
 0xc74   :  { %v2733_v31 = vmul.f32 %v3354_v51, %v3352_v23 }
 0xc76   :  { %2734 = vst [vmem:[#allocation6] sm:$0x3] %v2733_v31 }
 0xc77   :  { %3558 = shalt.err (!%p3555_p4)
}
 0xc78   :  { %s3559_s11 = scalar_lea.hbm %s6041_s6, 32 }
 0xc79   :  { %p3560_p5 = scmp.ne.s32.totalorder %s6041_s6, %s3559_s11  ;;  %p3563_p6 = scmp.lt.u32.totalorder %s3559_s11, %s6041_s6 }
 0xc7b   :  { %p3565_p7 = pnand %p3563_p6, %p3560_p5 }
 0xc7d   :  { %3568 = shalt.err (!%p3565_p7)
}
 0xc7e   :  { %2744 = dma.vmem_to_hbm [thread:$0]  %s2742_s8, 32, %s6041_s6, [#allocation7]  }
 0xc7f   :  { %3569 = dma.done.wait [#allocation7], 32  }
 0xc80   :  { %3570 = vsyncadd [#allocation7], 4294967264 }
 0xc81   :  { %2748 = vsyncpa [#allocation7], 1 }

</bundles_post_ra>
